<compile_context>
chip_gen: v6e
topology: v6e:2x2x1
jax: 0.10.0
libtpu: 0.0.40
codegen_flags: <defaults>
</compile_context>

<pallas_src>
import functools

import jax
import jax.numpy as jnp
from jax import lax
from jax.experimental import pallas as pl
from jax.experimental.pallas import tpu as pltpu

# TODO(synk): PyTorch nn.GELU defaults to the exact erf form; the tanh
# approximation is used here (activation type is an injected constructor arg).
_gelu = functools.partial(jax.nn.gelu, approximate=True)


def _softmax_rows(s):
    # f32 row softmax; the divide goes to the EUP via pl.reciprocal.
    m = jnp.max(s, axis=-1, keepdims=True)
    e = jnp.exp(s - m)
    return e * pl.reciprocal(jnp.sum(e, axis=-1, keepdims=True), approx=True)


# ---------------------------------------------------------------------------
# Kernel 1: fused two-way transformer stand-in + hyper MLPs + IoU head.
# grid = (B, Q): per-image projections are computed once (q == 0) into VMEM
# scratch; every per-query intermediate (scores, hs) stays in VMEM.
# ---------------------------------------------------------------------------
def _make_twoway_kernel(scale, nm, n_iou_hidden):
    # TODO(synk): the real two-way transformer is an injected external nn.Module;
    # this deterministic single-layer two-way cross-attention stand-in keeps the
    # same dataflow (tokens->image and image->tokens attention, residuals).
    n_fixed = 15
    n_iou = 2 * (n_iou_hidden + 1)

    def kernel(*refs):
        (src_ref, pos_ref, tok_ref,
         wq_ref, wk_ref, wv_ref, wq2_ref, wk2_ref, wv2_ref,
         hw1_ref, hb1_ref, hw2_ref, hb2_ref, hwf_ref, hbf_ref) = refs[:n_fixed]
        iou_refs = refs[n_fixed:n_fixed + n_iou]
        src_out_ref, hyper_ref, iou_ref = refs[n_fixed + n_iou:n_fixed + n_iou + 3]
        x_scr, k_scr, v_scr, q2_scr = refs[n_fixed + n_iou + 3:]

        f32 = jnp.float32
        bf16 = jnp.bfloat16
        nt = (((1,), (1,)), ((), ()))            # contract last dims (A @ B.T)
        q_idx = pl.program_id(1)

        # ---- per-image work, hoisted out of the per-query loop --------------
        @pl.when(q_idx == 0)
        def _():
            x = src_ref[0] + pos_ref[0]                              # [HW, C] f32
            x_scr[...] = x
            xb = x.astype(bf16)
            k_scr[...] = jnp.dot(xb, wk_ref[...],
                                 preferred_element_type=f32).astype(bf16)
            v_scr[...] = jnp.dot(xb, wv_ref[...],
                                 preferred_element_type=f32).astype(bf16)
            q2_scr[...] = jnp.dot(xb, wq2_ref[...],
                                  preferred_element_type=f32).astype(bf16)

        # ---- tokens -> image attention ---------------------------------------
        t = tok_ref[0, 0]                                            # [T, C] f32
        tb = t.astype(bf16)
        q = jnp.dot(tb, wq_ref[...], preferred_element_type=f32)
        s = lax.dot_general(q.astype(bf16), k_scr[...], nt,
                            preferred_element_type=f32) * scale      # [T, HW]
        p = _softmax_rows(s).astype(bf16)
        hs = t + jnp.dot(p, v_scr[...], preferred_element_type=f32)  # [T, C] f32
        hsb = hs.astype(bf16)

        # ---- image -> tokens attention ---------------------------------------
        k2 = jnp.dot(hsb, wk2_ref[...], preferred_element_type=f32).astype(bf16)
        v2 = jnp.dot(hsb, wv2_ref[...], preferred_element_type=f32).astype(bf16)
        s2 = lax.dot_general(q2_scr[...], k2, nt,
                             preferred_element_type=f32) * scale     # [HW, T]
        p2 = _softmax_rows(s2).astype(bf16)
        src_out = x_scr[...] + jnp.dot(p2, v2, preferred_element_type=f32)
        src_out_ref[0, 0] = src_out.astype(src_out_ref.dtype)

        # ---- hypernetwork MLPs (per mask token) on resident hs ---------------
        # Chains run on all T rows (row-wise ops) so every matmul has M=T>=8;
        # only row 1+m is kept.  FLOP waste is negligible at these sizes.
        rows = []
        for m in range(nm):
            h1 = _gelu(jnp.dot(hsb, hw1_ref[m], preferred_element_type=f32)
                       + hb1_ref[m]).astype(bf16)
            h2 = _gelu(jnp.dot(h1, hw2_ref[m], preferred_element_type=f32)
                       + hb2_ref[m]).astype(bf16)
            om = jnp.dot(h2, hwf_ref[m], preferred_element_type=f32) + hbf_ref[m]
            rows.append(om[1 + m:2 + m, :])                          # [1, C2]
        hyper_ref[0, 0] = jnp.concatenate(rows, axis=0)              # [Nm, C2]

        # ---- IoU prediction head on resident hs ------------------------------
        h = hsb
        for i in range(n_iou_hidden):
            w = iou_refs[2 * i][...]
            b = iou_refs[2 * i + 1][...]
            h = _gelu(jnp.dot(h, w, preferred_element_type=f32) + b).astype(bf16)
        wf = iou_refs[2 * n_iou_hidden][...]
        bf_ = iou_refs[2 * n_iou_hidden + 1][...]
        iou = jnp.dot(h, wf, preferred_element_type=f32) + bf_       # [T, Nm]
        iou_ref[0, 0] = iou[0:1, :]

    return kernel


def pallas_twoway_and_heads(params, src_b, pos, tokens):
    B, HW, C = src_b.shape
    _, Q, T, _ = tokens.shape
    tr, hp, head = params["tr"], params["hyper"], params["iou_head"]
    Nm, _, C2 = hp["wf"].shape
    n_hidden = len(head["layers"])
    scale = 1.0 / (float(C) ** 0.5)

    iou_flat = []
    for (w, b) in head["layers"]:
        iou_flat += [w, b]
    iou_flat += list(head["fc"])

    def _const(arr):
        nd = arr.ndim
        return pl.BlockSpec(arr.shape, lambda b, q, _nd=nd: (0,) * _nd)

    kernel = _make_twoway_kernel(scale, Nm, n_hidden)

    return pl.pallas_call(
        kernel,
        out_shape=(
            jax.ShapeDtypeStruct((B, Q, HW, C), jnp.bfloat16),       # src_out
            jax.ShapeDtypeStruct((B, Q, Nm, C2), jnp.float32),       # hyper_in
            jax.ShapeDtypeStruct((B, Q, 1, Nm), jnp.float32),        # iou_pred
        ),
        grid=(B, Q),
        in_specs=[
            pl.BlockSpec((1, HW, C), lambda b, q: (b, 0, 0)),        # image emb
            pl.BlockSpec((1, HW, C), lambda b, q: (0, 0, 0)),        # image pe
            pl.BlockSpec((1, 1, T, C), lambda b, q: (b, q, 0, 0)),   # tokens
            _const(tr["wq"]), _const(tr["wk"]), _const(tr["wv"]),
            _const(tr["wq2"]), _const(tr["wk2"]), _const(tr["wv2"]),
            _const(hp["w1"]), _const(hp["b1"]), _const(hp["w2"]),
            _const(hp["b2"]), _const(hp["wf"]), _const(hp["bf"]),
        ] + [_const(a) for a in iou_flat],
        out_specs=(
            pl.BlockSpec((1, 1, HW, C), lambda b, q: (b, q, 0, 0)),
            pl.BlockSpec((1, 1, Nm, C2), lambda b, q: (b, q, 0, 0)),
            pl.BlockSpec((1, 1, 1, Nm), lambda b, q: (b, q, 0, 0)),
        ),
        scratch_shapes=[
            pltpu.VMEM((HW, C), jnp.float32),    # x = src + pos (f32 residual)
            pltpu.VMEM((HW, C), jnp.bfloat16),   # k
            pltpu.VMEM((HW, C), jnp.bfloat16),   # v
            pltpu.VMEM((HW, C), jnp.bfloat16),   # q2
        ],
        compiler_params=pltpu.CompilerParams(
            dimension_semantics=("parallel", "arbitrary"),
            vmem_limit_bytes=48 * 1024 * 1024),
    )(src_b, pos, tokens,
      tr["wq"], tr["wk"], tr["wv"], tr["wq2"], tr["wk2"], tr["wv2"],
      hp["w1"], hp["b1"], hp["w2"], hp["b2"], hp["wf"], hp["bf"],
      *iou_flat)


# ---------------------------------------------------------------------------
# Kernel 2: fused upscaling stack + mask matmul (one grid step per query).
# Layer 1 is one channels-first matmul [4*C1, HW]; normalization/GELU writes the
# tap1-on-lanes relayout [C1, 4*HW] (four block copies, no transpose); layer 2 and
# the block-diagonal mask matmul are then single large lane-dense matmuls.
# ---------------------------------------------------------------------------
def _upscale_mask_kernel(src_ref, w1_ref, b1_ref, g_ref, beta_ref,
                         w2_ref, b2_ref, hyp_ref, mask_ref, y1_scr,
                         *, c1, hw, eps):
    f32 = jnp.float32
    bf16 = jnp.bfloat16
    nt = (((1,), (1,)), ((), ()))

    x = src_ref[0]                                                   # [HW, C] bf16
    # layer 1 ConvT(k2,s2) as one matmul; rows = tap1*C1 + c1
    y1 = lax.dot_general(w1_ref[...], x, nt,
                         preferred_element_type=f32)                 # [4*C1, HW]
    y1 = y1 + b1_ref[...]

    # one-pass GroupNorm(1) statistics over all (C1, 2H, 2W) elements
    inv_n = 1.0 / float(y1.shape[0] * y1.shape[1])
    mean = jnp.sum(y1) * inv_n
    var = jnp.sum(y1 * y1) * inv_n - mean * mean
    inv = lax.rsqrt(var + eps)

    # normalize + affine + GELU, writing the tap1-on-lanes layout [C1, 4*HW]
    for t1 in range(4):
        y1t = (y1[t1 * c1:(t1 + 1) * c1, :] - mean) * inv
        y1t = y1t * g_ref[...] + beta_ref[...]
        y1_scr[:, t1 * hw:(t1 + 1) * hw] = _gelu(y1t).astype(bf16)

    # layer 2 ConvT + Identity + GELU: one large matmul (rows = tap2*C2 + c2)
    y2 = jnp.dot(w2_ref[...], y1_scr[...],
                 preferred_element_type=f32)                         # [4*C2, 4*HW]
    y2 = _gelu(y2 + b2_ref[...]).astype(bf16)

    # mask epilogue: block-diagonal hyper_in @ up while up is resident in VMEM
    m = jnp.dot(hyp_ref[0], y2, preferred_element_type=f32)          # [4*Nm, 4*HW]
    mask_ref[0] = m.astype(mask_ref.dtype)


def pallas_upscale_and_masks(params, src, hyper_bd):
    BQ, HW, C = src.shape
    u1, u2 = params["up1"], params["up2"]
    C14, _ = u1["wT"].shape
    C24, C1 = u2["wT"].shape
    Nm4 = hyper_bd.shape[1]
    return pl.pallas_call(
        functools.partial(_upscale_mask_kernel, c1=C1, hw=HW, eps=1e-5),
        out_shape=jax.ShapeDtypeStruct((BQ, Nm4, 4 * HW), jnp.float32),
        grid=(BQ,),
        in_specs=[
            pl.BlockSpec((1, HW, C), lambda b: (b, 0, 0)),
            pl.BlockSpec((C14, C), lambda b: (0, 0)),
            pl.BlockSpec((C14, 1), lambda b: (0, 0)),
            pl.BlockSpec((C1, 1), lambda b: (0, 0)),
            pl.BlockSpec((C1, 1), lambda b: (0, 0)),
            pl.BlockSpec((C24, C1), lambda b: (0, 0)),
            pl.BlockSpec((C24, 1), lambda b: (0, 0)),
            pl.BlockSpec((1, Nm4, C24), lambda b: (b, 0, 0)),
        ],
        out_specs=pl.BlockSpec((1, Nm4, 4 * HW), lambda b: (b, 0, 0)),
        scratch_shapes=[pltpu.VMEM((C1, 4 * HW), jnp.bfloat16)],
        compiler_params=pltpu.CompilerParams(
            dimension_semantics=("parallel",),
            vmem_limit_bytes=48 * 1024 * 1024),
    )(src, u1["wT"], u1["b_col"], u1["g_col"], u1["beta_col"],
      u2["wT"], u2["b_col"], hyper_bd)


# ---------------------------------------------------------------------------
# Forward pass (plain-JAX glue around the 2 fused kernels)
# ---------------------------------------------------------------------------
def mask_decoder_forward(params, image_embeddings, image_pe,
                         sparse_prompt_embeddings, multimask_output,
                         num_multimask_outputs):
    B, Q, S, C = sparse_prompt_embeddings.shape
    _, Cc, H, W = image_embeddings.shape
    BQ = B * Q
    HW = H * W
    Nm = params["mask_tokens"].shape[0]
    C2 = params["hyper"]["wf"].shape[-1]

    # NCHW -> channels-last flattened [*, H*W, C] (channels on lanes)
    src_b = image_embeddings.transpose(0, 2, 3, 1).reshape(B, HW, Cc)
    pos = image_pe.transpose(0, 2, 3, 1).reshape(1, HW, Cc)

    # tokens = [iou_token; mask_tokens; sparse prompts]  -> (B, Q, T, C)
    output_tokens = jnp.concatenate([params["iou_token"], params["mask_tokens"]],
                                    axis=0)
    tokens = jnp.concatenate(
        [jnp.broadcast_to(output_tokens[None, None],
                          (B, Q) + output_tokens.shape),
         sparse_prompt_embeddings], axis=2)

    # kernel 1: transformer stand-in + hyper MLPs + IoU head
    src_out, hyper_in, iou_pred = pallas_twoway_and_heads(params, src_b, pos, tokens)

    # block-diagonal expansion over the 4 second-layer taps so kernel 2 can
    # contract the tap-factored upscaled embedding with a single matmul.
    hyper_in = hyper_in.reshape(BQ, Nm, C2)
    eye4 = jnp.eye(4, dtype=hyper_in.dtype)
    hyper_bd = jnp.einsum("tp,bmc->btmpc", eye4, hyper_in)
    hyper_bd = hyper_bd.reshape(BQ, 4 * Nm, 4 * C2).astype(jnp.bfloat16)

    # kernel 2: fused upscaling + mask matmul
    masks_f = pallas_upscale_and_masks(params, src_out.reshape(BQ, HW, Cc),
                                       hyper_bd)                     # [BQ,4Nm,4HW]

    # undo the deferred 2x2 tap factorisation on the small final output:
    # row = (kh2*2+kw2)*Nm + m ; col = (kh1*2+kw1)*HW + h*W + w
    # final pixel (4h + 2*kh1 + kh2, 4w + 2*kw1 + kw2)
    masks = masks_f.reshape(BQ, 2, 2, Nm, 2, 2, H, W)
    masks = masks.transpose(0, 3, 6, 4, 1, 7, 5, 2).reshape(BQ, Nm, 4 * H, 4 * W)

    iou_pred = iou_pred.reshape(BQ, Nm)

    if multimask_output and num_multimask_outputs > 1:
        return masks[:, 1:], iou_pred[:, 1:]
    return masks[:, :1], iou_pred[:, :1]


# ---------------------------------------------------------------------------
# deterministic parameter init (synthetic; shapes follow __init__).  All matmul
# weights are pre-cast to bf16 once; biases / norm params stay f32.
# ---------------------------------------------------------------------------
def init_params(key, C, num_mask_tokens, upscaling_layer_dims,
                iou_head_hidden_dim, iou_head_depth):
    # TODO(synk): the fused deferred-tap upscaling kernel assumes the standard
    # 2-layer ConvTranspose config of EfficientSAM.
    assert len(upscaling_layer_dims) == 2, "fused path expects 2 upscaling layers"
    C1, C2 = upscaling_layer_dims
    keys = iter(jax.random.split(key, 128))
    bf16 = jnp.bfloat16

    def nrm(shape, s=0.02, dtype=jnp.float32):
        return (s * jax.random.normal(next(keys), shape)).astype(dtype)

    p = {}
    p["iou_token"] = nrm((1, C))
    p["mask_tokens"] = nrm((num_mask_tokens, C))
    p["tr"] = {n: nrm((C, C), dtype=bf16)
               for n in ("wq", "wk", "wv", "wq2", "wk2", "wv2")}

    # ConvT layer 1 (GN + GELU): weight rows indexed by (kh*2+kw)*C1 + cout
    w1 = nrm((C, 2, 2, C1)).reshape(C, 4 * C1).T                     # [4*C1, C]
    b1 = nrm((C1,))
    p["up1"] = {
        "wT": w1.astype(bf16),
        "b_col": jnp.tile(b1, 4).reshape(4 * C1, 1),
        "g_col": jnp.ones((C1, 1), jnp.float32),
        "beta_col": jnp.zeros((C1, 1), jnp.float32),
    }
    # ConvT layer 2 (Identity + GELU)
    w2 = nrm((C1, 2, 2, C2)).reshape(C1, 4 * C2).T                   # [4*C2, C1]
    b2 = nrm((C2,))
    p["up2"] = {"wT": w2.astype(bf16),
                "b_col": jnp.tile(b2, 4).reshape(4 * C2, 1)}

    # hypernetwork MLPs (num_layers=2 + fc), weights stacked over mask tokens
    p["hyper"] = {
        "w1": nrm((num_mask_tokens, C, C), dtype=bf16),
        "b1": nrm((num_mask_tokens, 1, C)),
        "w2": nrm((num_mask_tokens, C, C), dtype=bf16),
        "b2": nrm((num_mask_tokens, 1, C)),
        "wf": nrm((num_mask_tokens, C, C2), dtype=bf16),
        "bf": nrm((num_mask_tokens, 1, C2)),
    }

    # IoU head: iou_head_depth x (Linear + GELU) then fc
    dims_in = [C] + [iou_head_hidden_dim] * (iou_head_depth - 1)
    layers = [(nrm((d, iou_head_hidden_dim), dtype=bf16),
               nrm((1, iou_head_hidden_dim))) for d in dims_in]
    fc = (nrm((iou_head_hidden_dim, num_mask_tokens), dtype=bf16),
          nrm((1, num_mask_tokens)))
    p["iou_head"] = {"layers": layers, "fc": fc}
    return p


# ---------------------------------------------------------------------------
if __name__ == "__main__":
    # small, forward-consistent shapes
    B, Q, S = 1, 2, 3            # batch, max_num_queries, sparse prompt tokens
    C = 32                       # transformer_dim
    H = W = 8                    # image-embedding spatial
    num_multimask_outputs = 3    # -> num_mask_tokens = 4
    num_mask_tokens = num_multimask_outputs + 1
    upscaling_layer_dims = [16, 8]
    iou_head_depth = 3
    iou_head_hidden_dim = 32

    key = jax.random.PRNGKey(0)
    k_p, k1, k2, k3 = jax.random.split(key, 4)

    params = init_params(k_p, C, num_mask_tokens, upscaling_layer_dims,
                         iou_head_hidden_dim, iou_head_depth)

    image_embeddings = jax.random.normal(k1, (B, C, H, W), jnp.float32)
    image_pe = jax.random.normal(k2, (1, C, H, W), jnp.float32)
    sparse_prompt_embeddings = jax.random.normal(k3, (B, Q, S, C), jnp.float32)

    fwd = jax.jit(functools.partial(
        mask_decoder_forward,
        multimask_output=True,
        num_multimask_outputs=num_multimask_outputs))

    masks, iou_pred = fwd(params, image_embeddings, image_pe,
                          sparse_prompt_embeddings)
    masks, iou_pred = jax.block_until_ready((masks, iou_pred))

    assert masks.shape == (B * Q, num_multimask_outputs, 4 * H, 4 * W), masks.shape
    assert iou_pred.shape == (B * Q, num_multimask_outputs), iou_pred.shape
    assert bool(jnp.all(jnp.isfinite(masks))) and bool(jnp.all(jnp.isfinite(iou_pred)))
    print("KERNEL_OK")
</pallas_src>

<mosaic_0001>
module attributes {stable_mosaic.version = 11 : i64} {
  func.func @_upscale_mask_kernel(%arg0: i32, %arg1: memref<1x64x32xbf16, #tpu.memory_space<vmem>>, %arg2: memref<64x32xbf16, #tpu.memory_space<vmem>>, %arg3: memref<64x1xf32, #tpu.memory_space<vmem>>, %arg4: memref<16x1xf32, #tpu.memory_space<vmem>>, %arg5: memref<16x1xf32, #tpu.memory_space<vmem>>, %arg6: memref<32x16xbf16, #tpu.memory_space<vmem>>, %arg7: memref<32x1xf32, #tpu.memory_space<vmem>>, %arg8: memref<1x16x32xbf16, #tpu.memory_space<vmem>>, %arg9: memref<1x16x256xf32, #tpu.memory_space<vmem>>, %arg10: memref<16x256xbf16, #tpu.memory_space<vmem>>) attributes {dimension_semantics = [#tpu.dimension_semantics<parallel>], iteration_bounds = array<i64: 2>, scalar_prefetch = 0 : i64, scratch_operands = 1 : i64, tpu.core_type = #tpu.core_type<tc>, window_params = [{transform_indices = @transform_0, window_bounds = array<i64: 1, 64, 32>}, {pipeline_mode = #tpu.pipeline_mode<synchronous>, transform_indices = @transform_1, window_bounds = array<i64: 64, 32>}, {pipeline_mode = #tpu.pipeline_mode<synchronous>, transform_indices = @transform_2, window_bounds = array<i64: 64, 1>}, {pipeline_mode = #tpu.pipeline_mode<synchronous>, transform_indices = @transform_3, window_bounds = array<i64: 16, 1>}, {pipeline_mode = #tpu.pipeline_mode<synchronous>, transform_indices = @transform_4, window_bounds = array<i64: 16, 1>}, {pipeline_mode = #tpu.pipeline_mode<synchronous>, transform_indices = @transform_5, window_bounds = array<i64: 32, 16>}, {pipeline_mode = #tpu.pipeline_mode<synchronous>, transform_indices = @transform_6, window_bounds = array<i64: 32, 1>}, {transform_indices = @transform_7, window_bounds = array<i64: 1, 16, 32>}, {transform_indices = @transform_8, window_bounds = array<i64: 1, 16, 256>}]} {
    %c0 = arith.constant 0 : index
    %c0_0 = arith.constant 0 : index
    %c0_1 = arith.constant 0 : index
    %0 = vector.load %arg1[%c0, %c0_0, %c0_1] : memref<1x64x32xbf16, #tpu.memory_space<vmem>>, vector<1x64x32xbf16>
    %1 = vector.shape_cast %0 : vector<1x64x32xbf16> to vector<64x32xbf16>
    %c0_2 = arith.constant 0 : index
    %c0_3 = arith.constant 0 : index
    %2 = vector.load %arg2[%c0_2, %c0_3] : memref<64x32xbf16, #tpu.memory_space<vmem>>, vector<64x32xbf16>
    %cst = arith.constant dense<0.000000e+00> : vector<64x64xf32>
    %3 = tpu.matmul %2, %1, %cst {dimension_numbers = #tpu.dot_dimension_numbers<[1], [1], [0], [0], [0, 0, 1, 0], [], []>} : vector<64x32xbf16>, vector<64x32xbf16>, vector<64x64xf32> -> vector<64x64xf32>
    %c0_4 = arith.constant 0 : index
    %c0_5 = arith.constant 0 : index
    %4 = vector.load %arg3[%c0_4, %c0_5] : memref<64x1xf32, #tpu.memory_space<vmem>>, vector<64x1xf32>
    %5 = vector.broadcast %4 : vector<64x1xf32> to vector<64x64xf32>
    %6 = arith.addf %3, %5 : vector<64x64xf32>
    %7 = vector.shape_cast %6 : vector<64x64xf32> to vector<1x64x64xf32>
    %cst_6 = arith.constant dense<0.000000e+00> : vector<1xf32>
    %8 = vector.multi_reduction <add>, %7, %cst_6 [1, 2] : vector<1x64x64xf32> to vector<1xf32>
    %9 = vector.shape_cast %8 : vector<1xf32> to vector<1x1x1xf32>
    %10 = vector.extract %9[0, 0, 0] : f32 from vector<1x1x1xf32>
    %cst_7 = arith.constant 2.44140625E-4 : f32
    %11 = arith.mulf %10, %cst_7 : f32
    %12 = arith.mulf %6, %6 : vector<64x64xf32>
    %13 = vector.shape_cast %12 : vector<64x64xf32> to vector<1x64x64xf32>
    %cst_8 = arith.constant dense<0.000000e+00> : vector<1xf32>
    %14 = vector.multi_reduction <add>, %13, %cst_8 [1, 2] : vector<1x64x64xf32> to vector<1xf32>
    %15 = vector.shape_cast %14 : vector<1xf32> to vector<1x1x1xf32>
    %16 = vector.extract %15[0, 0, 0] : f32 from vector<1x1x1xf32>
    %cst_9 = arith.constant 2.44140625E-4 : f32
    %17 = arith.mulf %16, %cst_9 : f32
    %18 = arith.mulf %11, %11 : f32
    %19 = arith.subf %17, %18 : f32
    %cst_10 = arith.constant 9.99999974E-6 : f32
    %20 = arith.addf %19, %cst_10 : f32
    %21 = math.rsqrt %20 : f32
    %22 = vector.extract_strided_slice %6 {offsets = [0, 0], sizes = [16, 64], strides = [1, 1]} : vector<64x64xf32> to vector<16x64xf32>
    %23 = vector.broadcast %11 : f32 to vector<16x64xf32>
    %24 = arith.subf %22, %23 : vector<16x64xf32>
    %25 = vector.broadcast %21 : f32 to vector<16x64xf32>
    %26 = arith.mulf %24, %25 : vector<16x64xf32>
    %c0_11 = arith.constant 0 : index
    %c0_12 = arith.constant 0 : index
    %27 = vector.load %arg4[%c0_11, %c0_12] : memref<16x1xf32, #tpu.memory_space<vmem>>, vector<16x1xf32>
    %28 = vector.broadcast %27 : vector<16x1xf32> to vector<16x64xf32>
    %29 = arith.mulf %26, %28 : vector<16x64xf32>
    %c0_13 = arith.constant 0 : index
    %c0_14 = arith.constant 0 : index
    %30 = vector.load %arg5[%c0_13, %c0_14] : memref<16x1xf32, #tpu.memory_space<vmem>>, vector<16x1xf32>
    %31 = vector.broadcast %30 : vector<16x1xf32> to vector<16x64xf32>
    %32 = arith.addf %29, %31 : vector<16x64xf32>
    %33 = arith.mulf %32, %32 : vector<16x64xf32>
    %34 = arith.mulf %32, %33 : vector<16x64xf32>
    %cst_15 = arith.constant 4.471500e-02 : f32
    %35 = vector.broadcast %cst_15 : f32 to vector<16x64xf32>
    %36 = arith.mulf %35, %34 : vector<16x64xf32>
    %37 = arith.addf %32, %36 : vector<16x64xf32>
    %cst_16 = arith.constant 0.797884583 : f32
    %38 = vector.broadcast %cst_16 : f32 to vector<16x64xf32>
    %39 = arith.mulf %38, %37 : vector<16x64xf32>
    %40 = math.tanh %39 : vector<16x64xf32>
    %cst_17 = arith.constant 1.000000e+00 : f32
    %41 = vector.broadcast %cst_17 : f32 to vector<16x64xf32>
    %42 = arith.addf %41, %40 : vector<16x64xf32>
    %cst_18 = arith.constant 5.000000e-01 : f32
    %43 = vector.broadcast %cst_18 : f32 to vector<16x64xf32>
    %44 = arith.mulf %43, %42 : vector<16x64xf32>
    %45 = arith.mulf %32, %44 : vector<16x64xf32>
    %46 = arith.truncf %45 : vector<16x64xf32> to vector<16x64xbf16>
    %c0_19 = arith.constant 0 : index
    %c0_20 = arith.constant 0 : index
    %47 = vector.load %arg10[%c0_19, %c0_20] : memref<16x256xbf16, #tpu.memory_space<vmem>>, vector<16x64xbf16>
    tpu.vector_store %arg10[%c0_19, %c0_20], %46 {strides = array<i32>} : memref<16x256xbf16, #tpu.memory_space<vmem>>, vector<16x64xbf16>,
    %48 = vector.extract_strided_slice %6 {offsets = [16, 0], sizes = [16, 64], strides = [1, 1]} : vector<64x64xf32> to vector<16x64xf32>
    %49 = vector.broadcast %11 : f32 to vector<16x64xf32>
    %50 = arith.subf %48, %49 : vector<16x64xf32>
    %51 = vector.broadcast %21 : f32 to vector<16x64xf32>
    %52 = arith.mulf %50, %51 : vector<16x64xf32>
    %c0_21 = arith.constant 0 : index
    %c0_22 = arith.constant 0 : index
    %53 = vector.load %arg4[%c0_21, %c0_22] : memref<16x1xf32, #tpu.memory_space<vmem>>, vector<16x1xf32>
    %54 = vector.broadcast %53 : vector<16x1xf32> to vector<16x64xf32>
    %55 = arith.mulf %52, %54 : vector<16x64xf32>
    %c0_23 = arith.constant 0 : index
    %c0_24 = arith.constant 0 : index
    %56 = vector.load %arg5[%c0_23, %c0_24] : memref<16x1xf32, #tpu.memory_space<vmem>>, vector<16x1xf32>
    %57 = vector.broadcast %56 : vector<16x1xf32> to vector<16x64xf32>
    %58 = arith.addf %55, %57 : vector<16x64xf32>
    %59 = arith.mulf %58, %58 : vector<16x64xf32>
    %60 = arith.mulf %58, %59 : vector<16x64xf32>
    %cst_25 = arith.constant 4.471500e-02 : f32
    %61 = vector.broadcast %cst_25 : f32 to vector<16x64xf32>
    %62 = arith.mulf %61, %60 : vector<16x64xf32>
    %63 = arith.addf %58, %62 : vector<16x64xf32>
    %cst_26 = arith.constant 0.797884583 : f32
    %64 = vector.broadcast %cst_26 : f32 to vector<16x64xf32>
    %65 = arith.mulf %64, %63 : vector<16x64xf32>
    %66 = math.tanh %65 : vector<16x64xf32>
    %cst_27 = arith.constant 1.000000e+00 : f32
    %67 = vector.broadcast %cst_27 : f32 to vector<16x64xf32>
    %68 = arith.addf %67, %66 : vector<16x64xf32>
    %cst_28 = arith.constant 5.000000e-01 : f32
    %69 = vector.broadcast %cst_28 : f32 to vector<16x64xf32>
    %70 = arith.mulf %69, %68 : vector<16x64xf32>
    %71 = arith.mulf %58, %70 : vector<16x64xf32>
    %72 = arith.truncf %71 : vector<16x64xf32> to vector<16x64xbf16>
    %c0_29 = arith.constant 0 : index
    %c64 = arith.constant 64 : index
    %73 = vector.load %arg10[%c0_29, %c64] : memref<16x256xbf16, #tpu.memory_space<vmem>>, vector<16x64xbf16>
    tpu.vector_store %arg10[%c0_29, %c64], %72 {strides = array<i32>} : memref<16x256xbf16, #tpu.memory_space<vmem>>, vector<16x64xbf16>,
    %74 = vector.extract_strided_slice %6 {offsets = [32, 0], sizes = [16, 64], strides = [1, 1]} : vector<64x64xf32> to vector<16x64xf32>
    %75 = vector.broadcast %11 : f32 to vector<16x64xf32>
    %76 = arith.subf %74, %75 : vector<16x64xf32>
    %77 = vector.broadcast %21 : f32 to vector<16x64xf32>
    %78 = arith.mulf %76, %77 : vector<16x64xf32>
    %c0_30 = arith.constant 0 : index
    %c0_31 = arith.constant 0 : index
    %79 = vector.load %arg4[%c0_30, %c0_31] : memref<16x1xf32, #tpu.memory_space<vmem>>, vector<16x1xf32>
    %80 = vector.broadcast %79 : vector<16x1xf32> to vector<16x64xf32>
    %81 = arith.mulf %78, %80 : vector<16x64xf32>
    %c0_32 = arith.constant 0 : index
    %c0_33 = arith.constant 0 : index
    %82 = vector.load %arg5[%c0_32, %c0_33] : memref<16x1xf32, #tpu.memory_space<vmem>>, vector<16x1xf32>
    %83 = vector.broadcast %82 : vector<16x1xf32> to vector<16x64xf32>
    %84 = arith.addf %81, %83 : vector<16x64xf32>
    %85 = arith.mulf %84, %84 : vector<16x64xf32>
    %86 = arith.mulf %84, %85 : vector<16x64xf32>
    %cst_34 = arith.constant 4.471500e-02 : f32
    %87 = vector.broadcast %cst_34 : f32 to vector<16x64xf32>
    %88 = arith.mulf %87, %86 : vector<16x64xf32>
    %89 = arith.addf %84, %88 : vector<16x64xf32>
    %cst_35 = arith.constant 0.797884583 : f32
    %90 = vector.broadcast %cst_35 : f32 to vector<16x64xf32>
    %91 = arith.mulf %90, %89 : vector<16x64xf32>
    %92 = math.tanh %91 : vector<16x64xf32>
    %cst_36 = arith.constant 1.000000e+00 : f32
    %93 = vector.broadcast %cst_36 : f32 to vector<16x64xf32>
    %94 = arith.addf %93, %92 : vector<16x64xf32>
    %cst_37 = arith.constant 5.000000e-01 : f32
    %95 = vector.broadcast %cst_37 : f32 to vector<16x64xf32>
    %96 = arith.mulf %95, %94 : vector<16x64xf32>
    %97 = arith.mulf %84, %96 : vector<16x64xf32>
    %98 = arith.truncf %97 : vector<16x64xf32> to vector<16x64xbf16>
    %c0_38 = arith.constant 0 : index
    %c128 = arith.constant 128 : index
    %99 = vector.load %arg10[%c0_38, %c128] : memref<16x256xbf16, #tpu.memory_space<vmem>>, vector<16x64xbf16>
    tpu.vector_store %arg10[%c0_38, %c128], %98 {strides = array<i32>} : memref<16x256xbf16, #tpu.memory_space<vmem>>, vector<16x64xbf16>,
    %100 = vector.extract_strided_slice %6 {offsets = [48, 0], sizes = [16, 64], strides = [1, 1]} : vector<64x64xf32> to vector<16x64xf32>
    %101 = vector.broadcast %11 : f32 to vector<16x64xf32>
    %102 = arith.subf %100, %101 : vector<16x64xf32>
    %103 = vector.broadcast %21 : f32 to vector<16x64xf32>
    %104 = arith.mulf %102, %103 : vector<16x64xf32>
    %c0_39 = arith.constant 0 : index
    %c0_40 = arith.constant 0 : index
    %105 = vector.load %arg4[%c0_39, %c0_40] : memref<16x1xf32, #tpu.memory_space<vmem>>, vector<16x1xf32>
    %106 = vector.broadcast %105 : vector<16x1xf32> to vector<16x64xf32>
    %107 = arith.mulf %104, %106 : vector<16x64xf32>
    %c0_41 = arith.constant 0 : index
    %c0_42 = arith.constant 0 : index
    %108 = vector.load %arg5[%c0_41, %c0_42] : memref<16x1xf32, #tpu.memory_space<vmem>>, vector<16x1xf32>
    %109 = vector.broadcast %108 : vector<16x1xf32> to vector<16x64xf32>
    %110 = arith.addf %107, %109 : vector<16x64xf32>
    %111 = arith.mulf %110, %110 : vector<16x64xf32>
    %112 = arith.mulf %110, %111 : vector<16x64xf32>
    %cst_43 = arith.constant 4.471500e-02 : f32
    %113 = vector.broadcast %cst_43 : f32 to vector<16x64xf32>
    %114 = arith.mulf %113, %112 : vector<16x64xf32>
    %115 = arith.addf %110, %114 : vector<16x64xf32>
    %cst_44 = arith.constant 0.797884583 : f32
    %116 = vector.broadcast %cst_44 : f32 to vector<16x64xf32>
    %117 = arith.mulf %116, %115 : vector<16x64xf32>
    %118 = math.tanh %117 : vector<16x64xf32>
    %cst_45 = arith.constant 1.000000e+00 : f32
    %119 = vector.broadcast %cst_45 : f32 to vector<16x64xf32>
    %120 = arith.addf %119, %118 : vector<16x64xf32>
    %cst_46 = arith.constant 5.000000e-01 : f32
    %121 = vector.broadcast %cst_46 : f32 to vector<16x64xf32>
    %122 = arith.mulf %121, %120 : vector<16x64xf32>
    %123 = arith.mulf %110, %122 : vector<16x64xf32>
    %124 = arith.truncf %123 : vector<16x64xf32> to vector<16x64xbf16>
    %c0_47 = arith.constant 0 : index
    %c192 = arith.constant 192 : index
    %125 = vector.load %arg10[%c0_47, %c192] : memref<16x256xbf16, #tpu.memory_space<vmem>>, vector<16x64xbf16>
    tpu.vector_store %arg10[%c0_47, %c192], %124 {strides = array<i32>} : memref<16x256xbf16, #tpu.memory_space<vmem>>, vector<16x64xbf16>,
    %c0_48 = arith.constant 0 : index
    %c0_49 = arith.constant 0 : index
    %126 = vector.load %arg6[%c0_48, %c0_49] : memref<32x16xbf16, #tpu.memory_space<vmem>>, vector<32x16xbf16>
    %c0_50 = arith.constant 0 : index
    %c0_51 = arith.constant 0 : index
    %127 = vector.load %arg10[%c0_50, %c0_51] : memref<16x256xbf16, #tpu.memory_space<vmem>>, vector<16x256xbf16>
    %cst_52 = arith.constant dense<0.000000e+00> : vector<32x256xf32>
    %128 = tpu.matmul %126, %127, %cst_52 {dimension_numbers = #tpu.dot_dimension_numbers<[1], [0], [0], [1], [0, 0, 1, 1], [], []>} : vector<32x16xbf16>, vector<16x256xbf16>, vector<32x256xf32> -> vector<32x256xf32>
    %c0_53 = arith.constant 0 : index
    %c0_54 = arith.constant 0 : index
    %129 = vector.load %arg7[%c0_53, %c0_54] : memref<32x1xf32, #tpu.memory_space<vmem>>, vector<32x1xf32>
    %130 = vector.broadcast %129 : vector<32x1xf32> to vector<32x256xf32>
    %131 = arith.addf %128, %130 : vector<32x256xf32>
    %132 = arith.mulf %131, %131 : vector<32x256xf32>
    %133 = arith.mulf %131, %132 : vector<32x256xf32>
    %cst_55 = arith.constant 4.471500e-02 : f32
    %134 = vector.broadcast %cst_55 : f32 to vector<32x256xf32>
    %135 = arith.mulf %134, %133 : vector<32x256xf32>
    %136 = arith.addf %131, %135 : vector<32x256xf32>
    %cst_56 = arith.constant 0.797884583 : f32
    %137 = vector.broadcast %cst_56 : f32 to vector<32x256xf32>
    %138 = arith.mulf %137, %136 : vector<32x256xf32>
    %139 = math.tanh %138 : vector<32x256xf32>
    %cst_57 = arith.constant 1.000000e+00 : f32
    %140 = vector.broadcast %cst_57 : f32 to vector<32x256xf32>
    %141 = arith.addf %140, %139 : vector<32x256xf32>
    %cst_58 = arith.constant 5.000000e-01 : f32
    %142 = vector.broadcast %cst_58 : f32 to vector<32x256xf32>
    %143 = arith.mulf %142, %141 : vector<32x256xf32>
    %144 = arith.mulf %131, %143 : vector<32x256xf32>
    %145 = arith.truncf %144 : vector<32x256xf32> to vector<32x256xbf16>
    %c0_59 = arith.constant 0 : index
    %c0_60 = arith.constant 0 : index
    %c0_61 = arith.constant 0 : index
    %146 = vector.load %arg8[%c0_59, %c0_60, %c0_61] : memref<1x16x32xbf16, #tpu.memory_space<vmem>>, vector<1x16x32xbf16>
    %147 = vector.shape_cast %146 : vector<1x16x32xbf16> to vector<16x32xbf16>
    %cst_62 = arith.constant dense<0.000000e+00> : vector<16x256xf32>
    %148 = tpu.matmul %147, %145, %cst_62 {dimension_numbers = #tpu.dot_dimension_numbers<[1], [0], [0], [1], [0, 0, 1, 1], [], []>} : vector<16x32xbf16>, vector<32x256xbf16>, vector<16x256xf32> -> vector<16x256xf32>
    %c0_63 = arith.constant 0 : index
    %c0_64 = arith.constant 0 : index
    %c0_65 = arith.constant 0 : index
    %149 = vector.load %arg9[%c0_63, %c0_64, %c0_65] : memref<1x16x256xf32, #tpu.memory_space<vmem>>, vector<1x16x256xf32>
    %150 = vector.shape_cast %149 : vector<1x16x256xf32> to vector<16x256xf32>
    %151 = vector.shape_cast %148 : vector<16x256xf32> to vector<1x16x256xf32>
    tpu.vector_store %arg9[%c0_63, %c0_64, %c0_65], %151 {strides = array<i32>} : memref<1x16x256xf32, #tpu.memory_space<vmem>>, vector<1x16x256xf32>,
    return
  }
  func.func @transform_0(%arg0: i32) -> (i32, i32, i32) {
    %c0_i32 = arith.constant 0 : i32
    %c0_i32_0 = arith.constant 0 : i32
    %c0_i32_1 = arith.constant 0 : i32
    return %arg0, %c0_i32, %c0_i32_0 : i32, i32, i32
  }
  func.func @transform_1(%arg0: i32) -> (i32, i32) {
    %c0_i32 = arith.constant 0 : i32
    %c0_i32_0 = arith.constant 0 : i32
    %c0_i32_1 = arith.constant 0 : i32
    return %c0_i32, %c0_i32_0 : i32, i32
  }
  func.func @transform_2(%arg0: i32) -> (i32, i32) {
    %c0_i32 = arith.constant 0 : i32
    %c0_i32_0 = arith.constant 0 : i32
    %c0_i32_1 = arith.constant 0 : i32
    return %c0_i32, %c0_i32_0 : i32, i32
  }
  func.func @transform_3(%arg0: i32) -> (i32, i32) {
    %c0_i32 = arith.constant 0 : i32
    %c0_i32_0 = arith.constant 0 : i32
    %c0_i32_1 = arith.constant 0 : i32
    return %c0_i32, %c0_i32_0 : i32, i32
  }
  func.func @transform_4(%arg0: i32) -> (i32, i32) {
    %c0_i32 = arith.constant 0 : i32
    %c0_i32_0 = arith.constant 0 : i32
    %c0_i32_1 = arith.constant 0 : i32
    return %c0_i32, %c0_i32_0 : i32, i32
  }
  func.func @transform_5(%arg0: i32) -> (i32, i32) {
    %c0_i32 = arith.constant 0 : i32
    %c0_i32_0 = arith.constant 0 : i32
    %c0_i32_1 = arith.constant 0 : i32
    return %c0_i32, %c0_i32_0 : i32, i32
  }
  func.func @transform_6(%arg0: i32) -> (i32, i32) {
    %c0_i32 = arith.constant 0 : i32
    %c0_i32_0 = arith.constant 0 : i32
    %c0_i32_1 = arith.constant 0 : i32
    return %c0_i32, %c0_i32_0 : i32, i32
  }
  func.func @transform_7(%arg0: i32) -> (i32, i32, i32) {
    %c0_i32 = arith.constant 0 : i32
    %c0_i32_0 = arith.constant 0 : i32
    %c0_i32_1 = arith.constant 0 : i32
    return %arg0, %c0_i32, %c0_i32_0 : i32, i32, i32
  }
  func.func @transform_8(%arg0: i32) -> (i32, i32, i32) {
    %c0_i32 = arith.constant 0 : i32
    %c0_i32_0 = arith.constant 0 : i32
    %c0_i32_1 = arith.constant 0 : i32
    return %arg0, %c0_i32, %c0_i32_0 : i32, i32, i32
  }
}

module attributes {stable_mosaic.version = 11 : i64} {
  func.func @kernel(%arg0: i32, %arg1: i32, %arg2: memref<1x64x32xf32, #tpu.memory_space<vmem>>, %arg3: memref<1x64x32xf32, #tpu.memory_space<vmem>>, %arg4: memref<1x1x8x32xf32, #tpu.memory_space<vmem>>, %arg5: memref<32x32xbf16, #tpu.memory_space<vmem>>, %arg6: memref<32x32xbf16, #tpu.memory_space<vmem>>, %arg7: memref<32x32xbf16, #tpu.memory_space<vmem>>, %arg8: memref<32x32xbf16, #tpu.memory_space<vmem>>, %arg9: memref<32x32xbf16, #tpu.memory_space<vmem>>, %arg10: memref<32x32xbf16, #tpu.memory_space<vmem>>, %arg11: memref<4x32x32xbf16, #tpu.memory_space<vmem>>, %arg12: memref<4x1x32xf32, #tpu.memory_space<vmem>>, %arg13: memref<4x32x32xbf16, #tpu.memory_space<vmem>>, %arg14: memref<4x1x32xf32, #tpu.memory_space<vmem>>, %arg15: memref<4x32x8xbf16, #tpu.memory_space<vmem>>, %arg16: memref<4x1x8xf32, #tpu.memory_space<vmem>>, %arg17: memref<32x32xbf16, #tpu.memory_space<vmem>>, %arg18: memref<1x32xf32, #tpu.memory_space<vmem>>, %arg19: memref<32x32xbf16, #tpu.memory_space<vmem>>, %arg20: memref<1x32xf32, #tpu.memory_space<vmem>>, %arg21: memref<32x32xbf16, #tpu.memory_space<vmem>>, %arg22: memref<1x32xf32, #tpu.memory_space<vmem>>, %arg23: memref<32x4xbf16, #tpu.memory_space<vmem>>, %arg24: memref<1x4xf32, #tpu.memory_space<vmem>>, %arg25: memref<1x1x64x32xbf16, #tpu.memory_space<vmem>>, %arg26: memref<1x1x4x8xf32, #tpu.memory_space<vmem>>, %arg27: memref<1x1x1x4xf32, #tpu.memory_space<vmem>>, %arg28: memref<64x32xf32, #tpu.memory_space<vmem>>, %arg29: memref<64x32xbf16, #tpu.memory_space<vmem>>, %arg30: memref<64x32xbf16, #tpu.memory_space<vmem>>, %arg31: memref<64x32xbf16, #tpu.memory_space<vmem>>) attributes {dimension_semantics = [#tpu.dimension_semantics<parallel>, #tpu.dimension_semantics<arbitrary>], iteration_bounds = array<i64: 1, 2>, scalar_prefetch = 0 : i64, scratch_operands = 4 : i64, tpu.core_type = #tpu.core_type<tc>, window_params = [{transform_indices = @transform_0, window_bounds = array<i64: 1, 64, 32>}, {pipeline_mode = #tpu.pipeline_mode<synchronous>, transform_indices = @transform_1, window_bounds = array<i64: 1, 64, 32>}, {transform_indices = @transform_2, window_bounds = array<i64: 1, 1, 8, 32>}, {pipeline_mode = #tpu.pipeline_mode<synchronous>, transform_indices = @transform_3, window_bounds = array<i64: 32, 32>}, {pipeline_mode = #tpu.pipeline_mode<synchronous>, transform_indices = @transform_4, window_bounds = array<i64: 32, 32>}, {pipeline_mode = #tpu.pipeline_mode<synchronous>, transform_indices = @transform_5, window_bounds = array<i64: 32, 32>}, {pipeline_mode = #tpu.pipeline_mode<synchronous>, transform_indices = @transform_6, window_bounds = array<i64: 32, 32>}, {pipeline_mode = #tpu.pipeline_mode<synchronous>, transform_indices = @transform_7, window_bounds = array<i64: 32, 32>}, {pipeline_mode = #tpu.pipeline_mode<synchronous>, transform_indices = @transform_8, window_bounds = array<i64: 32, 32>}, {pipeline_mode = #tpu.pipeline_mode<synchronous>, transform_indices = @transform_9, window_bounds = array<i64: 4, 32, 32>}, {pipeline_mode = #tpu.pipeline_mode<synchronous>, transform_indices = @transform_10, window_bounds = array<i64: 4, 1, 32>}, {pipeline_mode = #tpu.pipeline_mode<synchronous>, transform_indices = @transform_11, window_bounds = array<i64: 4, 32, 32>}, {pipeline_mode = #tpu.pipeline_mode<synchronous>, transform_indices = @transform_12, window_bounds = array<i64: 4, 1, 32>}, {pipeline_mode = #tpu.pipeline_mode<synchronous>, transform_indices = @transform_13, window_bounds = array<i64: 4, 32, 8>}, {pipeline_mode = #tpu.pipeline_mode<synchronous>, transform_indices = @transform_14, window_bounds = array<i64: 4, 1, 8>}, {pipeline_mode = #tpu.pipeline_mode<synchronous>, transform_indices = @transform_15, window_bounds = array<i64: 32, 32>}, {pipeline_mode = #tpu.pipeline_mode<synchronous>, transform_indices = @transform_16, window_bounds = array<i64: 1, 32>}, {pipeline_mode = #tpu.pipeline_mode<synchronous>, transform_indices = @transform_17, window_bounds = array<i64: 32, 32>}, {pipeline_mode = #tpu.pipeline_mode<synchronous>, transform_indices = @transform_18, window_bounds = array<i64: 1, 32>}, {pipeline_mode = #tpu.pipeline_mode<synchronous>, transform_indices = @transform_19, window_bounds = array<i64: 32, 32>}, {pipeline_mode = #tpu.pipeline_mode<synchronous>, transform_indices = @transform_20, window_bounds = array<i64: 1, 32>}, {pipeline_mode = #tpu.pipeline_mode<synchronous>, transform_indices = @transform_21, window_bounds = array<i64: 32, 4>}, {pipeline_mode = #tpu.pipeline_mode<synchronous>, transform_indices = @transform_22, window_bounds = array<i64: 1, 4>}, {transform_indices = @transform_23, window_bounds = array<i64: 1, 1, 64, 32>}, {transform_indices = @transform_24, window_bounds = array<i64: 1, 1, 4, 8>}, {transform_indices = @transform_25, window_bounds = array<i64: 1, 1, 1, 4>}]} {
    %c0_i32 = arith.constant 0 : i32
    %0 = arith.cmpi eq, %arg1, %c0_i32 : i32
    %1 = arith.extui %0 : i1 to i32
    %c0_i32_0 = arith.constant 0 : i32
    %2 = arith.cmpi ne, %1, %c0_i32_0 : i32
    scf.if %2 {
      %c0_187 = arith.constant 0 : index
      %c0_188 = arith.constant 0 : index
      %c0_189 = arith.constant 0 : index
      %326 = vector.load %arg2[%c0_187, %c0_188, %c0_189] : memref<1x64x32xf32, #tpu.memory_space<vmem>>, vector<1x64x32xf32>
      %327 = vector.shape_cast %326 : vector<1x64x32xf32> to vector<64x32xf32>
      %c0_190 = arith.constant 0 : index
      %c0_191 = arith.constant 0 : index
      %c0_192 = arith.constant 0 : index
      %328 = vector.load %arg3[%c0_190, %c0_191, %c0_192] : memref<1x64x32xf32, #tpu.memory_space<vmem>>, vector<1x64x32xf32>
      %329 = vector.shape_cast %328 : vector<1x64x32xf32> to vector<64x32xf32>
      %330 = arith.addf %327, %329 : vector<64x32xf32>
      %c0_193 = arith.constant 0 : index
      %c0_194 = arith.constant 0 : index
      %331 = vector.load %arg28[%c0_193, %c0_194] : memref<64x32xf32, #tpu.memory_space<vmem>>, vector<64x32xf32>
      tpu.vector_store %arg28[%c0_193, %c0_194], %330 {strides = array<i32>} : memref<64x32xf32, #tpu.memory_space<vmem>>, vector<64x32xf32>,
      %332 = arith.truncf %330 : vector<64x32xf32> to vector<64x32xbf16>
      %c0_195 = arith.constant 0 : index
      %c0_196 = arith.constant 0 : index
      %333 = vector.load %arg6[%c0_195, %c0_196] : memref<32x32xbf16, #tpu.memory_space<vmem>>, vector<32x32xbf16>
      %cst_197 = arith.constant dense<0.000000e+00> : vector<64x32xf32>
      %334 = tpu.matmul %332, %333, %cst_197 {dimension_numbers = #tpu.dot_dimension_numbers<[1], [0], [0], [1], [0, 0, 1, 1], [], []>} : vector<64x32xbf16>, vector<32x32xbf16>, vector<64x32xf32> -> vector<64x32xf32>
      %335 = arith.truncf %334 : vector<64x32xf32> to vector<64x32xbf16>
      %c0_198 = arith.constant 0 : index
      %c0_199 = arith.constant 0 : index
      %336 = vector.load %arg29[%c0_198, %c0_199] : memref<64x32xbf16, #tpu.memory_space<vmem>>, vector<64x32xbf16>
      tpu.vector_store %arg29[%c0_198, %c0_199], %335 {strides = array<i32>} : memref<64x32xbf16, #tpu.memory_space<vmem>>, vector<64x32xbf16>,
      %c0_200 = arith.constant 0 : index
      %c0_201 = arith.constant 0 : index
      %337 = vector.load %arg7[%c0_200, %c0_201] : memref<32x32xbf16, #tpu.memory_space<vmem>>, vector<32x32xbf16>
      %cst_202 = arith.constant dense<0.000000e+00> : vector<64x32xf32>
      %338 = tpu.matmul %332, %337, %cst_202 {dimension_numbers = #tpu.dot_dimension_numbers<[1], [0], [0], [1], [0, 0, 1, 1], [], []>} : vector<64x32xbf16>, vector<32x32xbf16>, vector<64x32xf32> -> vector<64x32xf32>
      %339 = arith.truncf %338 : vector<64x32xf32> to vector<64x32xbf16>
      %c0_203 = arith.constant 0 : index
      %c0_204 = arith.constant 0 : index
      %340 = vector.load %arg30[%c0_203, %c0_204] : memref<64x32xbf16, #tpu.memory_space<vmem>>, vector<64x32xbf16>
      tpu.vector_store %arg30[%c0_203, %c0_204], %339 {strides = array<i32>} : memref<64x32xbf16, #tpu.memory_space<vmem>>, vector<64x32xbf16>,
      %c0_205 = arith.constant 0 : index
      %c0_206 = arith.constant 0 : index
      %341 = vector.load %arg8[%c0_205, %c0_206] : memref<32x32xbf16, #tpu.memory_space<vmem>>, vector<32x32xbf16>
      %cst_207 = arith.constant dense<0.000000e+00> : vector<64x32xf32>
      %342 = tpu.matmul %332, %341, %cst_207 {dimension_numbers = #tpu.dot_dimension_numbers<[1], [0], [0], [1], [0, 0, 1, 1], [], []>} : vector<64x32xbf16>, vector<32x32xbf16>, vector<64x32xf32> -> vector<64x32xf32>
      %343 = arith.truncf %342 : vector<64x32xf32> to vector<64x32xbf16>
      %c0_208 = arith.constant 0 : index
      %c0_209 = arith.constant 0 : index
      %344 = vector.load %arg31[%c0_208, %c0_209] : memref<64x32xbf16, #tpu.memory_space<vmem>>, vector<64x32xbf16>
      tpu.vector_store %arg31[%c0_208, %c0_209], %343 {strides = array<i32>} : memref<64x32xbf16, #tpu.memory_space<vmem>>, vector<64x32xbf16>,
    } else {
    }
    %c0 = arith.constant 0 : index
    %c0_1 = arith.constant 0 : index
    %c0_2 = arith.constant 0 : index
    %c0_3 = arith.constant 0 : index
    %3 = vector.load %arg4[%c0, %c0_1, %c0_2, %c0_3] : memref<1x1x8x32xf32, #tpu.memory_space<vmem>>, vector<1x1x8x32xf32>
    %4 = vector.shape_cast %3 : vector<1x1x8x32xf32> to vector<8x32xf32>
    %5 = arith.truncf %4 : vector<8x32xf32> to vector<8x32xbf16>
    %c0_4 = arith.constant 0 : index
    %c0_5 = arith.constant 0 : index
    %6 = vector.load %arg5[%c0_4, %c0_5] : memref<32x32xbf16, #tpu.memory_space<vmem>>, vector<32x32xbf16>
    %cst = arith.constant dense<0.000000e+00> : vector<8x32xf32>
    %7 = tpu.matmul %5, %6, %cst {dimension_numbers = #tpu.dot_dimension_numbers<[1], [0], [0], [1], [0, 0, 1, 1], [], []>} : vector<8x32xbf16>, vector<32x32xbf16>, vector<8x32xf32> -> vector<8x32xf32>
    %8 = arith.truncf %7 : vector<8x32xf32> to vector<8x32xbf16>
    %c0_6 = arith.constant 0 : index
    %c0_7 = arith.constant 0 : index
    %9 = vector.load %arg29[%c0_6, %c0_7] : memref<64x32xbf16, #tpu.memory_space<vmem>>, vector<64x32xbf16>
    %cst_8 = arith.constant dense<0.000000e+00> : vector<8x64xf32>
    %10 = tpu.matmul %8, %9, %cst_8 {dimension_numbers = #tpu.dot_dimension_numbers<[1], [1], [0], [0], [0, 0, 1, 0], [], []>} : vector<8x32xbf16>, vector<64x32xbf16>, vector<8x64xf32> -> vector<8x64xf32>
    %cst_9 = arith.constant 0.176776692 : f32
    %11 = vector.broadcast %cst_9 : f32 to vector<8x64xf32>
    %12 = arith.mulf %10, %11 : vector<8x64xf32>
    %cst_10 = arith.constant dense<0xFF800000> : vector<8xf32>
    %13 = vector.multi_reduction <maximumf>, %12, %cst_10 [1] : vector<8x64xf32> to vector<8xf32>
    %14 = vector.shape_cast %13 : vector<8xf32> to vector<8x1xf32>
    %15 = vector.broadcast %14 : vector<8x1xf32> to vector<8x64xf32>
    %16 = arith.subf %12, %15 : vector<8x64xf32>
    %17 = math.exp %16 : vector<8x64xf32>
    %cst_11 = arith.constant dense<0.000000e+00> : vector<8xf32>
    %18 = vector.multi_reduction <add>, %17, %cst_11 [1] : vector<8x64xf32> to vector<8xf32>
    %19 = vector.shape_cast %18 : vector<8xf32> to vector<8x1xf32>
    %20 = tpu.reciprocal %19 {approx = true} : vector<8x1xf32> -> vector<8x1xf32>
    %21 = vector.broadcast %20 : vector<8x1xf32> to vector<8x64xf32>
    %22 = arith.mulf %17, %21 : vector<8x64xf32>
    %23 = arith.truncf %22 : vector<8x64xf32> to vector<8x64xbf16>
    %c0_12 = arith.constant 0 : index
    %c0_13 = arith.constant 0 : index
    %24 = vector.load %arg30[%c0_12, %c0_13] : memref<64x32xbf16, #tpu.memory_space<vmem>>, vector<64x32xbf16>
    %cst_14 = arith.constant dense<0.000000e+00> : vector<8x32xf32>
    %25 = tpu.matmul %23, %24, %cst_14 {dimension_numbers = #tpu.dot_dimension_numbers<[1], [0], [0], [1], [0, 0, 1, 1], [], []>} : vector<8x64xbf16>, vector<64x32xbf16>, vector<8x32xf32> -> vector<8x32xf32>
    %26 = arith.addf %4, %25 : vector<8x32xf32>
    %27 = arith.truncf %26 : vector<8x32xf32> to vector<8x32xbf16>
    %c0_15 = arith.constant 0 : index
    %c0_16 = arith.constant 0 : index
    %28 = vector.load %arg9[%c0_15, %c0_16] : memref<32x32xbf16, #tpu.memory_space<vmem>>, vector<32x32xbf16>
    %cst_17 = arith.constant dense<0.000000e+00> : vector<8x32xf32>
    %29 = tpu.matmul %27, %28, %cst_17 {dimension_numbers = #tpu.dot_dimension_numbers<[1], [0], [0], [1], [0, 0, 1, 1], [], []>} : vector<8x32xbf16>, vector<32x32xbf16>, vector<8x32xf32> -> vector<8x32xf32>
    %30 = arith.truncf %29 : vector<8x32xf32> to vector<8x32xbf16>
    %c0_18 = arith.constant 0 : index
    %c0_19 = arith.constant 0 : index
    %31 = vector.load %arg10[%c0_18, %c0_19] : memref<32x32xbf16, #tpu.memory_space<vmem>>, vector<32x32xbf16>
    %cst_20 = arith.constant dense<0.000000e+00> : vector<8x32xf32>
    %32 = tpu.matmul %27, %31, %cst_20 {dimension_numbers = #tpu.dot_dimension_numbers<[1], [0], [0], [1], [0, 0, 1, 1], [], []>} : vector<8x32xbf16>, vector<32x32xbf16>, vector<8x32xf32> -> vector<8x32xf32>
    %33 = arith.truncf %32 : vector<8x32xf32> to vector<8x32xbf16>
    %c0_21 = arith.constant 0 : index
    %c0_22 = arith.constant 0 : index
    %34 = vector.load %arg31[%c0_21, %c0_22] : memref<64x32xbf16, #tpu.memory_space<vmem>>, vector<64x32xbf16>
    %cst_23 = arith.constant dense<0.000000e+00> : vector<64x8xf32>
    %35 = tpu.matmul %34, %30, %cst_23 {dimension_numbers = #tpu.dot_dimension_numbers<[1], [1], [0], [0], [0, 0, 1, 0], [], []>} : vector<64x32xbf16>, vector<8x32xbf16>, vector<64x8xf32> -> vector<64x8xf32>
    %cst_24 = arith.constant 0.176776692 : f32
    %36 = vector.broadcast %cst_24 : f32 to vector<64x8xf32>
    %37 = arith.mulf %35, %36 : vector<64x8xf32>
    %cst_25 = arith.constant dense<0xFF800000> : vector<64xf32>
    %38 = vector.multi_reduction <maximumf>, %37, %cst_25 [1] : vector<64x8xf32> to vector<64xf32>
    %39 = vector.shape_cast %38 : vector<64xf32> to vector<64x1xf32>
    %40 = vector.broadcast %39 : vector<64x1xf32> to vector<64x8xf32>
    %41 = arith.subf %37, %40 : vector<64x8xf32>
    %42 = math.exp %41 : vector<64x8xf32>
    %cst_26 = arith.constant dense<0.000000e+00> : vector<64xf32>
    %43 = vector.multi_reduction <add>, %42, %cst_26 [1] : vector<64x8xf32> to vector<64xf32>
    %44 = vector.shape_cast %43 : vector<64xf32> to vector<64x1xf32>
    %45 = tpu.reciprocal %44 {approx = true} : vector<64x1xf32> -> vector<64x1xf32>
    %46 = vector.broadcast %45 : vector<64x1xf32> to vector<64x8xf32>
    %47 = arith.mulf %42, %46 : vector<64x8xf32>
    %48 = arith.truncf %47 : vector<64x8xf32> to vector<64x8xbf16>
    %c0_27 = arith.constant 0 : index
    %c0_28 = arith.constant 0 : index
    %49 = vector.load %arg28[%c0_27, %c0_28] : memref<64x32xf32, #tpu.memory_space<vmem>>, vector<64x32xf32>
    %cst_29 = arith.constant dense<0.000000e+00> : vector<64x32xf32>
    %50 = tpu.matmul %48, %33, %cst_29 {dimension_numbers = #tpu.dot_dimension_numbers<[1], [0], [0], [1], [0, 0, 1, 1], [], []>} : vector<64x8xbf16>, vector<8x32xbf16>, vector<64x32xf32> -> vector<64x32xf32>
    %51 = arith.addf %49, %50 : vector<64x32xf32>
    %52 = arith.truncf %51 : vector<64x32xf32> to vector<64x32xbf16>
    %c0_30 = arith.constant 0 : index
    %c0_31 = arith.constant 0 : index
    %c0_32 = arith.constant 0 : index
    %c0_33 = arith.constant 0 : index
    %53 = vector.load %arg25[%c0_30, %c0_31, %c0_32, %c0_33] : memref<1x1x64x32xbf16, #tpu.memory_space<vmem>>, vector<1x1x64x32xbf16>
    %54 = vector.shape_cast %53 : vector<1x1x64x32xbf16> to vector<64x32xbf16>
    %55 = vector.shape_cast %52 : vector<64x32xbf16> to vector<1x1x64x32xbf16>
    tpu.vector_store %arg25[%c0_30, %c0_31, %c0_32, %c0_33], %55 {strides = array<i32>} : memref<1x1x64x32xbf16, #tpu.memory_space<vmem>>, vector<1x1x64x32xbf16>,
    %c0_34 = arith.constant 0 : index
    %c0_35 = arith.constant 0 : index
    %c0_36 = arith.constant 0 : index
    %56 = vector.load %arg11[%c0_34, %c0_35, %c0_36] : memref<4x32x32xbf16, #tpu.memory_space<vmem>>, vector<1x32x32xbf16>
    %57 = vector.shape_cast %56 : vector<1x32x32xbf16> to vector<32x32xbf16>
    %cst_37 = arith.constant dense<0.000000e+00> : vector<8x32xf32>
    %58 = tpu.matmul %27, %57, %cst_37 {dimension_numbers = #tpu.dot_dimension_numbers<[1], [0], [0], [1], [0, 0, 1, 1], [], []>} : vector<8x32xbf16>, vector<32x32xbf16>, vector<8x32xf32> -> vector<8x32xf32>
    %c0_38 = arith.constant 0 : index
    %c0_39 = arith.constant 0 : index
    %c0_40 = arith.constant 0 : index
    %59 = vector.load %arg12[%c0_38, %c0_39, %c0_40] : memref<4x1x32xf32, #tpu.memory_space<vmem>>, vector<1x1x32xf32>
    %60 = vector.shape_cast %59 : vector<1x1x32xf32> to vector<1x32xf32>
    %61 = vector.broadcast %60 : vector<1x32xf32> to vector<8x32xf32>
    %62 = arith.addf %58, %61 : vector<8x32xf32>
    %63 = arith.mulf %62, %62 : vector<8x32xf32>
    %64 = arith.mulf %62, %63 : vector<8x32xf32>
    %cst_41 = arith.constant 4.471500e-02 : f32
    %65 = vector.broadcast %cst_41 : f32 to vector<8x32xf32>
    %66 = arith.mulf %65, %64 : vector<8x32xf32>
    %67 = arith.addf %62, %66 : vector<8x32xf32>
    %cst_42 = arith.constant 0.797884583 : f32
    %68 = vector.broadcast %cst_42 : f32 to vector<8x32xf32>
    %69 = arith.mulf %68, %67 : vector<8x32xf32>
    %70 = math.tanh %69 : vector<8x32xf32>
    %cst_43 = arith.constant 1.000000e+00 : f32
    %71 = vector.broadcast %cst_43 : f32 to vector<8x32xf32>
    %72 = arith.addf %71, %70 : vector<8x32xf32>
    %cst_44 = arith.constant 5.000000e-01 : f32
    %73 = vector.broadcast %cst_44 : f32 to vector<8x32xf32>
    %74 = arith.mulf %73, %72 : vector<8x32xf32>
    %75 = arith.mulf %62, %74 : vector<8x32xf32>
    %76 = arith.truncf %75 : vector<8x32xf32> to vector<8x32xbf16>
    %c0_45 = arith.constant 0 : index
    %c0_46 = arith.constant 0 : index
    %c0_47 = arith.constant 0 : index
    %77 = vector.load %arg13[%c0_45, %c0_46, %c0_47] : memref<4x32x32xbf16, #tpu.memory_space<vmem>>, vector<1x32x32xbf16>
    %78 = vector.shape_cast %77 : vector<1x32x32xbf16> to vector<32x32xbf16>
    %cst_48 = arith.constant dense<0.000000e+00> : vector<8x32xf32>
    %79 = tpu.matmul %76, %78, %cst_48 {dimension_numbers = #tpu.dot_dimension_numbers<[1], [0], [0], [1], [0, 0, 1, 1], [], []>} : vector<8x32xbf16>, vector<32x32xbf16>, vector<8x32xf32> -> vector<8x32xf32>
    %c0_49 = arith.constant 0 : index
    %c0_50 = arith.constant 0 : index
    %c0_51 = arith.constant 0 : index
    %80 = vector.load %arg14[%c0_49, %c0_50, %c0_51] : memref<4x1x32xf32, #tpu.memory_space<vmem>>, vector<1x1x32xf32>
    %81 = vector.shape_cast %80 : vector<1x1x32xf32> to vector<1x32xf32>
    %82 = vector.broadcast %81 : vector<1x32xf32> to vector<8x32xf32>
    %83 = arith.addf %79, %82 : vector<8x32xf32>
    %84 = arith.mulf %83, %83 : vector<8x32xf32>
    %85 = arith.mulf %83, %84 : vector<8x32xf32>
    %cst_52 = arith.constant 4.471500e-02 : f32
    %86 = vector.broadcast %cst_52 : f32 to vector<8x32xf32>
    %87 = arith.mulf %86, %85 : vector<8x32xf32>
    %88 = arith.addf %83, %87 : vector<8x32xf32>
    %cst_53 = arith.constant 0.797884583 : f32
    %89 = vector.broadcast %cst_53 : f32 to vector<8x32xf32>
    %90 = arith.mulf %89, %88 : vector<8x32xf32>
    %91 = math.tanh %90 : vector<8x32xf32>
    %cst_54 = arith.constant 1.000000e+00 : f32
    %92 = vector.broadcast %cst_54 : f32 to vector<8x32xf32>
    %93 = arith.addf %92, %91 : vector<8x32xf32>
    %cst_55 = arith.constant 5.000000e-01 : f32
    %94 = vector.broadcast %cst_55 : f32 to vector<8x32xf32>
    %95 = arith.mulf %94, %93 : vector<8x32xf32>
    %96 = arith.mulf %83, %95 : vector<8x32xf32>
    %97 = arith.truncf %96 : vector<8x32xf32> to vector<8x32xbf16>
    %c0_56 = arith.constant 0 : index
    %c0_57 = arith.constant 0 : index
    %c0_58 = arith.constant 0 : index
    %98 = vector.load %arg15[%c0_56, %c0_57, %c0_58] : memref<4x32x8xbf16, #tpu.memory_space<vmem>>, vector<1x32x8xbf16>
    %99 = vector.shape_cast %98 : vector<1x32x8xbf16> to vector<32x8xbf16>
    %cst_59 = arith.constant dense<0.000000e+00> : vector<8x8xf32>
    %100 = tpu.matmul %97, %99, %cst_59 {dimension_numbers = #tpu.dot_dimension_numbers<[1], [0], [0], [1], [0, 0, 1, 1], [], []>} : vector<8x32xbf16>, vector<32x8xbf16>, vector<8x8xf32> -> vector<8x8xf32>
    %c0_60 = arith.constant 0 : index
    %c0_61 = arith.constant 0 : index
    %c0_62 = arith.constant 0 : index
    %101 = vector.load %arg16[%c0_60, %c0_61, %c0_62] : memref<4x1x8xf32, #tpu.memory_space<vmem>>, vector<1x1x8xf32>
    %102 = vector.shape_cast %101 : vector<1x1x8xf32> to vector<1x8xf32>
    %103 = vector.broadcast %102 : vector<1x8xf32> to vector<8x8xf32>
    %104 = arith.addf %100, %103 : vector<8x8xf32>
    %105 = vector.extract_strided_slice %104 {offsets = [1, 0], sizes = [1, 8], strides = [1, 1]} : vector<8x8xf32> to vector<1x8xf32>
    %c1 = arith.constant 1 : index
    %c0_63 = arith.constant 0 : index
    %c0_64 = arith.constant 0 : index
    %106 = vector.load %arg11[%c1, %c0_63, %c0_64] : memref<4x32x32xbf16, #tpu.memory_space<vmem>>, vector<1x32x32xbf16>
    %107 = vector.shape_cast %106 : vector<1x32x32xbf16> to vector<32x32xbf16>
    %cst_65 = arith.constant dense<0.000000e+00> : vector<8x32xf32>
    %108 = tpu.matmul %27, %107, %cst_65 {dimension_numbers = #tpu.dot_dimension_numbers<[1], [0], [0], [1], [0, 0, 1, 1], [], []>} : vector<8x32xbf16>, vector<32x32xbf16>, vector<8x32xf32> -> vector<8x32xf32>
    %c1_66 = arith.constant 1 : index
    %c0_67 = arith.constant 0 : index
    %c0_68 = arith.constant 0 : index
    %109 = vector.load %arg12[%c1_66, %c0_67, %c0_68] : memref<4x1x32xf32, #tpu.memory_space<vmem>>, vector<1x1x32xf32>
    %110 = vector.shape_cast %109 : vector<1x1x32xf32> to vector<1x32xf32>
    %111 = vector.broadcast %110 : vector<1x32xf32> to vector<8x32xf32>
    %112 = arith.addf %108, %111 : vector<8x32xf32>
    %113 = arith.mulf %112, %112 : vector<8x32xf32>
    %114 = arith.mulf %112, %113 : vector<8x32xf32>
    %cst_69 = arith.constant 4.471500e-02 : f32
    %115 = vector.broadcast %cst_69 : f32 to vector<8x32xf32>
    %116 = arith.mulf %115, %114 : vector<8x32xf32>
    %117 = arith.addf %112, %116 : vector<8x32xf32>
    %cst_70 = arith.constant 0.797884583 : f32
    %118 = vector.broadcast %cst_70 : f32 to vector<8x32xf32>
    %119 = arith.mulf %118, %117 : vector<8x32xf32>
    %120 = math.tanh %119 : vector<8x32xf32>
    %cst_71 = arith.constant 1.000000e+00 : f32
    %121 = vector.broadcast %cst_71 : f32 to vector<8x32xf32>
    %122 = arith.addf %121, %120 : vector<8x32xf32>
    %cst_72 = arith.constant 5.000000e-01 : f32
    %123 = vector.broadcast %cst_72 : f32 to vector<8x32xf32>
    %124 = arith.mulf %123, %122 : vector<8x32xf32>
    %125 = arith.mulf %112, %124 : vector<8x32xf32>
    %126 = arith.truncf %125 : vector<8x32xf32> to vector<8x32xbf16>
    %c1_73 = arith.constant 1 : index
    %c0_74 = arith.constant 0 : index
    %c0_75 = arith.constant 0 : index
    %127 = vector.load %arg13[%c1_73, %c0_74, %c0_75] : memref<4x32x32xbf16, #tpu.memory_space<vmem>>, vector<1x32x32xbf16>
    %128 = vector.shape_cast %127 : vector<1x32x32xbf16> to vector<32x32xbf16>
    %cst_76 = arith.constant dense<0.000000e+00> : vector<8x32xf32>
    %129 = tpu.matmul %126, %128, %cst_76 {dimension_numbers = #tpu.dot_dimension_numbers<[1], [0], [0], [1], [0, 0, 1, 1], [], []>} : vector<8x32xbf16>, vector<32x32xbf16>, vector<8x32xf32> -> vector<8x32xf32>
    %c1_77 = arith.constant 1 : index
    %c0_78 = arith.constant 0 : index
    %c0_79 = arith.constant 0 : index
    %130 = vector.load %arg14[%c1_77, %c0_78, %c0_79] : memref<4x1x32xf32, #tpu.memory_space<vmem>>, vector<1x1x32xf32>
    %131 = vector.shape_cast %130 : vector<1x1x32xf32> to vector<1x32xf32>
    %132 = vector.broadcast %131 : vector<1x32xf32> to vector<8x32xf32>
    %133 = arith.addf %129, %132 : vector<8x32xf32>
    %134 = arith.mulf %133, %133 : vector<8x32xf32>
    %135 = arith.mulf %133, %134 : vector<8x32xf32>
    %cst_80 = arith.constant 4.471500e-02 : f32
    %136 = vector.broadcast %cst_80 : f32 to vector<8x32xf32>
    %137 = arith.mulf %136, %135 : vector<8x32xf32>
    %138 = arith.addf %133, %137 : vector<8x32xf32>
    %cst_81 = arith.constant 0.797884583 : f32
    %139 = vector.broadcast %cst_81 : f32 to vector<8x32xf32>
    %140 = arith.mulf %139, %138 : vector<8x32xf32>
    %141 = math.tanh %140 : vector<8x32xf32>
    %cst_82 = arith.constant 1.000000e+00 : f32
    %142 = vector.broadcast %cst_82 : f32 to vector<8x32xf32>
    %143 = arith.addf %142, %141 : vector<8x32xf32>
    %cst_83 = arith.constant 5.000000e-01 : f32
    %144 = vector.broadcast %cst_83 : f32 to vector<8x32xf32>
    %145 = arith.mulf %144, %143 : vector<8x32xf32>
    %146 = arith.mulf %133, %145 : vector<8x32xf32>
    %147 = arith.truncf %146 : vector<8x32xf32> to vector<8x32xbf16>
    %c1_84 = arith.constant 1 : index
    %c0_85 = arith.constant 0 : index
    %c0_86 = arith.constant 0 : index
    %148 = vector.load %arg15[%c1_84, %c0_85, %c0_86] : memref<4x32x8xbf16, #tpu.memory_space<vmem>>, vector<1x32x8xbf16>
    %149 = vector.shape_cast %148 : vector<1x32x8xbf16> to vector<32x8xbf16>
    %cst_87 = arith.constant dense<0.000000e+00> : vector<8x8xf32>
    %150 = tpu.matmul %147, %149, %cst_87 {dimension_numbers = #tpu.dot_dimension_numbers<[1], [0], [0], [1], [0, 0, 1, 1], [], []>} : vector<8x32xbf16>, vector<32x8xbf16>, vector<8x8xf32> -> vector<8x8xf32>
    %c1_88 = arith.constant 1 : index
    %c0_89 = arith.constant 0 : index
    %c0_90 = arith.constant 0 : index
    %151 = vector.load %arg16[%c1_88, %c0_89, %c0_90] : memref<4x1x8xf32, #tpu.memory_space<vmem>>, vector<1x1x8xf32>
    %152 = vector.shape_cast %151 : vector<1x1x8xf32> to vector<1x8xf32>
    %153 = vector.broadcast %152 : vector<1x8xf32> to vector<8x8xf32>
    %154 = arith.addf %150, %153 : vector<8x8xf32>
    %155 = vector.extract_strided_slice %154 {offsets = [2, 0], sizes = [1, 8], strides = [1, 1]} : vector<8x8xf32> to vector<1x8xf32>
    %c2 = arith.constant 2 : index
    %c0_91 = arith.constant 0 : index
    %c0_92 = arith.constant 0 : index
    %156 = vector.load %arg11[%c2, %c0_91, %c0_92] : memref<4x32x32xbf16, #tpu.memory_space<vmem>>, vector<1x32x32xbf16>
    %157 = vector.shape_cast %156 : vector<1x32x32xbf16> to vector<32x32xbf16>
    %cst_93 = arith.constant dense<0.000000e+00> : vector<8x32xf32>
    %158 = tpu.matmul %27, %157, %cst_93 {dimension_numbers = #tpu.dot_dimension_numbers<[1], [0], [0], [1], [0, 0, 1, 1], [], []>} : vector<8x32xbf16>, vector<32x32xbf16>, vector<8x32xf32> -> vector<8x32xf32>
    %c2_94 = arith.constant 2 : index
    %c0_95 = arith.constant 0 : index
    %c0_96 = arith.constant 0 : index
    %159 = vector.load %arg12[%c2_94, %c0_95, %c0_96] : memref<4x1x32xf32, #tpu.memory_space<vmem>>, vector<1x1x32xf32>
    %160 = vector.shape_cast %159 : vector<1x1x32xf32> to vector<1x32xf32>
    %161 = vector.broadcast %160 : vector<1x32xf32> to vector<8x32xf32>
    %162 = arith.addf %158, %161 : vector<8x32xf32>
    %163 = arith.mulf %162, %162 : vector<8x32xf32>
    %164 = arith.mulf %162, %163 : vector<8x32xf32>
    %cst_97 = arith.constant 4.471500e-02 : f32
    %165 = vector.broadcast %cst_97 : f32 to vector<8x32xf32>
    %166 = arith.mulf %165, %164 : vector<8x32xf32>
    %167 = arith.addf %162, %166 : vector<8x32xf32>
    %cst_98 = arith.constant 0.797884583 : f32
    %168 = vector.broadcast %cst_98 : f32 to vector<8x32xf32>
    %169 = arith.mulf %168, %167 : vector<8x32xf32>
    %170 = math.tanh %169 : vector<8x32xf32>
    %cst_99 = arith.constant 1.000000e+00 : f32
    %171 = vector.broadcast %cst_99 : f32 to vector<8x32xf32>
    %172 = arith.addf %171, %170 : vector<8x32xf32>
    %cst_100 = arith.constant 5.000000e-01 : f32
    %173 = vector.broadcast %cst_100 : f32 to vector<8x32xf32>
    %174 = arith.mulf %173, %172 : vector<8x32xf32>
    %175 = arith.mulf %162, %174 : vector<8x32xf32>
    %176 = arith.truncf %175 : vector<8x32xf32> to vector<8x32xbf16>
    %c2_101 = arith.constant 2 : index
    %c0_102 = arith.constant 0 : index
    %c0_103 = arith.constant 0 : index
    %177 = vector.load %arg13[%c2_101, %c0_102, %c0_103] : memref<4x32x32xbf16, #tpu.memory_space<vmem>>, vector<1x32x32xbf16>
    %178 = vector.shape_cast %177 : vector<1x32x32xbf16> to vector<32x32xbf16>
    %cst_104 = arith.constant dense<0.000000e+00> : vector<8x32xf32>
    %179 = tpu.matmul %176, %178, %cst_104 {dimension_numbers = #tpu.dot_dimension_numbers<[1], [0], [0], [1], [0, 0, 1, 1], [], []>} : vector<8x32xbf16>, vector<32x32xbf16>, vector<8x32xf32> -> vector<8x32xf32>
    %c2_105 = arith.constant 2 : index
    %c0_106 = arith.constant 0 : index
    %c0_107 = arith.constant 0 : index
    %180 = vector.load %arg14[%c2_105, %c0_106, %c0_107] : memref<4x1x32xf32, #tpu.memory_space<vmem>>, vector<1x1x32xf32>
    %181 = vector.shape_cast %180 : vector<1x1x32xf32> to vector<1x32xf32>
    %182 = vector.broadcast %181 : vector<1x32xf32> to vector<8x32xf32>
    %183 = arith.addf %179, %182 : vector<8x32xf32>
    %184 = arith.mulf %183, %183 : vector<8x32xf32>
    %185 = arith.mulf %183, %184 : vector<8x32xf32>
    %cst_108 = arith.constant 4.471500e-02 : f32
    %186 = vector.broadcast %cst_108 : f32 to vector<8x32xf32>
    %187 = arith.mulf %186, %185 : vector<8x32xf32>
    %188 = arith.addf %183, %187 : vector<8x32xf32>
    %cst_109 = arith.constant 0.797884583 : f32
    %189 = vector.broadcast %cst_109 : f32 to vector<8x32xf32>
    %190 = arith.mulf %189, %188 : vector<8x32xf32>
    %191 = math.tanh %190 : vector<8x32xf32>
    %cst_110 = arith.constant 1.000000e+00 : f32
    %192 = vector.broadcast %cst_110 : f32 to vector<8x32xf32>
    %193 = arith.addf %192, %191 : vector<8x32xf32>
    %cst_111 = arith.constant 5.000000e-01 : f32
    %194 = vector.broadcast %cst_111 : f32 to vector<8x32xf32>
    %195 = arith.mulf %194, %193 : vector<8x32xf32>
    %196 = arith.mulf %183, %195 : vector<8x32xf32>
    %197 = arith.truncf %196 : vector<8x32xf32> to vector<8x32xbf16>
    %c2_112 = arith.constant 2 : index
    %c0_113 = arith.constant 0 : index
    %c0_114 = arith.constant 0 : index
    %198 = vector.load %arg15[%c2_112, %c0_113, %c0_114] : memref<4x32x8xbf16, #tpu.memory_space<vmem>>, vector<1x32x8xbf16>
    %199 = vector.shape_cast %198 : vector<1x32x8xbf16> to vector<32x8xbf16>
    %cst_115 = arith.constant dense<0.000000e+00> : vector<8x8xf32>
    %200 = tpu.matmul %197, %199, %cst_115 {dimension_numbers = #tpu.dot_dimension_numbers<[1], [0], [0], [1], [0, 0, 1, 1], [], []>} : vector<8x32xbf16>, vector<32x8xbf16>, vector<8x8xf32> -> vector<8x8xf32>
    %c2_116 = arith.constant 2 : index
    %c0_117 = arith.constant 0 : index
    %c0_118 = arith.constant 0 : index
    %201 = vector.load %arg16[%c2_116, %c0_117, %c0_118] : memref<4x1x8xf32, #tpu.memory_space<vmem>>, vector<1x1x8xf32>
    %202 = vector.shape_cast %201 : vector<1x1x8xf32> to vector<1x8xf32>
    %203 = vector.broadcast %202 : vector<1x8xf32> to vector<8x8xf32>
    %204 = arith.addf %200, %203 : vector<8x8xf32>
    %205 = vector.extract_strided_slice %204 {offsets = [3, 0], sizes = [1, 8], strides = [1, 1]} : vector<8x8xf32> to vector<1x8xf32>
    %c3 = arith.constant 3 : index
    %c0_119 = arith.constant 0 : index
    %c0_120 = arith.constant 0 : index
    %206 = vector.load %arg11[%c3, %c0_119, %c0_120] : memref<4x32x32xbf16, #tpu.memory_space<vmem>>, vector<1x32x32xbf16>
    %207 = vector.shape_cast %206 : vector<1x32x32xbf16> to vector<32x32xbf16>
    %cst_121 = arith.constant dense<0.000000e+00> : vector<8x32xf32>
    %208 = tpu.matmul %27, %207, %cst_121 {dimension_numbers = #tpu.dot_dimension_numbers<[1], [0], [0], [1], [0, 0, 1, 1], [], []>} : vector<8x32xbf16>, vector<32x32xbf16>, vector<8x32xf32> -> vector<8x32xf32>
    %c3_122 = arith.constant 3 : index
    %c0_123 = arith.constant 0 : index
    %c0_124 = arith.constant 0 : index
    %209 = vector.load %arg12[%c3_122, %c0_123, %c0_124] : memref<4x1x32xf32, #tpu.memory_space<vmem>>, vector<1x1x32xf32>
    %210 = vector.shape_cast %209 : vector<1x1x32xf32> to vector<1x32xf32>
    %211 = vector.broadcast %210 : vector<1x32xf32> to vector<8x32xf32>
    %212 = arith.addf %208, %211 : vector<8x32xf32>
    %213 = arith.mulf %212, %212 : vector<8x32xf32>
    %214 = arith.mulf %212, %213 : vector<8x32xf32>
    %cst_125 = arith.constant 4.471500e-02 : f32
    %215 = vector.broadcast %cst_125 : f32 to vector<8x32xf32>
    %216 = arith.mulf %215, %214 : vector<8x32xf32>
    %217 = arith.addf %212, %216 : vector<8x32xf32>
    %cst_126 = arith.constant 0.797884583 : f32
    %218 = vector.broadcast %cst_126 : f32 to vector<8x32xf32>
    %219 = arith.mulf %218, %217 : vector<8x32xf32>
    %220 = math.tanh %219 : vector<8x32xf32>
    %cst_127 = arith.constant 1.000000e+00 : f32
    %221 = vector.broadcast %cst_127 : f32 to vector<8x32xf32>
    %222 = arith.addf %221, %220 : vector<8x32xf32>
    %cst_128 = arith.constant 5.000000e-01 : f32
    %223 = vector.broadcast %cst_128 : f32 to vector<8x32xf32>
    %224 = arith.mulf %223, %222 : vector<8x32xf32>
    %225 = arith.mulf %212, %224 : vector<8x32xf32>
    %226 = arith.truncf %225 : vector<8x32xf32> to vector<8x32xbf16>
    %c3_129 = arith.constant 3 : index
    %c0_130 = arith.constant 0 : index
    %c0_131 = arith.constant 0 : index
    %227 = vector.load %arg13[%c3_129, %c0_130, %c0_131] : memref<4x32x32xbf16, #tpu.memory_space<vmem>>, vector<1x32x32xbf16>
    %228 = vector.shape_cast %227 : vector<1x32x32xbf16> to vector<32x32xbf16>
    %cst_132 = arith.constant dense<0.000000e+00> : vector<8x32xf32>
    %229 = tpu.matmul %226, %228, %cst_132 {dimension_numbers = #tpu.dot_dimension_numbers<[1], [0], [0], [1], [0, 0, 1, 1], [], []>} : vector<8x32xbf16>, vector<32x32xbf16>, vector<8x32xf32> -> vector<8x32xf32>
    %c3_133 = arith.constant 3 : index
    %c0_134 = arith.constant 0 : index
    %c0_135 = arith.constant 0 : index
    %230 = vector.load %arg14[%c3_133, %c0_134, %c0_135] : memref<4x1x32xf32, #tpu.memory_space<vmem>>, vector<1x1x32xf32>
    %231 = vector.shape_cast %230 : vector<1x1x32xf32> to vector<1x32xf32>
    %232 = vector.broadcast %231 : vector<1x32xf32> to vector<8x32xf32>
    %233 = arith.addf %229, %232 : vector<8x32xf32>
    %234 = arith.mulf %233, %233 : vector<8x32xf32>
    %235 = arith.mulf %233, %234 : vector<8x32xf32>
    %cst_136 = arith.constant 4.471500e-02 : f32
    %236 = vector.broadcast %cst_136 : f32 to vector<8x32xf32>
    %237 = arith.mulf %236, %235 : vector<8x32xf32>
    %238 = arith.addf %233, %237 : vector<8x32xf32>
    %cst_137 = arith.constant 0.797884583 : f32
    %239 = vector.broadcast %cst_137 : f32 to vector<8x32xf32>
    %240 = arith.mulf %239, %238 : vector<8x32xf32>
    %241 = math.tanh %240 : vector<8x32xf32>
    %cst_138 = arith.constant 1.000000e+00 : f32
    %242 = vector.broadcast %cst_138 : f32 to vector<8x32xf32>
    %243 = arith.addf %242, %241 : vector<8x32xf32>
    %cst_139 = arith.constant 5.000000e-01 : f32
    %244 = vector.broadcast %cst_139 : f32 to vector<8x32xf32>
    %245 = arith.mulf %244, %243 : vector<8x32xf32>
    %246 = arith.mulf %233, %245 : vector<8x32xf32>
    %247 = arith.truncf %246 : vector<8x32xf32> to vector<8x32xbf16>
    %c3_140 = arith.constant 3 : index
    %c0_141 = arith.constant 0 : index
    %c0_142 = arith.constant 0 : index
    %248 = vector.load %arg15[%c3_140, %c0_141, %c0_142] : memref<4x32x8xbf16, #tpu.memory_space<vmem>>, vector<1x32x8xbf16>
    %249 = vector.shape_cast %248 : vector<1x32x8xbf16> to vector<32x8xbf16>
    %cst_143 = arith.constant dense<0.000000e+00> : vector<8x8xf32>
    %250 = tpu.matmul %247, %249, %cst_143 {dimension_numbers = #tpu.dot_dimension_numbers<[1], [0], [0], [1], [0, 0, 1, 1], [], []>} : vector<8x32xbf16>, vector<32x8xbf16>, vector<8x8xf32> -> vector<8x8xf32>
    %c3_144 = arith.constant 3 : index
    %c0_145 = arith.constant 0 : index
    %c0_146 = arith.constant 0 : index
    %251 = vector.load %arg16[%c3_144, %c0_145, %c0_146] : memref<4x1x8xf32, #tpu.memory_space<vmem>>, vector<1x1x8xf32>
    %252 = vector.shape_cast %251 : vector<1x1x8xf32> to vector<1x8xf32>
    %253 = vector.broadcast %252 : vector<1x8xf32> to vector<8x8xf32>
    %254 = arith.addf %250, %253 : vector<8x8xf32>
    %255 = vector.extract_strided_slice %254 {offsets = [4, 0], sizes = [1, 8], strides = [1, 1]} : vector<8x8xf32> to vector<1x8xf32>
    %256 = tpu.concatenate %105, %155, %205, %255 in 0 : vector<1x8xf32>, vector<1x8xf32>, vector<1x8xf32>, vector<1x8xf32> -> vector<4x8xf32>
    %c0_147 = arith.constant 0 : index
    %c0_148 = arith.constant 0 : index
    %c0_149 = arith.constant 0 : index
    %c0_150 = arith.constant 0 : index
    %257 = vector.load %arg26[%c0_147, %c0_148, %c0_149, %c0_150] : memref<1x1x4x8xf32, #tpu.memory_space<vmem>>, vector<1x1x4x8xf32>
    %258 = vector.shape_cast %257 : vector<1x1x4x8xf32> to vector<4x8xf32>
    %259 = vector.shape_cast %256 : vector<4x8xf32> to vector<1x1x4x8xf32>
    tpu.vector_store %arg26[%c0_147, %c0_148, %c0_149, %c0_150], %259 {strides = array<i32>} : memref<1x1x4x8xf32, #tpu.memory_space<vmem>>, vector<1x1x4x8xf32>,
    %c0_151 = arith.constant 0 : index
    %c0_152 = arith.constant 0 : index
    %260 = vector.load %arg17[%c0_151, %c0_152] : memref<32x32xbf16, #tpu.memory_space<vmem>>, vector<32x32xbf16>
    %c0_153 = arith.constant 0 : index
    %c0_154 = arith.constant 0 : index
    %261 = vector.load %arg18[%c0_153, %c0_154] : memref<1x32xf32, #tpu.memory_space<vmem>>, vector<1x32xf32>
    %cst_155 = arith.constant dense<0.000000e+00> : vector<8x32xf32>
    %262 = tpu.matmul %27, %260, %cst_155 {dimension_numbers = #tpu.dot_dimension_numbers<[1], [0], [0], [1], [0, 0, 1, 1], [], []>} : vector<8x32xbf16>, vector<32x32xbf16>, vector<8x32xf32> -> vector<8x32xf32>
    %263 = vector.broadcast %261 : vector<1x32xf32> to vector<8x32xf32>
    %264 = arith.addf %262, %263 : vector<8x32xf32>
    %265 = arith.mulf %264, %264 : vector<8x32xf32>
    %266 = arith.mulf %264, %265 : vector<8x32xf32>
    %cst_156 = arith.constant 4.471500e-02 : f32
    %267 = vector.broadcast %cst_156 : f32 to vector<8x32xf32>
    %268 = arith.mulf %267, %266 : vector<8x32xf32>
    %269 = arith.addf %264, %268 : vector<8x32xf32>
    %cst_157 = arith.constant 0.797884583 : f32
    %270 = vector.broadcast %cst_157 : f32 to vector<8x32xf32>
    %271 = arith.mulf %270, %269 : vector<8x32xf32>
    %272 = math.tanh %271 : vector<8x32xf32>
    %cst_158 = arith.constant 1.000000e+00 : f32
    %273 = vector.broadcast %cst_158 : f32 to vector<8x32xf32>
    %274 = arith.addf %273, %272 : vector<8x32xf32>
    %cst_159 = arith.constant 5.000000e-01 : f32
    %275 = vector.broadcast %cst_159 : f32 to vector<8x32xf32>
    %276 = arith.mulf %275, %274 : vector<8x32xf32>
    %277 = arith.mulf %264, %276 : vector<8x32xf32>
    %278 = arith.truncf %277 : vector<8x32xf32> to vector<8x32xbf16>
    %c0_160 = arith.constant 0 : index
    %c0_161 = arith.constant 0 : index
    %279 = vector.load %arg19[%c0_160, %c0_161] : memref<32x32xbf16, #tpu.memory_space<vmem>>, vector<32x32xbf16>
    %c0_162 = arith.constant 0 : index
    %c0_163 = arith.constant 0 : index
    %280 = vector.load %arg20[%c0_162, %c0_163] : memref<1x32xf32, #tpu.memory_space<vmem>>, vector<1x32xf32>
    %cst_164 = arith.constant dense<0.000000e+00> : vector<8x32xf32>
    %281 = tpu.matmul %278, %279, %cst_164 {dimension_numbers = #tpu.dot_dimension_numbers<[1], [0], [0], [1], [0, 0, 1, 1], [], []>} : vector<8x32xbf16>, vector<32x32xbf16>, vector<8x32xf32> -> vector<8x32xf32>
    %282 = vector.broadcast %280 : vector<1x32xf32> to vector<8x32xf32>
    %283 = arith.addf %281, %282 : vector<8x32xf32>
    %284 = arith.mulf %283, %283 : vector<8x32xf32>
    %285 = arith.mulf %283, %284 : vector<8x32xf32>
    %cst_165 = arith.constant 4.471500e-02 : f32
    %286 = vector.broadcast %cst_165 : f32 to vector<8x32xf32>
    %287 = arith.mulf %286, %285 : vector<8x32xf32>
    %288 = arith.addf %283, %287 : vector<8x32xf32>
    %cst_166 = arith.constant 0.797884583 : f32
    %289 = vector.broadcast %cst_166 : f32 to vector<8x32xf32>
    %290 = arith.mulf %289, %288 : vector<8x32xf32>
    %291 = math.tanh %290 : vector<8x32xf32>
    %cst_167 = arith.constant 1.000000e+00 : f32
    %292 = vector.broadcast %cst_167 : f32 to vector<8x32xf32>
    %293 = arith.addf %292, %291 : vector<8x32xf32>
    %cst_168 = arith.constant 5.000000e-01 : f32
    %294 = vector.broadcast %cst_168 : f32 to vector<8x32xf32>
    %295 = arith.mulf %294, %293 : vector<8x32xf32>
    %296 = arith.mulf %283, %295 : vector<8x32xf32>
    %297 = arith.truncf %296 : vector<8x32xf32> to vector<8x32xbf16>
    %c0_169 = arith.constant 0 : index
    %c0_170 = arith.constant 0 : index
    %298 = vector.load %arg21[%c0_169, %c0_170] : memref<32x32xbf16, #tpu.memory_space<vmem>>, vector<32x32xbf16>
    %c0_171 = arith.constant 0 : index
    %c0_172 = arith.constant 0 : index
    %299 = vector.load %arg22[%c0_171, %c0_172] : memref<1x32xf32, #tpu.memory_space<vmem>>, vector<1x32xf32>
    %cst_173 = arith.constant dense<0.000000e+00> : vector<8x32xf32>
    %300 = tpu.matmul %297, %298, %cst_173 {dimension_numbers = #tpu.dot_dimension_numbers<[1], [0], [0], [1], [0, 0, 1, 1], [], []>} : vector<8x32xbf16>, vector<32x32xbf16>, vector<8x32xf32> -> vector<8x32xf32>
    %301 = vector.broadcast %299 : vector<1x32xf32> to vector<8x32xf32>
    %302 = arith.addf %300, %301 : vector<8x32xf32>
    %303 = arith.mulf %302, %302 : vector<8x32xf32>
    %304 = arith.mulf %302, %303 : vector<8x32xf32>
    %cst_174 = arith.constant 4.471500e-02 : f32
    %305 = vector.broadcast %cst_174 : f32 to vector<8x32xf32>
    %306 = arith.mulf %305, %304 : vector<8x32xf32>
    %307 = arith.addf %302, %306 : vector<8x32xf32>
    %cst_175 = arith.constant 0.797884583 : f32
    %308 = vector.broadcast %cst_175 : f32 to vector<8x32xf32>
    %309 = arith.mulf %308, %307 : vector<8x32xf32>
    %310 = math.tanh %309 : vector<8x32xf32>
    %cst_176 = arith.constant 1.000000e+00 : f32
    %311 = vector.broadcast %cst_176 : f32 to vector<8x32xf32>
    %312 = arith.addf %311, %310 : vector<8x32xf32>
    %cst_177 = arith.constant 5.000000e-01 : f32
    %313 = vector.broadcast %cst_177 : f32 to vector<8x32xf32>
    %314 = arith.mulf %313, %312 : vector<8x32xf32>
    %315 = arith.mulf %302, %314 : vector<8x32xf32>
    %316 = arith.truncf %315 : vector<8x32xf32> to vector<8x32xbf16>
    %c0_178 = arith.constant 0 : index
    %c0_179 = arith.constant 0 : index
    %317 = vector.load %arg23[%c0_178, %c0_179] : memref<32x4xbf16, #tpu.memory_space<vmem>>, vector<32x4xbf16>
    %c0_180 = arith.constant 0 : index
    %c0_181 = arith.constant 0 : index
    %318 = vector.load %arg24[%c0_180, %c0_181] : memref<1x4xf32, #tpu.memory_space<vmem>>, vector<1x4xf32>
    %cst_182 = arith.constant dense<0.000000e+00> : vector<8x4xf32>
    %319 = tpu.matmul %316, %317, %cst_182 {dimension_numbers = #tpu.dot_dimension_numbers<[1], [0], [0], [1], [0, 0, 1, 1], [], []>} : vector<8x32xbf16>, vector<32x4xbf16>, vector<8x4xf32> -> vector<8x4xf32>
    %320 = vector.broadcast %318 : vector<1x4xf32> to vector<8x4xf32>
    %321 = arith.addf %319, %320 : vector<8x4xf32>
    %322 = vector.extract_strided_slice %321 {offsets = [0, 0], sizes = [1, 4], strides = [1, 1]} : vector<8x4xf32> to vector<1x4xf32>
    %c0_183 = arith.constant 0 : index
    %c0_184 = arith.constant 0 : index
    %c0_185 = arith.constant 0 : index
    %c0_186 = arith.constant 0 : index
    %323 = vector.load %arg27[%c0_183, %c0_184, %c0_185, %c0_186] : memref<1x1x1x4xf32, #tpu.memory_space<vmem>>, vector<1x1x1x4xf32>
    %324 = vector.shape_cast %323 : vector<1x1x1x4xf32> to vector<1x4xf32>
    %325 = vector.shape_cast %322 : vector<1x4xf32> to vector<1x1x1x4xf32>
    tpu.vector_store %arg27[%c0_183, %c0_184, %c0_185, %c0_186], %325 {strides = array<i32>} : memref<1x1x1x4xf32, #tpu.memory_space<vmem>>, vector<1x1x1x4xf32>,
    return
  }
  func.func @transform_0(%arg0: i32, %arg1: i32) -> (i32, i32, i32) {
    %c0_i32 = arith.constant 0 : i32
    %c0_i32_0 = arith.constant 0 : i32
    %c0_i32_1 = arith.constant 0 : i32
    return %arg0, %c0_i32, %c0_i32_0 : i32, i32, i32
  }
  func.func @transform_1(%arg0: i32, %arg1: i32) -> (i32, i32, i32) {
    %c0_i32 = arith.constant 0 : i32
    %c0_i32_0 = arith.constant 0 : i32
    %c0_i32_1 = arith.constant 0 : i32
    %c0_i32_2 = arith.constant 0 : i32
    return %c0_i32, %c0_i32_0, %c0_i32_1 : i32, i32, i32
  }
  func.func @transform_2(%arg0: i32, %arg1: i32) -> (i32, i32, i32, i32) {
    %c0_i32 = arith.constant 0 : i32
    %c0_i32_0 = arith.constant 0 : i32
    %c0_i32_1 = arith.constant 0 : i32
    return %arg0, %arg1, %c0_i32, %c0_i32_0 : i32, i32, i32, i32
  }
  func.func @transform_3(%arg0: i32, %arg1: i32) -> (i32, i32) {
    %c0_i32 = arith.constant 0 : i32
    %c0_i32_0 = arith.constant 0 : i32
    %c0_i32_1 = arith.constant 0 : i32
    return %c0_i32, %c0_i32_0 : i32, i32
  }
  func.func @transform_4(%arg0: i32, %arg1: i32) -> (i32, i32) {
    %c0_i32 = arith.constant 0 : i32
    %c0_i32_0 = arith.constant 0 : i32
    %c0_i32_1 = arith.constant 0 : i32
    return %c0_i32, %c0_i32_0 : i32, i32
  }
  func.func @transform_5(%arg0: i32, %arg1: i32) -> (i32, i32) {
    %c0_i32 = arith.constant 0 : i32
    %c0_i32_0 = arith.constant 0 : i32
    %c0_i32_1 = arith.constant 0 : i32
    return %c0_i32, %c0_i32_0 : i32, i32
  }
  func.func @transform_6(%arg0: i32, %arg1: i32) -> (i32, i32) {
    %c0_i32 = arith.constant 0 : i32
    %c0_i32_0 = arith.constant 0 : i32
    %c0_i32_1 = arith.constant 0 : i32
    return %c0_i32, %c0_i32_0 : i32, i32
  }
  func.func @transform_7(%arg0: i32, %arg1: i32) -> (i32, i32) {
    %c0_i32 = arith.constant 0 : i32
    %c0_i32_0 = arith.constant 0 : i32
    %c0_i32_1 = arith.constant 0 : i32
    return %c0_i32, %c0_i32_0 : i32, i32
  }
  func.func @transform_8(%arg0: i32, %arg1: i32) -> (i32, i32) {
    %c0_i32 = arith.constant 0 : i32
    %c0_i32_0 = arith.constant 0 : i32
    %c0_i32_1 = arith.constant 0 : i32
    return %c0_i32, %c0_i32_0 : i32, i32
  }
  func.func @transform_9(%arg0: i32, %arg1: i32) -> (i32, i32, i32) {
    %c0_i32 = arith.constant 0 : i32
    %c0_i32_0 = arith.constant 0 : i32
    %c0_i32_1 = arith.constant 0 : i32
    %c0_i32_2 = arith.constant 0 : i32
    return %c0_i32, %c0_i32_0, %c0_i32_1 : i32, i32, i32
  }
  func.func @transform_10(%arg0: i32, %arg1: i32) -> (i32, i32, i32) {
    %c0_i32 = arith.constant 0 : i32
    %c0_i32_0 = arith.constant 0 : i32
    %c0_i32_1 = arith.constant 0 : i32
    %c0_i32_2 = arith.constant 0 : i32
    return %c0_i32, %c0_i32_0, %c0_i32_1 : i32, i32, i32
  }
  func.func @transform_11(%arg0: i32, %arg1: i32) -> (i32, i32, i32) {
    %c0_i32 = arith.constant 0 : i32
    %c0_i32_0 = arith.constant 0 : i32
    %c0_i32_1 = arith.constant 0 : i32
    %c0_i32_2 = arith.constant 0 : i32
    return %c0_i32, %c0_i32_0, %c0_i32_1 : i32, i32, i32
  }
  func.func @transform_12(%arg0: i32, %arg1: i32) -> (i32, i32, i32) {
    %c0_i32 = arith.constant 0 : i32
    %c0_i32_0 = arith.constant 0 : i32
    %c0_i32_1 = arith.constant 0 : i32
    %c0_i32_2 = arith.constant 0 : i32
    return %c0_i32, %c0_i32_0, %c0_i32_1 : i32, i32, i32
  }
  func.func @transform_13(%arg0: i32, %arg1: i32) -> (i32, i32, i32) {
    %c0_i32 = arith.constant 0 : i32
    %c0_i32_0 = arith.constant 0 : i32
    %c0_i32_1 = arith.constant 0 : i32
    %c0_i32_2 = arith.constant 0 : i32
    return %c0_i32, %c0_i32_0, %c0_i32_1 : i32, i32, i32
  }
  func.func @transform_14(%arg0: i32, %arg1: i32) -> (i32, i32, i32) {
    %c0_i32 = arith.constant 0 : i32
    %c0_i32_0 = arith.constant 0 : i32
    %c0_i32_1 = arith.constant 0 : i32
    %c0_i32_2 = arith.constant 0 : i32
    return %c0_i32, %c0_i32_0, %c0_i32_1 : i32, i32, i32
  }
  func.func @transform_15(%arg0: i32, %arg1: i32) -> (i32, i32) {
    %c0_i32 = arith.constant 0 : i32
    %c0_i32_0 = arith.constant 0 : i32
    %c0_i32_1 = arith.constant 0 : i32
    return %c0_i32, %c0_i32_0 : i32, i32
  }
  func.func @transform_16(%arg0: i32, %arg1: i32) -> (i32, i32) {
    %c0_i32 = arith.constant 0 : i32
    %c0_i32_0 = arith.constant 0 : i32
    %c0_i32_1 = arith.constant 0 : i32
    return %c0_i32, %c0_i32_0 : i32, i32
  }
  func.func @transform_17(%arg0: i32, %arg1: i32) -> (i32, i32) {
    %c0_i32 = arith.constant 0 : i32
    %c0_i32_0 = arith.constant 0 : i32
    %c0_i32_1 = arith.constant 0 : i32
    return %c0_i32, %c0_i32_0 : i32, i32
  }
  func.func @transform_18(%arg0: i32, %arg1: i32) -> (i32, i32) {
    %c0_i32 = arith.constant 0 : i32
    %c0_i32_0 = arith.constant 0 : i32
    %c0_i32_1 = arith.constant 0 : i32
    return %c0_i32, %c0_i32_0 : i32, i32
  }
  func.func @transform_19(%arg0: i32, %arg1: i32) -> (i32, i32) {
    %c0_i32 = arith.constant 0 : i32
    %c0_i32_0 = arith.constant 0 : i32
    %c0_i32_1 = arith.constant 0 : i32
    return %c0_i32, %c0_i32_0 : i32, i32
  }
  func.func @transform_20(%arg0: i32, %arg1: i32) -> (i32, i32) {
    %c0_i32 = arith.constant 0 : i32
    %c0_i32_0 = arith.constant 0 : i32
    %c0_i32_1 = arith.constant 0 : i32
    return %c0_i32, %c0_i32_0 : i32, i32
  }
  func.func @transform_21(%arg0: i32, %arg1: i32) -> (i32, i32) {
    %c0_i32 = arith.constant 0 : i32
    %c0_i32_0 = arith.constant 0 : i32
    %c0_i32_1 = arith.constant 0 : i32
    return %c0_i32, %c0_i32_0 : i32, i32
  }
  func.func @transform_22(%arg0: i32, %arg1: i32) -> (i32, i32) {
    %c0_i32 = arith.constant 0 : i32
    %c0_i32_0 = arith.constant 0 : i32
    %c0_i32_1 = arith.constant 0 : i32
    return %c0_i32, %c0_i32_0 : i32, i32
  }
  func.func @transform_23(%arg0: i32, %arg1: i32) -> (i32, i32, i32, i32) {
    %c0_i32 = arith.constant 0 : i32
    %c0_i32_0 = arith.constant 0 : i32
    %c0_i32_1 = arith.constant 0 : i32
    return %arg0, %arg1, %c0_i32, %c0_i32_0 : i32, i32, i32, i32
  }
  func.func @transform_24(%arg0: i32, %arg1: i32) -> (i32, i32, i32, i32) {
    %c0_i32 = arith.constant 0 : i32
    %c0_i32_0 = arith.constant 0 : i32
    %c0_i32_1 = arith.constant 0 : i32
    return %arg0, %arg1, %c0_i32, %c0_i32_0 : i32, i32, i32, i32
  }
  func.func @transform_25(%arg0: i32, %arg1: i32) -> (i32, i32, i32, i32) {
    %c0_i32 = arith.constant 0 : i32
    %c0_i32_0 = arith.constant 0 : i32
    %c0_i32_1 = arith.constant 0 : i32
    return %arg0, %arg1, %c0_i32, %c0_i32_0 : i32, i32, i32, i32
  }
}

</mosaic_0001>

<bundles_post_ra>
// kernel: mask_decoder_forward.3
= control target key start
LH: loop header
LB: loop body
LE: loop exit
PB: predicated region body
PF: predicated region fallthrough
CT: control target
= control target key end

     0   :  { %s1349_s27 = smov 0   ;;  %s1630_s0 = inlined_call_operand.vmem [shape: bf16[2,64,32], index: 0, kind: input, shape index: {}]   ;;  %s1631_s1 = inlined_call_operand.vmem [shape: bf16[64,32], index: 1, kind: input, shape index: {}]   ;;  %s1632_s2 = inlined_call_operand.vmem [shape: f32[64,1], index: 2, kind: input, shape index: {}]   ;;  %s1633_s3 = inlined_call_operand.vmem [shape: f32[16,1], index: 3, kind: input, shape index: {}]   ;;  %s1634_s4 = inlined_call_operand.vmem [shape: f32[16,1], index: 4, kind: input, shape index: {}]   ;;  %s1635_s5 = inlined_call_operand.vmem [shape: bf16[32,16], index: 5, kind: input, shape index: {}]   ;;  %s1636_s6 = inlined_call_operand.vmem [shape: f32[32,1], index: 6, kind: input, shape index: {}]   ;;  %s1637_s7 = inlined_call_operand.vmem [shape: bf16[2,16,32], index: 7, kind: input, shape index: {}]   ;;  %s1638_s8 = inlined_call_operand.vmem [shape: f32[2,16,256], index: 8, kind: output, shape index: {}]  }
   0x1 LB: > { %s1148_s28 = sadd.s32 4294967295, %s1300_s27   ;;  %p1152_p0 = scmp.ge.s32.totalorder %s1300_s27, 1  ;;  %s1300_s27 = sphi %s1349_s27, %s18_s27  }
   0x2   : > { %p272_p1 = scmp.lt.s32.totalorder %s1300_s27, 3 }
   0x4   : > { %p273_p2 = pnand %p1152_p0, %p272_p1 }
   0x5   : > { %p311_p3 = scmp.lt.s32.totalorder (!%p273_p2), %s1148_s28, 1  ;;  %s1303_s13 = smov (!%p273_p2), 64  }
   0x6   : > { %276 = sbr.rel (%p273_p2) target bundleno = 1157 (0x485), region = 52 }
   0xb   : > { %v1250_v0 = vld [vmem:[%s1631_s1] sm:$0xff]   ;;  %s1640_s28 = smov (!%p311_p3, %s1148_s28), 1  ;;  %vm431_vm0 = vcmask 261120   ;;  %v1302_v1 = vmov 0   ;;  %v345_v3 = vld [vmem:[%s1632_s2 + $0x10] sm:$0xff]  ;;  %v344_v4 = vld [vmem:[%s1632_s2 + $0x8] sm:$0xff] }
   0xc   : > { %1244 = vset.pattern.permute.xlu0 %v1302_v1  ;;  %1245 = vset.pattern.permute.xlu1 %v1302_v1  ;;  %s1189_s9 = sshll.u32 %s1640_s28, 5  ;;  %v343_v2 = vld [vmem:[%s1632_s2] sm:$0xff]  ;;  %v346_v5 = vld [vmem:[%s1632_s2 + $0x18] sm:$0xff]  ;;  %v348_v10 = vld [vmem:[%s1632_s2 + $0x28] sm:$0xff]  ;;  %vm521_vm1 = vcmask 523264   ;;  %vm646_vm2 = vcmask 519168  }
   0xd   : > { %1216 = vmatprep.mubr.msk.bf16.mxu0 %vm431_vm0, %v1250_v0  ;;  %927 = vmatprep.mubr.bf16.mxu1 %v1302_v1  ;;  %s315_s16 = scalar_lea.vmem %s1630_s0, %s1189_s9  ;;  %v347_v9 = vld [vmem:[%s1632_s2 + $0x20] sm:$0xff]  ;;  %v349_v13 = vld [vmem:[%s1632_s2 + $0x30] sm:$0xff]  ;;  %v350_v14 = vld [vmem:[%s1632_s2 + $0x38] sm:$0xff]  ;;  %vm711_vm3 = vcmask 1043968   ;;  %vm888_vm4 = vcmask 130048  }
   0xe   : > { %353 = vperm.xlu0 %1244, %v343_v2   ;;  %363 = vperm.xlu1 %1245, %v345_v3   ;;  %v1246_v6 = vld [vmem:[%s315_s16 + $0x18] sm:$0xff]   ;;  %v1247_v7 = vld [vmem:[%s315_s16 + $0x10] sm:$0xff]   ;;  %v1248_v12 = vld [vmem:[%s315_s16 + $0x8] sm:$0xff]  }
   0xf   : > { %1224 = vmatprep.subr.msk.bf16.mxu0 %vm431_vm0, %v1246_v6  ;;  %v454_v8 = vsel %vm431_vm0, %v1246_v6, 0  ;;  %v451_v11 = vsel %vm431_vm0, %v1247_v7, 0  ;;  %v448_v15 = vsel %vm431_vm0, %v1248_v12, 0  ;;  %v1249_v16 = vld [vmem:[%s315_s16] sm:$0xff]   ;;  %v1251_v18 = vld [vmem:[%s1631_s1 + $0x8] sm:$0xff]   ;;  %v1252_v19 = vld [vmem:[%s1631_s1 + $0x10] sm:$0xff]  }
  0x10   : > { %1209 = vmatpush3.bf16.xpose.msra.mxu0 %v454_v8  ;;  %v445_v17 = vsel %vm431_vm0, %v1249_v16, 0  ;;  %v1253_v20 = vld [vmem:[%s1631_s1 + $0x18] sm:$0xff]  }
  0x11   : > { %1225 = vmatprep.subr.msk.bf16.mxu0 %vm431_vm0, %v1247_v7 }
  0x12   : > { %358 = vperm.xlu0 %1244, %v344_v4   ;;  %368 = vperm.xlu1 %1245, %v346_v5  }
  0x16   : > { %373 = vperm.xlu0 %1244, %v347_v9   ;;  %378 = vperm.xlu1 %1245, %v348_v10  }
  0x18   : > { %1211 = vmatpush3.bf16.xpose.msra.mxu0 %v451_v11 }
  0x19   : > { %1226 = vmatprep.subr.msk.bf16.mxu0 %vm431_vm0, %v1248_v12 }
  0x1a   : > { %383 = vperm.xlu0 %1244, %v349_v13   ;;  %388 = vperm.xlu1 %1245, %v350_v14  }
  0x20   : > { %1213 = vmatpush3.bf16.xpose.msra.mxu0 %v448_v15 }
  0x21   : > { %1227 = vmatprep.subr.msk.bf16.mxu0 %vm431_vm0, %v1249_v16 }
  0x28   : > { %1215 = vmatpush3.bf16.xpose.msra.mxu0 %v445_v17 }
  0x2f   : > { %1217 = vmatmul.mubr.msk.bf16.vlgmr.msra.gmra.mxu0 %vm431_vm0, %v1251_v18 }
  0x30   : > { %1220 = vmatprep.mubr.msk.bf16.mxu0 %vm431_vm0, %v1252_v19 }
  0x37   : > { %1221 = vmatmul.mubr.msk.bf16.gmra.mxu0 %vm431_vm0, %v1253_v20  ;;  %v654_v20 = vld [vmem:[%s1633_s3 + $0x8] sm:$0xff] }
  0x89   : > { %v354_v21 = vpop.permute.xlu0 %353  ;;  %v364_v22 = vpop.permute.xlu1 %363 }
  0x8d   : > { %v359_v23 = vpop.permute.xlu0 %358  ;;  %v369_v25 = vpop.permute.xlu1 %368 }
  0x91   : > { %v374_v30 = vpop.permute.xlu0 %373  ;;  %v379_v35 = vpop.permute.xlu1 %378 }
  0x95   : > { %v384_v48 = vpop.permute.xlu0 %383  ;;  %v389_v56 = vpop.permute.xlu1 %388 }
  0xef   : > { %v1218_v24 = vpop.f32.mrf.mxu0 }
  0xf0   : > { %v1418_v29 = vadd.f32 %v1218_v24, %v364_v22  ;;  %v668_v22 = vld [vmem:[%s1634_s4 + $0x8] sm:$0xff] }
  0xf1   : > { %v490_v26 = vpop.f32.mrf.mxu0 }
  0xf2   : > { %v1416_v27 = vadd.f32 %v490_v26, %v354_v21  ;;  %v549_v37 = vmul.f32 %v1418_v29, %v1418_v29  ;;  %v525_v41 = vsel %vm521_vm1, %v1418_v29, 0.0  ;;  %v653_v21 = vld [vmem:[%s1633_s3] sm:$0xff] }
  0xf3   : > { %v1219_v28 = vpop.f32.mrf.mxu0 }
  0xf4   : > { %v547_v32 = vmul.f32 %v1416_v27, %v1416_v27  ;;  %v1422_v33 = vadd.f32 %v1219_v28, %v369_v25  ;;  %v522_v38 = vsel %vm521_vm1, %v1416_v27, 0.0  ;;  %v558_v52 = vsel %vm521_vm1, %v549_v37, 0.0 }
  0xf5   : > { %v493_v31 = vpop.f32.mrf.mxu0 }
  0xf6   : > { %v1424_v34 = vadd.f32 %v493_v31, %v359_v23  ;;  %v555_v44 = vsel %vm521_vm1, %v547_v32, 0.0  ;;  %v550_v45 = vmul.f32 %v1422_v33, %v1422_v33  ;;  %v527_v53 = vsel %vm521_vm1, %v1422_v33, 0.0  ;;  %v667_v23 = vld [vmem:[%s1634_s4] sm:$0xff] }
  0xf7   : > { %v1222_v36 = vpop.f32.mrf.mxu0 }
  0xf8   : > { %v523_v39 = vsel %vm521_vm1, %v1424_v34, 0.0  ;;  %v548_v40 = vmul.f32 %v1424_v34, %v1424_v34  ;;  %v1445_v54 = vadd.f32 %v1222_v36, %v384_v48  ;;  %v560_v60 = vsel %vm521_vm1, %v550_v45, 0.0 }
  0xf9   : > { %v524_v42 = vadd.f32 %v523_v39, %v522_v38  ;;  %v506_v43 = vpop.f32.mrf.mxu0 }
  0xfa   : > { %v556_v46 = vsel %vm521_vm1, %v548_v40, 0.0  ;;  %v1440_v47 = vadd.f32 %v506_v43, %v374_v30  ;;  %v553_v3 = vmul.f32 %v1445_v54, %v1445_v54  ;;  %v533_v9 = vsel %vm521_vm1, %v1445_v54, 0.0 }
  0xfb   : > { %v526_v49 = vadd.f32 %v525_v41, %v524_v42  ;;  %v557_v50 = vadd.f32 %v556_v46, %v555_v44  ;;  %v1223_v51 = vpop.f32.mrf.mxu0 }
  0xfc   : > { %v551_v55 = vmul.f32 %v1440_v47, %v1440_v47  ;;  %v529_v61 = vsel %vm521_vm1, %v1440_v47, 0.0  ;;  %v1452_v62 = vadd.f32 %v1223_v51, %v389_v56  ;;  %v566_v15 = vsel %vm521_vm1, %v553_v3, 0.0 }
  0xfd   : > { %v559_v57 = vadd.f32 %v558_v52, %v557_v50  ;;  %v528_v58 = vadd.f32 %v527_v53, %v526_v49  ;;  %v509_v59 = vpop.f32.mrf.mxu0 }
  0xfe   : > { %v1454_v63 = vadd.f32 %v509_v59, %v379_v35  ;;  %v562_v4 = vsel %vm521_vm1, %v551_v55, 0.0  ;;  %v554_v10 = vmul.f32 %v1452_v62, %v1452_v62  ;;  %v535_v14 = vsel %vm521_vm1, %v1452_v62, 0.0 }
  0xff   : > { %v530_v0 = vadd.f32 %v529_v61, %v528_v58  ;;  %v561_v2 = vadd.f32 %v560_v60, %v559_v57 }
 0x100   : > { %v531_v5 = vsel %vm521_vm1, %v1454_v63, 0.0  ;;  %v552_v6 = vmul.f32 %v1454_v63, %v1454_v63  ;;  %v568_v18 = vsel %vm521_vm1, %v554_v10, 0.0 }
 0x101   : > { %v532_v7 = vadd.f32 %v531_v5, %v530_v0  ;;  %v563_v8 = vadd.f32 %v562_v4, %v561_v2 }
 0x102   : > { %v564_v11 = vsel %vm521_vm1, %v552_v6, 0.0 }
 0x103   : > { %v534_v12 = vadd.f32 %v533_v9, %v532_v7  ;;  %v565_v13 = vadd.f32 %v564_v11, %v563_v8 }
 0x105   : > { %v536_v16 = vadd.f32 %v535_v14, %v534_v12  ;;  %v567_v17 = vadd.f32 %v566_v15, %v565_v13 }
 0x107   : > { %537 = vadd.xlane.f32.xlu0 %v536_v16  ;;  %v569_v19 = vadd.f32 %v568_v18, %v567_v17 }
 0x109   : > { %570 = vadd.xlane.f32.xlu1 %v569_v19 }
 0x11a   : > { %662 = vperm.xlu1 %1245, %v654_v20  }
 0x11d   : > { %657 = vperm.xlu0 %1244, %v653_v21  }
 0x11e   : > { %787 = vperm.xlu1 %1245, %v654_v20  }
 0x121   : > { %782 = vperm.xlu0 %1244, %v653_v21  }
 0x122   : > { %676 = vperm.xlu1 %1245, %v668_v22  }
 0x125   : > { %671 = vperm.xlu0 %1244, %v667_v23  }
 0x126   : > { %801 = vperm.xlu1 %1245, %v668_v22  }
 0x129   : > { %796 = vperm.xlu0 %1244, %v667_v23  }
 0x12a   : > { %601 = vperm.xlu1 %1245, %v654_v20  }
 0x12d   : > { %596 = vperm.xlu0 %1244, %v653_v21  }
 0x12e   : > { %727 = vperm.xlu1 %1245, %v654_v20  }
 0x131   : > { %722 = vperm.xlu0 %1244, %v653_v21  }
 0x132   : > { %615 = vperm.xlu1 %1245, %v668_v22  }
 0x135   : > { %610 = vperm.xlu0 %1244, %v667_v23  }
 0x136   : > { %741 = vperm.xlu1 %1245, %v668_v22  }
 0x139   : > { %736 = vperm.xlu0 %1244, %v667_v23  }
 0x190   : > { %v538_v24 = vpop.xlane.xlu0 %537 }
 0x191   : > { %v539_v25 = vrot.slane %v538_v24, 4 }
 0x192   : > { %v571_v26 = vpop.xlane.xlu1 %570 }
 0x193   : > { %v540_v28 = vadd.f32 %v539_v25, %v538_v24  ;;  %v572_v30 = vrot.slane %v571_v26, 4 }
 0x195   : > { %v541_v31 = vrot.slane %v540_v28, 2  ;;  %v573_v32 = vadd.f32 %v572_v30, %v571_v26 }
 0x196   : > { %v663_v44 = vpop.permute.xlu1 %662 }
 0x197   : > { %v574_v35 = vrot.slane %v573_v32, 2  ;;  %v542_v36 = vadd.f32 %v541_v31, %v540_v28 }
 0x198   : > { %v658_v45 = vpop.permute.xlu0 %657 }
 0x199   : > { %v543_v37 = vrot.slane %v542_v36, 1  ;;  %v575_v38 = vadd.f32 %v574_v35, %v573_v32 }
 0x19a   : > { %v788_v46 = vpop.permute.xlu1 %787 }
 0x19b   : > { %v544_v39 = vadd.f32 %v543_v37, %v542_v36  ;;  %v576_v40 = vrot.slane %v575_v38, 1 }
 0x19c   : > { %v783_v48 = vpop.permute.xlu0 %782 }
 0x19d   : > { %1228 = vpush %v544_v39  ;;  %v577_v41 = vadd.f32 %v576_v40, %v575_v38 }
 0x19e   : > { %v677_v49 = vpop.permute.xlu1 %676 }
 0x19f   : > { %1230 = vpush %v577_v41 }
 0x1a0   : > { %v672_v50 = vpop.permute.xlu0 %671 }
 0x1a2   : > { %v802_v51 = vpop.permute.xlu1 %801 }
 0x1a4   : > { %v797_v52 = vpop.permute.xlu0 %796 }
 0x1a6   : > { %v602_v53 = vpop.permute.xlu1 %601 }
 0x1a8   : > { %v597_v55 = vpop.permute.xlu0 %596 }
 0x1aa   : > { %v728_v56 = vpop.permute.xlu1 %727 }
 0x1ac   : > { %v723_v57 = vpop.permute.xlu0 %722 }
 0x1ae   : > { %v616_v60 = vpop.permute.xlu1 %615 }
 0x1b0   : > { %v611_v61 = vpop.permute.xlu0 %610 }
 0x1b2   : > { %v742_v19 = vpop.permute.xlu1 %741 }
 0x1ce   : > { %s1229_s24 = spop %1228 }
 0x1cf   : > { %s546_s25 = smul.f32 0.00024414063, %s1229_s24 }
 0x1d0   : > { %s1231_s26 = spop %1230 }
 0x1d1   : > { %s580_s29 = smul.f32 %s546_s25, %s546_s25  ;;  %v586_v58 = vstv %s546_s25 }
 0x1d2   : > { %s579_s30 = smul.f32 0.00024414063, %s1231_s26  ;;  %v587_v59 = vsub.f32 %v1416_v27, %v586_v58  ;;  %v588_v0 = vsub.f32 %v1424_v34, %v586_v58  ;;  %v649_v2 = vsub.f32 %v1418_v29, %v586_v58  ;;  %v650_v3 = vsub.f32 %v1422_v33, %v586_v58  ;;  %s1190_s26 = sshll.u32 %s1640_s28, 3 }
 0x1d3   : > { %v714_v4 = vsub.f32 %v1440_v47, %v586_v58  ;;  %v715_v6 = vsub.f32 %v1454_v63, %v586_v58  ;;  %v774_v7 = vsub.f32 %v1445_v54, %v586_v58  ;;  %v775_v8 = vsub.f32 %v1452_v62, %v586_v58  ;;  %v737_v54 = vpop.permute.xlu0 %736 }
 0x1d4   : > { %s581_s10 = ssub.f32 %s579_s30, %s580_s29 }
 0x1d6   : > { %s582_s11 = sadd.f32 1e-05, %s581_s10  ;;  %s1576_s10 = scalar_lea.vmem %s1637_s7, %s1190_s26 }
 0x1d8   : > { %v583_v42 = vstv %s582_s11 }
 0x1d9   : > { %1260 = vrsqrt.f32 %v583_v42 }
 0x1e6   : > { %v1261_v43 = vpop.eup %1260 }
 0x1e7   : > { %1232 = vpush %v1261_v43 }
 0x218   : > { %s1233_s12 = spop %1232 }
 0x219   : > { %v589_v5 = vstv %s1233_s12 }
 0x21a   : > { %v590_v9 = vmul.f32 %v589_v5, %v587_v59  ;;  %v591_v27 = vmul.f32 %v589_v5, %v588_v0  ;;  %v651_v10 = vmul.f32 %v649_v2, %v589_v5  ;;  %v652_v11 = vmul.f32 %v650_v3, %v589_v5 }
 0x21b   : > { %v716_v12 = vmul.f32 %v714_v4, %v589_v5  ;;  %v717_v13 = vmul.f32 %v715_v6, %v589_v5  ;;  %v776_v34 = vmul.f32 %v774_v7, %v589_v5  ;;  %v777_v14 = vmul.f32 %v775_v8, %v589_v5 }
 0x21c   : > { %v666_v29 = vmul.f32 %v663_v44, %v652_v11  ;;  %v665_v15 = vmul.f32 %v658_v45, %v651_v10  ;;  %v605_v33 = vmul.f32 %v602_v53, %v591_v27  ;;  %v604_v16 = vmul.f32 %v597_v55, %v590_v9 }
 0x21d   : > { %v791_v47 = vmul.f32 %v788_v46, %v777_v14  ;;  %v790_v17 = vmul.f32 %v783_v48, %v776_v34  ;;  %v731_v18 = vmul.f32 %v728_v56, %v717_v13  ;;  %v730_v63 = vmul.f32 %v723_v57, %v716_v12 }
 0x21e   : > { %v1492_v20 = vadd.f32 %v677_v49, %v666_v29  ;;  %v1494_v62 = vadd.f32 %v672_v50, %v665_v15  ;;  %v1496_v21 = vadd.f32 %v616_v60, %v605_v33  ;;  %v1498_v22 = vadd.f32 %v611_v61, %v604_v16 }
 0x21f   : > { %v1500_v23 = vadd.f32 %v802_v51, %v791_v47  ;;  %v1502_v24 = vadd.f32 %v797_v52, %v790_v17  ;;  %v1504_v25 = vadd.f32 %v742_v19, %v731_v18  ;;  %v1506_v26 = vadd.f32 %v737_v54, %v730_v63 }
 0x220   : > { %v682_v28 = vmul.f32 %v1492_v20, %v1492_v20  ;;  %v681_v30 = vmul.f32 %v1494_v62, %v1494_v62  ;;  %v621_v31 = vmul.f32 %v1496_v21, %v1496_v21  ;;  %v620_v32 = vmul.f32 %v1498_v22, %v1498_v22 }
 0x221   : > { %v807_v35 = vmul.f32 %v1500_v23, %v1500_v23  ;;  %v806_v36 = vmul.f32 %v1502_v24, %v1502_v24  ;;  %v747_v37 = vmul.f32 %v1504_v25, %v1504_v25  ;;  %v746_v38 = vmul.f32 %v1506_v26, %v1506_v26 }
 0x222   : > { %v684_v39 = vmul.f32 %v682_v28, %v1492_v20  ;;  %v683_v40 = vmul.f32 %v681_v30, %v1494_v62  ;;  %v623_v41 = vmul.f32 %v621_v31, %v1496_v21  ;;  %v622_v42 = vmul.f32 %v620_v32, %v1498_v22 }
 0x223   : > { %v809_v43 = vmul.f32 %v807_v35, %v1500_v23  ;;  %v808_v44 = vmul.f32 %v806_v36, %v1502_v24  ;;  %v749_v45 = vmul.f32 %v747_v37, %v1504_v25  ;;  %v748_v46 = vmul.f32 %v746_v38, %v1506_v26 }
 0x224   : > { %v686_v48 = vmul.f32 0.044715, %v684_v39  ;;  %v685_v49 = vmul.f32 0.044715, %v683_v40  ;;  %v625_v50 = vmul.f32 0.044715, %v623_v41 }
 0x225   : > { %v811_v51 = vmul.f32 0.044715, %v809_v43  ;;  %v810_v52 = vmul.f32 0.044715, %v808_v44  ;;  %v624_v53 = vmul.f32 0.044715, %v622_v42 }
 0x226   : > { %v688_v55 = vadd.f32 %v686_v48, %v1492_v20  ;;  %v687_v56 = vadd.f32 %v685_v49, %v1494_v62  ;;  %v627_v57 = vadd.f32 %v625_v50, %v1496_v21  ;;  %v751_v58 = vmul.f32 0.044715, %v749_v45 }
 0x227   : > { %v813_v59 = vadd.f32 %v811_v51, %v1500_v23  ;;  %v812_v60 = vadd.f32 %v810_v52, %v1502_v24  ;;  %v626_v61 = vadd.f32 %v624_v53, %v1498_v22  ;;  %v750_v0 = vmul.f32 0.044715, %v748_v46  ;;  %v844_v52 = vld [vmem:[%s1636_s6] sm:$0xff] }
 0x228   : > { %v690_v2 = vmul.f32 0.7978846, %v688_v55  ;;  %v689_v3 = vmul.f32 0.7978846, %v687_v56  ;;  %v753_v4 = vadd.f32 %v751_v58, %v1504_v25  ;;  %v629_v8 = vmul.f32 0.7978846, %v627_v57 }
 0x229   : > { %v815_v5 = vmul.f32 0.7978846, %v813_v59  ;;  %v814_v6 = vmul.f32 0.7978846, %v812_v60  ;;  %v752_v7 = vadd.f32 %v750_v0, %v1506_v26  ;;  %v628_v9 = vmul.f32 0.7978846, %v626_v61 }
 0x22a   : > { %1262 = vtanh.f32 %v690_v2  ;;  %v755_v27 = vmul.f32 0.7978846, %v753_v4  ;;  %v1257_v60 = vld [vmem:[%s1635_s5] sm:$0xff]   ;;  %v1258_v61 = vld [vmem:[%s1635_s5 + $0x8] sm:$0xff]  }
 0x22b   : > { %1264 = vtanh.f32 %v689_v3  ;;  %v754_v10 = vmul.f32 0.7978846, %v752_v7 }
 0x22c   : > { %1266 = vtanh.f32 %v815_v5 }
 0x22d   : > { %1268 = vtanh.f32 %v814_v6 }
 0x22e   : > { %1270 = vtanh.f32 %v629_v8 }
 0x22f   : > { %1272 = vtanh.f32 %v628_v9 }
 0x230   : > { %1274 = vtanh.f32 %v755_v27 }
 0x231   : > { %1276 = vtanh.f32 %v754_v10 }
 0x237   : > { %v1263_v11 = vpop.eup %1262 }
 0x238   : > { %v1265_v12 = vpop.eup %1264  ;;  %v694_v13 = vadd.f32 1.0, %v1263_v11 }
 0x239   : > { %v1267_v34 = vpop.eup %1266  ;;  %v693_v14 = vadd.f32 1.0, %v1265_v12 }
 0x23a   : > { %v1269_v29 = vpop.eup %1268  ;;  %v696_v15 = vmul.f32 0.5, %v694_v13  ;;  %v819_v33 = vadd.f32 1.0, %v1267_v34 }
 0x23b   : > { %v1271_v16 = vpop.eup %1270  ;;  %v695_v47 = vmul.f32 0.5, %v693_v14  ;;  %v818_v17 = vadd.f32 1.0, %v1269_v29 }
 0x23c   : > { %v1273_v18 = vpop.eup %1272  ;;  %v698_v63 = vmul.f32 %v696_v15, %v1492_v20  ;;  %v821_v19 = vmul.f32 0.5, %v819_v33  ;;  %v633_v54 = vadd.f32 1.0, %v1271_v16 }
 0x23d   : > { %v1275_v28 = vpop.eup %1274  ;;  %v697_v30 = vmul.f32 %v695_v47, %v1494_v62  ;;  %v820_v31 = vmul.f32 0.5, %v818_v17  ;;  %v632_v32 = vadd.f32 1.0, %v1273_v18 }
 0x23e   : > { %v1277_v35 = vpop.eup %1276  ;;  %v1195_v36 = vpack.c.bf16 %v698_v63, %v698_v63  ;;  %v823_v37 = vmul.f32 %v821_v19, %v1500_v23  ;;  %v635_v38 = vmul.f32 0.5, %v633_v54  ;;  %v759_v39 = vadd.f32 1.0, %v1275_v28 }
 0x23f   : > { %v1194_v40 = vpack.c.bf16 %v697_v30, %v697_v30  ;;  %v822_v41 = vmul.f32 %v820_v31, %v1502_v24  ;;  %v634_v42 = vmul.f32 0.5, %v632_v32  ;;  %v758_v43 = vadd.f32 1.0, %v1277_v35 }
 0x240   : > { %707 = vrot.lane.b32.xlu1 %v1195_v36, %s1303_s13  ;;  %v637_v20 = vmul.f32 %v635_v38, %v1496_v21  ;;  %v761_v44 = vmul.f32 0.5, %v759_v39  ;;  %v1199_v46 = vpack.c.bf16 %v823_v37, %v823_v37  ;;  %v847_v21 = vld [vmem:[%s1636_s6 + $0x18] sm:$0xff] }
 0x241   : > { %705 = vrot.lane.b32.xlu0 %v1194_v40, %s1303_s13  ;;  %v636_v62 = vmul.f32 %v634_v42, %v1498_v22  ;;  %v760_v45 = vmul.f32 0.5, %v758_v43  ;;  %v1198_v49 = vpack.c.bf16 %v822_v41, %v822_v41 }
 0x242   : > { %v1193_v48 = vpack.c.bf16 %v637_v20, %v637_v20  ;;  %v763_v23 = vmul.f32 %v761_v44, %v1504_v25  ;;  %v846_v25 = vld [vmem:[%s1636_s6 + $0x10] sm:$0xff] }
 0x243   : > { %v1192_v50 = vpack.c.bf16 %v636_v62, %v636_v62  ;;  %v762_v24 = vmul.f32 %v760_v45, %v1506_v26  ;;  %v845_v26 = vld [vmem:[%s1636_s6 + $0x8] sm:$0xff] }
 0x244   : > { %832 = vrot.lane.b32.xlu1 %v1199_v46, %s1303_s13  ;;  %648 = vst.msk [vmem:[#allocation2 + $0x8] sm:$0xf] %vm646_vm2, %v1193_v48  ;;  %v1197_v51 = vpack.c.bf16 %v763_v23, %v763_v23 }
 0x245   : > { %830 = vrot.lane.b32.xlu0 %v1198_v49, %s1303_s13  ;;  %647 = vst.msk [vmem:[#allocation2] sm:$0xf] %vm646_vm2, %v1192_v50  ;;  %v1196_v22 = vpack.c.bf16 %v762_v24, %v762_v24  ;;  %s325_s13 = scalar_lea.vmem %s1638_s8, %s1189_s9 }
 0x246   : > { %773 = vst.msk [vmem:[#allocation2 + $0xc] sm:$0xf] %vm646_vm2, %v1197_v51 }
 0x247   : > { %772 = vst.msk [vmem:[#allocation2 + $0x4] sm:$0xf] %vm646_vm2, %v1196_v22 }
 0x248   : > { %865 = vperm.xlu1 %1245, %v847_v21  }
 0x249   : > { %860 = vperm.xlu0 %1244, %v846_v25  }
 0x24c   : > { %855 = vperm.xlu1 %1245, %v845_v26  }
 0x24d   : > { %850 = vperm.xlu0 %1244, %v844_v52  }
 0x2b2   : > { %v708_v53 = vpop.permute.xlu1 %707 }
 0x2b3   : > { %713 = vst.msk [vmem:[#allocation2 + $0x8] sm:$0xf] %vm711_vm3, %v708_v53  ;;  %v706_v55 = vpop.permute.xlu0 %705 }
 0x2b4   : > { %712 = vst.msk [vmem:[#allocation2] sm:$0xf] %vm711_vm3, %v706_v55 }
 0x2b6   : > { %v833_v56 = vpop.permute.xlu1 %832 }
 0x2b7   : > { %837 = vst.msk [vmem:[#allocation2 + $0xc] sm:$0xf] %vm711_vm3, %v833_v56  ;;  %v831_v57 = vpop.permute.xlu0 %830 }
 0x2b8   : > { %836 = vst.msk [vmem:[#allocation2 + $0x4] sm:$0xf] %vm711_vm3, %v831_v57 }
 0x2bb   : > { %v1256_v59 = vld [vmem:[#allocation2] ss:$8 sps:$4 sm:$0xff]  }
 0x2bf   : > { %v1254_v58 = vld [vmem:[#allocation2 + $0x4] ss:$8 sps:$4 sm:$0xff]  }
 0x2c0   : > { %909 = vmatprep.subr.bf16.mxu1 %v1254_v58 }
 0x2c1   : > { %910 = vmatpush1.bf16.msra.mxu1 %v1256_v59 }
 0x2c3   : > { %v866_v2 = vpop.permute.xlu1 %865 }
 0x2c4   : > { %1183 = vmatmul.mubr.msk.bf16.vlgmr.msra.gmra.mxu1 %vm888_vm4, %v1257_v60  ;;  %v861_v0 = vpop.permute.xlu0 %860 }
 0x2c5   : > { %937 = vmatprep.mubr.bf16.mxu1 %v1302_v1 }
 0x2c7   : > { %v856_v8 = vpop.permute.xlu1 %855 }
 0x2c8   : > { %v851_v3 = vpop.permute.xlu0 %850 }
 0x2cc   : > { %1184 = vmatmul.mubr.msk.bf16.gmra.mxu1 %vm888_vm4, %v1258_v61 }
 0x2cd   : > { %1066 = vmatprep.mubr.bf16.mxu1 %v1302_v1 }
 0x384   : > { %v929_v4 = vpop.f32.mrf.mxu1 }
 0x385   : > { %v1578_v5 = vadd.f32 %v929_v4, %v851_v3 }
 0x386   : > { %v931_v6 = vpop.f32.mrf.mxu1 }
 0x387   : > { %v1580_v7 = vadd.f32 %v931_v6, %v851_v3  ;;  %v948_v1 = vmul.f32 %v1578_v5, %v1578_v5 }
 0x388   : > { %v933_v9 = vpop.f32.mrf.mxu1 }
 0x389   : > { %v949_v27 = vmul.f32 %v1580_v7, %v1580_v7  ;;  %v1586_v10 = vadd.f32 %v933_v9, %v856_v8  ;;  %v956_v29 = vmul.f32 %v948_v1, %v1578_v5 }
 0x38a   : > { %v935_v11 = vpop.f32.mrf.mxu1 }
 0x38b   : > { %v957_v12 = vmul.f32 %v949_v27, %v1580_v7  ;;  %v950_v13 = vmul.f32 %v1586_v10, %v1586_v10  ;;  %v1591_v34 = vadd.f32 %v935_v11, %v856_v8  ;;  %v964_v31 = vmul.f32 0.044715, %v956_v29 }
 0x38c   : > { %v939_v14 = vpop.f32.mrf.mxu1 }
 0x38d   : > { %v965_v15 = vmul.f32 0.044715, %v957_v12  ;;  %v958_v33 = vmul.f32 %v950_v13, %v1586_v10  ;;  %v951_v16 = vmul.f32 %v1591_v34, %v1591_v34  ;;  %v1597_v47 = vadd.f32 %v939_v14, %v861_v0 }
 0x38e   : > { %v941_v17 = vpop.f32.mrf.mxu1  ;;  %v972_v62 = vadd.f32 %v964_v31, %v1578_v5 }
 0x38f   : > { %v966_v18 = vmul.f32 0.044715, %v958_v33  ;;  %v959_v63 = vmul.f32 %v951_v16, %v1591_v34  ;;  %v973_v19 = vadd.f32 %v965_v15, %v1580_v7  ;;  %v952_v54 = vmul.f32 %v1597_v47, %v1597_v47 }
 0x390   : > { %v1603_v28 = vadd.f32 %v941_v17, %v861_v0  ;;  %v943_v30 = vpop.f32.mrf.mxu1  ;;  %v980_v25 = vmul.f32 0.7978846, %v972_v62 }
 0x391   : > { %v967_v32 = vmul.f32 0.044715, %v959_v63  ;;  %v960_v35 = vmul.f32 %v952_v54, %v1597_v47  ;;  %v944_v37 = vadd.f32 %v943_v30, %v866_v2  ;;  %v974_v39 = vadd.f32 %v966_v18, %v1586_v10 }
 0x392   : > { %v953_v36 = vmul.f32 %v1603_v28, %v1603_v28  ;;  %v945_v38 = vpop.f32.mrf.mxu1  ;;  %v981_v42 = vmul.f32 0.7978846, %v973_v19 }
 0x393   : > { %v975_v40 = vadd.f32 %v967_v32, %v1591_v34  ;;  %v946_v41 = vadd.f32 %v945_v38, %v866_v2  ;;  %v968_v43 = vmul.f32 0.044715, %v960_v35  ;;  %v954_v44 = vmul.f32 %v944_v37, %v944_v37 }
 0x394   : > { %v961_v20 = vmul.f32 %v953_v36, %v1603_v28  ;;  %v982_v50 = vmul.f32 0.7978846, %v974_v39  ;;  %1278 = vtanh.f32 %v981_v42 }
 0x395   : > { %v983_v45 = vmul.f32 0.7978846, %v975_v40  ;;  %v955_v46 = vmul.f32 %v946_v41, %v946_v41  ;;  %v976_v48 = vadd.f32 %v968_v43, %v1597_v47  ;;  %v962_v49 = vmul.f32 %v954_v44, %v944_v37 }
 0x396   : > { %v969_v23 = vmul.f32 0.044715, %v961_v20 }
 0x397   : > { %v963_v24 = vmul.f32 %v955_v46, %v946_v41  ;;  %v984_v51 = vmul.f32 0.7978846, %v976_v48  ;;  %v970_v22 = vmul.f32 0.044715, %v962_v49  ;;  %1280 = vtanh.f32 %v983_v45 }
 0x398   : > { %v977_v21 = vadd.f32 %v969_v23, %v1603_v28 }
 0x399   : > { %v971_v26 = vmul.f32 0.044715, %v963_v24  ;;  %1282 = vtanh.f32 %v984_v51  ;;  %v978_v53 = vadd.f32 %v970_v22, %v944_v37 }
 0x39a   : > { %v985_v52 = vmul.f32 0.7978846, %v977_v21  ;;  %1284 = vtanh.f32 %v982_v50 }
 0x39b   : > { %v979_v55 = vadd.f32 %v971_v26, %v946_v41  ;;  %v986_v56 = vmul.f32 0.7978846, %v978_v53 }
 0x39c   : > { %1286 = vtanh.f32 %v985_v52 }
 0x39d   : > { %1288 = vtanh.f32 %v980_v25  ;;  %v987_v57 = vmul.f32 0.7978846, %v979_v55 }
 0x39e   : > { %1290 = vtanh.f32 %v986_v56 }
 0x39f   : > { %1292 = vtanh.f32 %v987_v57 }
 0x3a1   : > { %v1279_v58 = vpop.eup %1278 }
 0x3a2   : > { %v997_v9 = vadd.f32 1.0, %v1279_v58 }
 0x3a4   : > { %v1281_v59 = vpop.eup %1280  ;;  %v1005_v17 = vmul.f32 0.5, %v997_v9 }
 0x3a5   : > { %v999_v2 = vadd.f32 1.0, %v1281_v59 }
 0x3a6   : > { %v1283_v60 = vpop.eup %1282  ;;  %v1013_v36 = vmul.f32 %v1005_v17, %v1580_v7 }
 0x3a7   : > { %v1285_v61 = vpop.eup %1284  ;;  %v1000_v4 = vadd.f32 1.0, %v1283_v60  ;;  %v1007_v14 = vmul.f32 0.5, %v999_v2 }
 0x3a8   : > { %v998_v27 = vadd.f32 1.0, %v1285_v61 }
 0x3a9   : > { %v1287_v0 = vpop.eup %1286  ;;  %v1008_v15 = vmul.f32 0.5, %v1000_v4  ;;  %v1015_v30 = vmul.f32 %v1007_v14, %v1591_v34 }
 0x3aa   : > { %v1289_v3 = vpop.eup %1288  ;;  %v1001_v6 = vadd.f32 1.0, %v1287_v0  ;;  %v1006_v18 = vmul.f32 0.5, %v998_v27 }
 0x3ab   : > { %v1291_v8 = vpop.eup %1290  ;;  %v996_v29 = vadd.f32 1.0, %v1289_v3  ;;  %v1016_v32 = vmul.f32 %v1008_v15, %v1597_v47  ;;  %v1021_v40 = vpack.c.bf16 %v1015_v30, %v1013_v36 }
 0x3ac   : > { %v1293_v1 = vpop.eup %1292  ;;  %v1002_v11 = vadd.f32 1.0, %v1291_v8  ;;  %v1009_v13 = vmul.f32 0.5, %v1001_v6  ;;  %v1014_v38 = vmul.f32 %v1006_v18, %v1586_v10 }
 0x3ad   : > { %v1003_v12 = vadd.f32 1.0, %v1293_v1  ;;  %v1004_v31 = vmul.f32 0.5, %v996_v29 }
 0x3ae   : > { %v1010_v33 = vmul.f32 0.5, %v1002_v11  ;;  %v1017_v19 = vmul.f32 %v1009_v13, %v1603_v28 }
 0x3af   : > { %v1011_v16 = vmul.f32 0.5, %v1003_v12 }
 0x3b0   : > { %v1018_v63 = vmul.f32 %v1010_v33, %v944_v37  ;;  %v1012_v37 = vmul.f32 %v1004_v31, %v1578_v5 }
 0x3b1   : > { %v1019_v54 = vmul.f32 %v1011_v16, %v946_v41  ;;  %v1259_v41 = vld [vmem:[%s1576_s10] sm:$0xff]  }
 0x3b2   : > { %v1022_v39 = vpack.c.bf16 %v1018_v63, %v1016_v32  ;;  %v1020_v28 = vpack.c.bf16 %v1014_v38, %v1012_v37 }
 0x3b3   : > { %v1023_v35 = vpack.c.bf16 %v1019_v54, %v1017_v19 }
 0x3b5   : > { %1046 = vmatprep.subr.bf16.mxu1 %v1023_v35 }
 0x3b6   : > { %1047 = vmatpush1.bf16.msra.mxu1 %v1022_v39 }
 0x3b7   : > { %1048 = vmatprep.subr.bf16.mxu1 %v1021_v40 }
 0x3ba   : > { %1049 = vmatpush1.bf16.msra.mxu1 %v1020_v28 }
 0x3bd   : > { %1186 = vmatmul.mubr.msk.bf16.vlgmr.msra.gmra.mxu1 %vm431_vm0, %v1259_v41 }
 0x47d   : > { %v1068_v7 = vpop.f32.mrf.mxu1 }
 0x47e   : > { %1077 = vst [vmem:[%s325_s13] sm:$0xff] %v1068_v7 }
 0x47f   : > { %v1070_v10 = vpop.f32.mrf.mxu1 }
 0x480   : > { %1078 = vst [vmem:[%s325_s13 + $0x8] sm:$0xff] %v1070_v10 }
 0x481   : > { %v1072_v34 = vpop.f32.mrf.mxu1 }
 0x482   : > { %1079 = vst [vmem:[%s325_s13 + $0x10] sm:$0xff] %v1072_v34 }
 0x483   : > { %v1074_v47 = vpop.f32.mrf.mxu1 }
 0x484   : > { %1080 = vst [vmem:[%s325_s13 + $0x18] sm:$0xff] %v1074_v47 }
 0x485 PF: > { %s18_s27 = sadd.s32 1, %s1300_s27  }
 0x486   : > { %p15_p4 = scmp.ge.s32.totalorder %s18_s27, 4  }
 0x488   :  { %17 = sbr.rel (!%p15_p4) target bundleno = 1 (0x1), region = 85 }

// kernel: mask_decoder_forward.2
= control target key start
LH: loop header
LB: loop body
LE: loop exit
PB: predicated region body
PF: predicated region fallthrough
CT: control target
= control target key end

     0   :  { %s5470_s0 = inlined_call_operand.vmem [shape: f32[1,64,32], index: 0, kind: input, shape index: {}]   ;;  %s5471_s1 = inlined_call_operand.vmem [shape: f32[1,64,32], index: 1, kind: input, shape index: {}]   ;;  %s5472_s2 = inlined_call_operand.vmem [shape: f32[1,2,8,32], index: 2, kind: input, shape index: {}]   ;;  %s5473_s3 = inlined_call_operand.vmem [shape: bf16[32,32], index: 3, kind: input, shape index: {}]   ;;  %s5474_s4 = inlined_call_operand.vmem [shape: bf16[32,32], index: 4, kind: input, shape index: {}]   ;;  %s5475_s5 = inlined_call_operand.vmem [shape: bf16[32,32], index: 5, kind: input, shape index: {}]   ;;  %s5476_s6 = inlined_call_operand.vmem [shape: bf16[32,32], index: 6, kind: input, shape index: {}]   ;;  %s5477_s7 = inlined_call_operand.hbm [shape: bf16[32,32], index: 7, kind: input, shape index: {}]   ;;  %s5478_s8 = inlined_call_operand.vmem [shape: bf16[32,32], index: 8, kind: input, shape index: {}]   ;;  %s5479_s9 = inlined_call_operand.vmem [shape: bf16[4,32,32], index: 9, kind: input, shape index: {}]   ;;  %s5480_s10 = inlined_call_operand.hbm [shape: f32[4,1,32], index: 10, kind: input, shape index: {}]   ;;  %s5481_s11 = inlined_call_operand.vmem [shape: bf16[4,32,32], index: 11, kind: input, shape index: {}]   ;;  %s5482_s12 = inlined_call_operand.hbm [shape: f32[4,1,32], index: 12, kind: input, shape index: {}]   ;;  %s5483_s13 = inlined_call_operand.vmem [shape: bf16[4,32,8], index: 13, kind: input, shape index: {}]   ;;  %s5484_s14 = inlined_call_operand.hbm [shape: f32[4,1,8], index: 14, kind: input, shape index: {}]   ;;  %s5485_s15 = inlined_call_operand.hbm [shape: bf16[32,32], index: 15, kind: input, shape index: {}]   ;;  %s5486_s16 = inlined_call_operand.vmem [shape: f32[1,32], index: 16, kind: input, shape index: {}]   ;;  %s5487_s17 = inlined_call_operand.hbm [shape: bf16[32,32], index: 17, kind: input, shape index: {}]   ;;  %s5488_s18 = inlined_call_operand.hbm [shape: f32[1,32], index: 18, kind: input, shape index: {}]   ;;  %s5489_s19 = inlined_call_operand.hbm [shape: bf16[32,32], index: 19, kind: input, shape index: {}]   ;;  %s5490_s20 = inlined_call_operand.hbm [shape: f32[1,32], index: 20, kind: input, shape index: {}]   ;;  %s5491_s21 = inlined_call_operand.vmem [shape: bf16[32,4], index: 21, kind: input, shape index: {}]   ;;  %s5492_s22 = inlined_call_operand.hbm [shape: f32[1,4], index: 22, kind: input, shape index: {}]   ;;  %s5493_s23 = inlined_call_operand.vmem [shape: bf16[1,2,64,32], index: 23, kind: output, shape index: {0}]   ;;  %s5494_s24 = inlined_call_operand.vmem [shape: f32[1,2,4,8], index: 24, kind: output, shape index: {1}]   ;;  %s5495_s25 = inlined_call_operand.vmem [shape: f32[1,2,1,4], index: 25, kind: output, shape index: {2}]  }
   0x1   :  { %5511 = sst [smem:[#allocation29_spill]] %s5470_s0 }
   0x2   :  { %5512 = sst [smem:[#allocation30_spill]] %s5471_s1 }
   0x3   :  { %5513 = sst [smem:[#allocation31_spill]] %s5472_s2 }
   0x4   :  { %5514 = sst [smem:[#allocation32_spill]] %s5473_s3 }
   0x5   :  { %5515 = sst [smem:[#allocation33_spill]] %s5474_s4 }
   0x6   :  { %5516 = sst [smem:[#allocation34_spill]] %s5475_s5 }
   0x7   :  { %5517 = sst [smem:[#allocation35_spill]] %s5476_s6 }
   0x8   :  { %5518 = sst [smem:[#allocation36_spill]] %s5477_s7 }
   0x9   :  { %5519 = sst [smem:[#allocation37_spill]] %s5478_s8 }
   0xa   :  { %5520 = sst [smem:[#allocation38_spill]] %s5479_s9 }
   0xb   :  { %5521 = sst [smem:[#allocation39_spill]] %s5480_s10 }
   0xc   :  { %5522 = sst [smem:[#allocation40_spill]] %s5482_s12 }
   0xd   :  { %5523 = sst [smem:[#allocation41_spill]] %s5484_s14 }
   0xe   :  { %5524 = sst [smem:[#allocation42_spill]] %s5485_s15 }
   0xf   :  { %5525 = sst [smem:[#allocation43_spill]] %s5491_s21 }
  0x10   :  { %31 = vsyncpa [#allocation7], 0 }
  0x11   :  { %32 = vsyncpa [#allocation9], 0 }
  0x12   :  { %33 = vsyncpa [#allocation12], 0 }
  0x13   :  { %34 = vsyncpa [#allocation15], 0 }
  0x14   :  { %35 = vsyncpa [#allocation18], 0 }
  0x15   :  { %36 = vsyncpa [#allocation21], 0  ;;  %s4877_s29 = smov 0   ;;  %s4879_s2 = smov 0  }
  0x16   :  { %s4881_s6 = smov 0  }
  0x17 LB: > { %5526 = sst [smem:[#allocation28_spill]] %s4729_s6  ;;  %s4731_s30 = smov [#allocation8]   ;;  %s4729_s6 = sphi %s4881_s6, %s42_s6   ;;  %s4725_s2 = sphi %s4879_s2, %s5555_s2   ;;  %s4721_s29 = sphi %s4877_s29, %s5554_s29  }
  0x18   : > { %s692_s7 = sshll.u32 %s4731_s30, 4  ;;  %s3598_s3 = sadd.s32 4294967295, %s4729_s6   ;;  %s693_s7 = int_to_ptr.vmem [resolvable:$true] %s692_s7 }
  0x19   : > { %p3600_p0 = scmp.ge.s32.totalorder %s4729_s6, 1  ;;  %p638_p1 = scmp.lt.s32.totalorder %s4729_s6, 3 }
  0x1a   : > { %p4895_p2 = scmp.eq.s32.totalorder %s3598_s3, 0  ;;  %s4732_s8 = smov [#allocation11]  }
  0x1b   : > { %p4899_p3 = pnand %p3600_p0, %p638_p1  ;;  %s724_s27 = sshll.u32 %s4732_s8, 4  ;;  %s4905_s27 = int_to_ptr.vmem [resolvable:$true] %s724_s27 }
  0x1c   : > { %s5527_s26 = scalar_select %p4895_p2, 1, 0 }
  0x1d   : > { %s5528_s1 = scalar_select %p4899_p3, 1, 0 }
  0x1e   : > { %p4218_p4 = pneg %p4899_p3  ;;  %s4733_s28 = smov [#allocation14]  }
  0x1f   : > { %s753_s9 = sshll.u32 %s4733_s28, 4  ;;  %s4434_s0 = scalar_lea.vmem %s693_s7, 64  ;;  %s754_s9 = int_to_ptr.vmem [resolvable:$true] %s753_s9 }
  0x20   : > { %p4909_p5 = pnand %p4895_p2, %p4218_p4  ;;  %p4435_p7 = scmp.ne.s32.totalorder %s693_s7, %s4434_s0 }
  0x21   : > { %p4442_p10 = scmp.lt.s32.totalorder %s693_s7, %s693_s7  ;;  %p4443_p11 = scmp.lt.s32.totalorder %s4434_s0, %s4434_s0 }
  0x22   : > { %p4915_p6 = pneg %p4909_p5 }
  0x23   : > { %p4444_p12 = por %p4443_p11, %p4442_p10 }
  0x24   : > { %p4437_p8 = pnand %p4435_p7, %p4915_p6 }
  0x26   : > { %p4438_p9 = pneg %p4437_p8 }
  0x28   : > { %p4445_p13 = pnand %p4444_p12, %p4438_p9 }
  0x2a   : > { %4448 = shalt.err (!%p4445_p13)
}
  0x2b   : > { %s5506_s30 = smov 16   ;;  %s5507_s3 = smov 1  }
  0x2c   : > { %s5531_s10 = sld [smem:[#allocation39_spill]]  ;;  %s4460_s6 = scalar_lea.vmem %s4905_s27, 64 }
  0x2d   : > { %p4461_p0 = scmp.ne.s32.totalorder %s4905_s27, %s4460_s6  ;;  %p4468_p7 = scmp.lt.s32.totalorder %s4905_s27, %s4905_s27 }
  0x2e   : > { %p4469_p8 = scmp.lt.s32.totalorder %s4460_s6, %s4460_s6 }
  0x2f   : > { %p4463_p1 = pnand %p4461_p0, %p4915_p6 }
  0x30   : > { %p4470_p9 = por %p4469_p8, %p4468_p7 }
  0x31   : > { %p4464_p4 = pneg %p4463_p1 }
  0x32   : > { %4224 = dma.hbm_to_vmem [thread:$0]  (!%p4909_p5), %s5531_s10, 64, %s693_s7, [#allocation9], %s5506_s30, %s5506_s30, %s5507_s3  }
  0x33   : > { %p4471_p10 = pnand %p4470_p9, %p4464_p4 }
  0x35   : > { %4474 = shalt.err (!%p4471_p10)
}
  0x36   : > { %s5532_s14 = sld [smem:[#allocation41_spill]]  ;;  %s4736_s7 = smov [#allocation17]  }
  0x37   : > { %s777_s28 = sshll.u32 %s4736_s7, 4  ;;  %s4486_s10 = scalar_lea.vmem %s754_s9, 256  ;;  %s778_s28 = int_to_ptr.vmem [resolvable:$true] %s777_s28 }
  0x38   : > { %p4487_p11 = scmp.ne.s32.totalorder %s754_s9, %s4486_s10  ;;  %p4494_p0 = scmp.lt.s32.totalorder %s754_s9, %s754_s9 }
  0x39   : > { %p4495_p1 = scmp.lt.s32.totalorder %s4486_s10, %s4486_s10 }
  0x3a   : > { %p4489_p12 = pnand %p4487_p11, %p4915_p6 }
  0x3b   : > { %p4496_p4 = por %p4495_p1, %p4494_p0 }
  0x3c   : > { %4230 = dma.hbm_to_vmem [thread:$0]  (!%p4909_p5), %s5532_s14, 64, %s4905_s27, [#allocation12], %s5506_s30, %s5506_s30, %s5507_s3  }
  0x3d   : > { %p4490_p13 = pneg %p4489_p12 }
  0x3f   : > { %p4497_p7 = pnand %p4496_p4, %p4490_p13 }
  0x41   : > { %4500 = shalt.err (!%p4497_p7)
}
  0x42   : > { %s4737_s6 = smov 64   ;;  %s4738_s21 = smov 4  }
  0x43   : > { %4236 = dma.hbm_to_vmem [thread:$0]  (!%p4909_p5), %s5487_s17, 256, %s754_s9, [#allocation15], %s4737_s6, %s4737_s6, %s4738_s21  }
  0x44   : > { %s4512_s8 = scalar_lea.vmem %s778_s28, 256  ;;  %p4520_p11 = scmp.lt.s32.totalorder %s778_s28, %s778_s28 }
  0x45   : > { %p4513_p8 = scmp.ne.s32.totalorder %s778_s28, %s4512_s8  ;;  %p4521_p12 = scmp.lt.s32.totalorder %s4512_s8, %s4512_s8 }
  0x47   : > { %p4515_p9 = pnand %p4513_p8, %p4915_p6  ;;  %p4522_p13 = por %p4521_p12, %p4520_p11 }
  0x49   : > { %p4516_p10 = pneg %p4515_p9 }
  0x4b   : > { %p4523_p0 = pnand %p4522_p13, %p4516_p10 }
  0x4d   : > { %4526 = shalt.err (!%p4523_p0)
}
  0x4e   : > { %4242 = dma.hbm_to_vmem [thread:$0]  (!%p4909_p5), %s5489_s19, 256, %s778_s28, [#allocation18], %s4737_s6, %s4737_s6, %s4738_s21  }
  0x4f   : > { %s51_s9 = sadd.s32 1, %s4725_s2  ;;  %s4739_s27 = smov [#allocation6]  }
  0x50   : > { %s673_s0 = sshll.u32 %s4739_s27, 4  ;;  %p52_p1 = scmp.ge.s32.totalorder %s51_s9, 2  ;;  %s674_s0 = int_to_ptr.vmem [resolvable:$true] %s673_s0 }
  0x51   : > { %s4538_s8 = scalar_lea.vmem %s674_s0, 256  ;;  %p4546_p9 = scmp.lt.s32.totalorder %s674_s0, %s674_s0 }
  0x52   : > { %p4539_p4 = scmp.ne.s32.totalorder %s674_s0, %s4538_s8  ;;  %p4547_p10 = scmp.lt.s32.totalorder %s4538_s8, %s4538_s8 }
  0x54   : > { %p4541_p7 = pnand %p4539_p4, %p4915_p6  ;;  %p4548_p11 = por %p4547_p10, %p4546_p9 }
  0x56   : > { %p4542_p8 = pneg %p4541_p7 }
  0x58   : > { %p4549_p12 = pnand %p4548_p11, %p4542_p8 }
  0x5a   : > { %4552 = shalt.err (!%p4549_p12)
}
  0x5b   : > { %s5533_s7 = sld [smem:[#allocation36_spill]]  ;;  %s5557_s9 = smov (%p52_p1, %s51_s9), 0 }
  0x5c   : > { %s4740_s27 = smov [#allocation10]   ;;  %s4741_s3 = smov [#allocation13]  }
  0x5d   : > { %s708_s30 = sshll.u32 %s4740_s27, 4  ;;  %s737_s14 = sshll.u32 %s4741_s3, 4  ;;  %s709_s30 = int_to_ptr.vmem [resolvable:$true] %s708_s30  ;;  %s738_s14 = int_to_ptr.vmem [resolvable:$true] %s737_s14 }
  0x5e   : > { %s4564_s8 = scalar_lea.vmem %s709_s30, 64  ;;  %p4572_p7 = scmp.lt.s32.totalorder %s709_s30, %s709_s30 }
  0x5f   : > { %p4565_p13 = scmp.ne.s32.totalorder %s709_s30, %s4564_s8  ;;  %p4573_p8 = scmp.lt.s32.totalorder %s4564_s8, %s4564_s8 }
  0x61   : > { %4221 = dma.hbm_to_vmem [thread:$0]  (!%p4909_p5), %s5533_s7, 256, %s674_s0, [#allocation7], %s4737_s6, %s4737_s6, %s4738_s21  }
  0x62   : > { %p4567_p0 = pnand %p4565_p13, %p4915_p6  ;;  %p4574_p9 = por %p4573_p8, %p4572_p7 }
  0x64   : > { %p4568_p4 = pneg %p4567_p0 }
  0x66   : > { %p4575_p10 = pnand %p4574_p9, %p4568_p4 }
  0x68   : > { %4578 = shalt.err (!%p4575_p10)
}
  0x69   : > { %s5534_s0 = smov 1   ;;  %s5535_s28 = smov 16  }
  0x6a   : > { %s5536_s12 = sld [smem:[#allocation40_spill]]  ;;  %s4590_s3 = scalar_lea.vmem %s738_s14, 256 }
  0x6b   : > { %p4591_p1 = scmp.ne.s32.totalorder %s738_s14, %s4590_s3  ;;  %p4598_p13 = scmp.lt.s32.totalorder %s738_s14, %s738_s14 }
  0x6c   : > { %p4599_p0 = scmp.lt.s32.totalorder %s4590_s3, %s4590_s3 }
  0x6d   : > { %p4593_p11 = pnand %p4591_p1, %p4915_p6 }
  0x6e   : > { %p4600_p7 = por %p4599_p0, %p4598_p13 }
  0x6f   : > { %p4594_p12 = pneg %p4593_p11 }
  0x70   : > { %4227 = dma.hbm_to_vmem [thread:$0]  (!%p4909_p5), %s5536_s12, 64, %s709_s30, [#allocation9], %s5535_s28, %s5535_s28, %s5534_s0  }
  0x71   : > { %p4601_p4 = pnand %p4600_p7, %p4594_p12 }
  0x73   : > { %4604 = shalt.err (!%p4601_p4)
}
  0x74   : > { %s5537_s15 = sld [smem:[#allocation42_spill]]  ;;  %s4742_s30 = smov [#allocation16]  }
  0x75   : > { %s767_s0 = sshll.u32 %s4742_s30, 4  ;;  %s4743_s28 = smov [#allocation19]   ;;  %s768_s0 = int_to_ptr.vmem [resolvable:$true] %s767_s0 }
  0x76   : > { %s791_s10 = sshll.u32 %s4743_s28, 4  ;;  %s4616_s7 = scalar_lea.vmem %s768_s0, 16  ;;  %s792_s10 = int_to_ptr.vmem [resolvable:$true] %s791_s10 }
  0x77   : > { %p4617_p8 = scmp.ne.s32.totalorder %s768_s0, %s4616_s7  ;;  %s4623_s3 = scalar_lea.vmem %s768_s0, 32 }
  0x78   : > { %p4624_p1 = scmp.lt.s32.totalorder %s768_s0, %s768_s0  ;;  %p4625_p11 = scmp.lt.s32.totalorder %s4623_s3, %s4616_s7 }
  0x79   : > { %p4619_p9 = pnand %p4617_p8, %p4915_p6 }
  0x7a   : > { %4233 = dma.hbm_to_vmem [thread:$0]  (!%p4909_p5), %s5537_s15, 256, %s738_s14, [#allocation12], %s4737_s6, %s4737_s6, %s4738_s21  }
  0x7b   : > { %p4620_p10 = pneg %p4619_p9  ;;  %p4626_p12 = por %p4625_p11, %p4624_p1 }
  0x7d   : > { %p4627_p13 = pnand %p4626_p12, %p4620_p10 }
  0x7f   : > { %4630 = shalt.err (!%p4627_p13)
}
  0x80   : > { %4239 = dma.hbm_to_vmem [thread:$0]  (!%p4909_p5), %s5488_s18, 16, %s768_s0, [#allocation15]  }
  0x81   : > { %s4642_s6 = scalar_lea.vmem %s792_s10, 16  ;;  %s4649_s27 = scalar_lea.vmem %s792_s10, 32 }
  0x82   : > { %p4643_p0 = scmp.ne.s32.totalorder %s792_s10, %s4642_s6  ;;  %p4650_p8 = scmp.lt.s32.totalorder %s792_s10, %s792_s10 }
  0x83   : > { %p4651_p9 = scmp.lt.s32.totalorder %s4649_s27, %s4642_s6 }
  0x84   : > { %p4645_p7 = pnand %p4643_p0, %p4915_p6 }
  0x85   : > { %p4652_p2 = por %p4651_p9, %p4650_p8 }
  0x86   : > { %p4646_p4 = pneg %p4645_p7 }
  0x88   : > { %p4653_p3 = pnand %p4652_p2, %p4646_p4 }
  0x8a   : > { %4656 = shalt.err (!%p4653_p3)
}
  0x8b   : > { %4245 = dma.hbm_to_vmem [thread:$0]  (!%p4909_p5), %s5490_s20, 16, %s792_s10, [#allocation18]  }
  0x8c   : > { %s4744_s28 = smov [#allocation20]  }
  0x8d   : > { %s805_s0 = sshll.u32 %s4744_s28, 4  ;;  %s806_s0 = int_to_ptr.vmem [resolvable:$true] %s805_s0 }
  0x8e   : > { %s4668_s7 = scalar_lea.vmem %s806_s0, 16  ;;  %s4675_s3 = scalar_lea.vmem %s806_s0, 32 }
  0x8f   : > { %p4669_p10 = scmp.ne.s32.totalorder %s806_s0, %s4668_s7  ;;  %p4676_p12 = scmp.lt.s32.totalorder %s806_s0, %s806_s0 }
  0x90   : > { %p4677_p13 = scmp.lt.s32.totalorder %s4675_s3, %s4668_s7 }
  0x91   : > { %p4671_p1 = pnand %p4669_p10, %p4915_p6 }
  0x92   : > { %p4678_p2 = por %p4677_p13, %p4676_p12 }
  0x93   : > { %p4672_p11 = pneg %p4671_p1 }
  0x95   : > { %p4679_p3 = pnand %p4678_p2, %p4672_p11 }
  0x97   : > { %4682 = shalt.err (!%p4679_p3)
}
  0x98   : > { %4248 = dma.hbm_to_vmem [thread:$0]  (!%p4909_p5), %s5492_s22, 16, %s806_s0, [#allocation21]  }
  0x99   : > { %p5538_p0 = scmp.ne.s32.totalorder %s5528_s1, 0 }
  0x9a   : > { %p5539_p7 = scmp.ne.s32.totalorder (!%p5538_p0), %s5527_s26, 0 }
  0x9b   : > { %829 = sbr.rel (%p5538_p0) target bundleno = 3659 (0xe4b), region = 112 }
  0xa0   : > { %4696 = dma.done.wait (%p5539_p7), [#allocation7], 256  }
  0xa1   : > { %4698 = vsyncadd (%p5539_p7), [#allocation7], 4294967040 }
  0xa2   : > { %4700 = dma.done.wait (%p5539_p7), [#allocation9], 128  }
  0xa3   : > { %4702 = vsyncadd (%p5539_p7), [#allocation9], 4294967168 }
  0xa4   : > { %4704 = dma.done.wait (%p5539_p7), [#allocation12], 320  }
  0xa5   : > { %4706 = vsyncadd (%p5539_p7), [#allocation12], 4294966976 }
  0xa6   : > { %4708 = dma.done.wait (%p5539_p7), [#allocation15], 272  }
  0xa7   : > { %4710 = vsyncadd (%p5539_p7), [#allocation15], 4294967024 }
  0xa8   : > { %4712 = dma.done.wait (%p5539_p7), [#allocation18], 272  }
  0xa9   : > { %4714 = vsyncadd (%p5539_p7), [#allocation18], 4294967024 }
  0xaa   : > { %4716 = dma.done.wait (%p5539_p7), [#allocation21], 16  }
  0xab   : > { %4718 = vsyncadd (%p5539_p7), [#allocation21], 4294967280  ;;  %p967_p5 = scmp.lt.s32.totalorder %s4721_s29, 1  ;;  %s5540_s27 = sld [smem:[#allocation31_spill]] }
  0xac   : > { %p3628_p6 = scmp.ne.s32.totalorder %s4721_s29, 0 }
  0xad   : > { %s5046_s1 = scalar_select %p967_p5, %s4721_s29, 1 }
  0xae   : > { %1001 = sbr.rel (%p3628_p6) target bundleno = 412 (0x19c), region = 156  ;;  %s5541_s6 = sld [smem:[#allocation33_spill]] (!%p3628_p6) }
  0xaf   : > { %s3624_s4 = sshll.u32 %s5046_s1, 3  ;;  %s3812_s5 = sshll.u32 %s5046_s1, 5 }
  0xb0   : > { %s5058_s26 = scalar_lea.vmem %s5493_s23, %s3812_s5  ;;  %s3627_s0 = sshll.u32 %s5046_s1, 2 }
  0xb1   : > { %s5053_s8 = scalar_lea.vmem %s5540_s27, %s3624_s4  ;;  %s5068_s15 = scalar_lea.vmem %s5494_s24, %s3627_s0 }
  0xb2   : > { %s5543_s3 = sld [smem:[#allocation29_spill]] (!%p3628_p6) }
  0xb3   : > { %s5544_s14 = sld [smem:[#allocation30_spill]]  ;;  %vm1026_vm0 = vcmask 261120   ;;  %vm1164_vm1 = vcmask 257024  }
  0xb4   : > { %s5542_s27 = smov %s5541_s6  ;;  %v4309_v0 = vld [vmem:[%s5541_s6 + $0x8] sm:$0xff]   ;;  %s5545_s7 = sld [smem:[#allocation34_spill]] }
  0xb5   : > { %v4310_v1 = vld [vmem:[%s5542_s27] sm:$0xff]   ;;  %3940 = vmatprep.subr.bf16.mxu0 %v4309_v0  ;;  %4172 = vmatprep.subr.bf16.mxu1 %v4309_v0  ;;  %s5546_s29 = sld [smem:[#allocation35_spill]] }
  0xb6   : > { %3941 = vmatpush3.bf16.msra.mxu0 %v4309_v0  ;;  %4174 = vmatpush3.bf16.msra.mxu1 %v4309_v0 }
  0xb7   : > { %3942 = vmatprep.subr.bf16.mxu0 %v4310_v1  ;;  %4173 = vmatprep.subr.bf16.mxu1 %v4310_v1 }
  0xb8   : > { %v1002_v2 = vld [vmem:[%s5543_s3] sm:$0xff]  ;;  %v1003_v3 = vld [vmem:[%s5543_s3 + $0x8] sm:$0xff]  ;;  %v1004_v12 = vld [vmem:[%s5543_s3 + $0x10] sm:$0xff] }
  0xb9   : > { %v1010_v4 = vld [vmem:[%s5544_s14] sm:$0xff]  ;;  %v1011_v5 = vld [vmem:[%s5544_s14 + $0x8] sm:$0xff]  ;;  %v1005_v15 = vld [vmem:[%s5543_s3 + $0x18] sm:$0xff] }
  0xba   : > { %v1018_v6 = vadd.f32 %v1010_v4, %v1002_v2  ;;  %v1006_v7 = vld [vmem:[%s5543_s3 + $0x20] sm:$0xff]  ;;  %v1007_v8 = vld [vmem:[%s5543_s3 + $0x28] sm:$0xff]  ;;  %v1019_v9 = vadd.f32 %v1011_v5, %v1003_v3  ;;  %v1012_v16 = vld [vmem:[%s5544_s14 + $0x10] sm:$0xff]  ;;  %3943 = vmatpush3.bf16.msra.mxu0 %v4310_v1  ;;  %4175 = vmatpush3.bf16.msra.mxu1 %v4310_v1 }
  0xbb   : > { %v1014_v10 = vld [vmem:[%s5544_s14 + $0x20] sm:$0xff]  ;;  %v1015_v11 = vld [vmem:[%s5544_s14 + $0x28] sm:$0xff]  ;;  %v1013_v17 = vld [vmem:[%s5544_s14 + $0x18] sm:$0xff]  ;;  %v1020_v19 = vadd.f32 %v1012_v16, %v1004_v12  ;;  %s5547_s21 = smov %s5546_s29 }
  0xbc   : > { %1027 = vst.msk [vmem:[#allocation2] sm:$0xff] %vm1026_vm0, %v1018_v6  ;;  %v1022_v13 = vadd.f32 %v1014_v10, %v1006_v7  ;;  %v1023_v14 = vadd.f32 %v1015_v11, %v1007_v8  ;;  %1028 = vst.msk [vmem:[#allocation2 + $0x8] sm:$0xff] %vm1026_vm0, %v1019_v9  ;;  %v1035_v18 = vpack.c.bf16 %v1019_v9, %v1018_v6  ;;  %v1008_v21 = vld [vmem:[%s5543_s3 + $0x30] sm:$0xff]  ;;  %v1009_v22 = vld [vmem:[%s5543_s3 + $0x38] sm:$0xff] }
  0xbd   : > { %v1021_v20 = vadd.f32 %v1013_v17, %v1005_v15  ;;  %v1016_v23 = vld [vmem:[%s5544_s14 + $0x30] sm:$0xff]  ;;  %v1017_v25 = vld [vmem:[%s5544_s14 + $0x38] sm:$0xff]  ;;  %1029 = vst.msk [vmem:[#allocation2 + $0x10] sm:$0xff] %vm1026_vm0, %v1020_v19  ;;  %v4311_v29 = vld [vmem:[%s5545_s7 + $0x8] sm:$0xff]  }
  0xbe   : > { %1031 = vst.msk [vmem:[#allocation2 + $0x20] sm:$0xff] %vm1026_vm0, %v1022_v13  ;;  %1032 = vst.msk [vmem:[#allocation2 + $0x28] sm:$0xff] %vm1026_vm0, %v1023_v14  ;;  %v1037_v24 = vpack.c.bf16 %v1023_v14, %v1022_v13  ;;  %v1024_v26 = vadd.f32 %v1016_v23, %v1008_v21  ;;  %3944 = vmatprep.mubr.msk.bf16.mxu0 %vm1026_vm0, %v1035_v18  ;;  %v1025_v28 = vadd.f32 %v1017_v25, %v1009_v22  ;;  %v4312_v30 = vld [vmem:[%s5546_s29 + $0x8] sm:$0xff]   ;;  %v4313_v32 = vld [vmem:[%s5545_s7] sm:$0xff]  }
  0xbf   : > { %1030 = vst.msk [vmem:[#allocation2 + $0x18] sm:$0xff] %vm1026_vm0, %v1021_v20  ;;  %v1036_v27 = vpack.c.bf16 %v1021_v20, %v1020_v19  ;;  %3952 = vmatprep.subr.bf16.mxu1 %v4311_v29  ;;  %3964 = vmatprep.subr.bf16.mxu0 %v4312_v30  ;;  %v4314_v33 = vld [vmem:[%s5547_s21] sm:$0xff]  }
  0xc0   : > { %3948 = vmatprep.mubr.msk.bf16.mxu1 %vm1026_vm0, %v1037_v24  ;;  %1033 = vst.msk [vmem:[#allocation2 + $0x30] sm:$0xff] %vm1026_vm0, %v1024_v26  ;;  %1034 = vst.msk [vmem:[#allocation2 + $0x38] sm:$0xff] %vm1026_vm0, %v1025_v28  ;;  %v1038_v31 = vpack.c.bf16 %v1025_v28, %v1024_v26 }
  0xc1   : > { %3945 = vmatmul.mubr.msk.bf16.vlgmr.msra.gmra.mxu0 %vm1026_vm0, %v1036_v27 }
  0xc2   : > { %3968 = vmatprep.mubr.msk.bf16.mxu0 %vm1026_vm0, %v1035_v18  ;;  %3949 = vmatmul.mubr.msk.bf16.vlgmr.msra.gmra.mxu1 %vm1026_vm0, %v1038_v31 }
  0xc3   : > { %3965 = vmatpush3.bf16.msra.mxu0 %v4312_v30  ;;  %3953 = vmatpush3.bf16.msra.mxu1 %v4311_v29 }
  0xc4   : > { %3966 = vmatprep.subr.bf16.mxu0 %v4314_v33  ;;  %3954 = vmatprep.subr.bf16.mxu1 %v4313_v32 }
  0xc5   : > { %3956 = vmatprep.mubr.msk.bf16.mxu1 %vm1026_vm0, %v1035_v18 }
  0xc7   : > { %3967 = vmatpush3.bf16.msra.mxu0 %v4314_v33  ;;  %3955 = vmatpush3.bf16.msra.mxu1 %v4313_v32 }
  0xca   : > { %3969 = vmatmul.mubr.msk.bf16.vlgmr.msra.gmra.mxu0 %vm1026_vm0, %v1036_v27  ;;  %3957 = vmatmul.mubr.msk.bf16.vlgmr.msra.gmra.mxu1 %vm1026_vm0, %v1036_v27 }
  0xcb   : > { %3972 = vmatprep.mubr.msk.bf16.mxu0 %vm1026_vm0, %v1037_v24  ;;  %3960 = vmatprep.mubr.msk.bf16.mxu1 %vm1026_vm0, %v1037_v24 }
  0xd2   : > { %3973 = vmatmul.mubr.msk.bf16.gmra.mxu0 %vm1026_vm0, %v1038_v31  ;;  %3961 = vmatmul.mubr.msk.bf16.gmra.mxu1 %vm1026_vm0, %v1038_v31 }
 0x181   : > { %v3946_v34 = vpop.f32.mrf.mxu0 }
 0x182   : > { %v3815_v35 = vpack.c.bf16 %v3946_v34, %v3946_v34  ;;  %v3950_v36 = vpop.f32.mrf.mxu1 }
 0x183   : > { %v1101_v37 = vpop.f32.mrf.mxu0  ;;  %v3819_v38 = vpack.c.bf16 %v3950_v36, %v3950_v36 }
 0x184   : > { %1167 = vst.msk [vmem:[#allocation3 + $0x8] sm:$0xf] %vm1164_vm1, %v3815_v35  ;;  %v3813_v39 = vpack.c.bf16 %v1101_v37, %v1101_v37  ;;  %v1117_v40 = vpop.f32.mrf.mxu1 }
 0x185   : > { %v3947_v41 = vpop.f32.mrf.mxu0  ;;  %1171 = vst.msk [vmem:[#allocation3 + $0x18] sm:$0xf] %vm1164_vm1, %v3819_v38  ;;  %v3817_v42 = vpack.c.bf16 %v1117_v40, %v1117_v40 }
 0x186   : > { %1165 = vst.msk [vmem:[#allocation3] sm:$0xf] %vm1164_vm1, %v3813_v39  ;;  %v3816_v43 = vpack.c.bf16 %v3947_v41, %v3947_v41  ;;  %v3951_v44 = vpop.f32.mrf.mxu1 }
 0x187   : > { %v1104_v45 = vpop.f32.mrf.mxu0  ;;  %1169 = vst.msk [vmem:[#allocation3 + $0x10] sm:$0xf] %vm1164_vm1, %v3817_v42  ;;  %v3820_v46 = vpack.c.bf16 %v3951_v44, %v3951_v44 }
 0x188   : > { %1168 = vst.msk [vmem:[#allocation3 + $0xc] sm:$0xf] %vm1164_vm1, %v3816_v43  ;;  %v3814_v47 = vpack.c.bf16 %v1104_v45, %v1104_v45  ;;  %v1120_v48 = vpop.f32.mrf.mxu1 }
 0x189   : > { %1172 = vst.msk [vmem:[#allocation3 + $0x1c] sm:$0xf] %vm1164_vm1, %v3820_v46  ;;  %v3818_v49 = vpack.c.bf16 %v1120_v48, %v1120_v48 }
 0x18a   : > { %1166 = vst.msk [vmem:[#allocation3 + $0x4] sm:$0xf] %vm1164_vm1, %v3814_v47  ;;  %v3970_v50 = vpop.f32.mrf.mxu0  ;;  %v3958_v51 = vpop.f32.mrf.mxu1 }
 0x18b   : > { %v3831_v52 = vpack.c.bf16 %v3970_v50, %v3970_v50  ;;  %1170 = vst.msk [vmem:[#allocation3 + $0x14] sm:$0xf] %vm1164_vm1, %v3818_v49  ;;  %v3823_v53 = vpack.c.bf16 %v3958_v51, %v3958_v51 }
 0x18c   : > { %v1344_v54 = vpop.f32.mrf.mxu0  ;;  %v1223_v55 = vpop.f32.mrf.mxu1 }
 0x18d   : > { %1409 = vst.msk [vmem:[#allocation5 + $0x8] sm:$0xf] %vm1164_vm1, %v3831_v52  ;;  %v3829_v56 = vpack.c.bf16 %v1344_v54, %v1344_v54  ;;  %1288 = vst.msk [vmem:[#allocation4 + $0x8] sm:$0xf] %vm1164_vm1, %v3823_v53  ;;  %v3821_v57 = vpack.c.bf16 %v1223_v55, %v1223_v55 }
 0x18e   : > { %v3971_v58 = vpop.f32.mrf.mxu0  ;;  %v3959_v59 = vpop.f32.mrf.mxu1 }
 0x18f   : > { %1407 = vst.msk [vmem:[#allocation5] sm:$0xf] %vm1164_vm1, %v3829_v56  ;;  %v3832_v60 = vpack.c.bf16 %v3971_v58, %v3971_v58  ;;  %1286 = vst.msk [vmem:[#allocation4] sm:$0xf] %vm1164_vm1, %v3821_v57  ;;  %v3824_v61 = vpack.c.bf16 %v3959_v59, %v3959_v59 }
 0x190   : > { %v1347_v62 = vpop.f32.mrf.mxu0  ;;  %v1226_v63 = vpop.f32.mrf.mxu1 }
 0x191   : > { %1410 = vst.msk [vmem:[#allocation5 + $0xc] sm:$0xf] %vm1164_vm1, %v3832_v60  ;;  %v3830_v0 = vpack.c.bf16 %v1347_v62, %v1347_v62  ;;  %1289 = vst.msk [vmem:[#allocation4 + $0xc] sm:$0xf] %vm1164_vm1, %v3824_v61  ;;  %v3822_v1 = vpack.c.bf16 %v1226_v63, %v1226_v63 }
 0x192   : > { %v3974_v2 = vpop.f32.mrf.mxu0  ;;  %v3962_v3 = vpop.f32.mrf.mxu1 }
 0x193   : > { %1408 = vst.msk [vmem:[#allocation5 + $0x4] sm:$0xf] %vm1164_vm1, %v3830_v0  ;;  %v3835_v4 = vpack.c.bf16 %v3974_v2, %v3974_v2  ;;  %1287 = vst.msk [vmem:[#allocation4 + $0x4] sm:$0xf] %vm1164_vm1, %v3822_v1  ;;  %v3827_v5 = vpack.c.bf16 %v3962_v3, %v3962_v3 }
 0x194   : > { %v1360_v6 = vpop.f32.mrf.mxu0  ;;  %v1239_v7 = vpop.f32.mrf.mxu1 }
 0x195   : > { %1413 = vst.msk [vmem:[#allocation5 + $0x18] sm:$0xf] %vm1164_vm1, %v3835_v4  ;;  %v3833_v8 = vpack.c.bf16 %v1360_v6, %v1360_v6  ;;  %1292 = vst.msk [vmem:[#allocation4 + $0x18] sm:$0xf] %vm1164_vm1, %v3827_v5  ;;  %v3825_v9 = vpack.c.bf16 %v1239_v7, %v1239_v7 }
 0x196   : > { %v3975_v10 = vpop.f32.mrf.mxu0  ;;  %v3963_v11 = vpop.f32.mrf.mxu1 }
 0x197   : > { %1411 = vst.msk [vmem:[#allocation5 + $0x10] sm:$0xf] %vm1164_vm1, %v3833_v8  ;;  %v3836_v12 = vpack.c.bf16 %v3975_v10, %v3975_v10  ;;  %1290 = vst.msk [vmem:[#allocation4 + $0x10] sm:$0xf] %vm1164_vm1, %v3825_v9  ;;  %v3828_v13 = vpack.c.bf16 %v3963_v11, %v3963_v11 }
 0x198   : > { %v1363_v14 = vpop.f32.mrf.mxu0  ;;  %v1242_v15 = vpop.f32.mrf.mxu1 }
 0x199   : > { %1414 = vst.msk [vmem:[#allocation5 + $0x1c] sm:$0xf] %vm1164_vm1, %v3836_v12  ;;  %v3834_v16 = vpack.c.bf16 %v1363_v14, %v1363_v14  ;;  %1293 = vst.msk [vmem:[#allocation4 + $0x1c] sm:$0xf] %vm1164_vm1, %v3828_v13  ;;  %v3826_v17 = vpack.c.bf16 %v1242_v15, %v1242_v15 }
 0x19b   : > { %1412 = vst.msk [vmem:[#allocation5 + $0x14] sm:$0xf] %vm1164_vm1, %v3834_v16  ;;  %1291 = vst.msk [vmem:[#allocation4 + $0x14] sm:$0xf] %vm1164_vm1, %v3826_v17 }
 0x19c PF: > { %s5548_s12 = sld [smem:[#allocation32_spill]]  ;;  %v4745_v19 = vmov 0.0   ;;  %vm4746_vm2 = vmmov 0   ;;  %v5192_v21 = vld [vmem:[%s5053_s8] sm:$0xff]  ;;  %v4317_v22 = vld [vmem:[#allocation3 + $0x18] sm:$0xff]   ;;  %vm1433_vm3 = vcmask 261120  }
 0x19d   : > { %3976 = vmatprep.subr.bf16.mxu0 %v4745_v19  ;;  %3984 = vmatprep.subr.bf16.mxu1 %v4745_v19  ;;  %v4318_v23 = vld [vmem:[#allocation3 + $0x10] sm:$0xff]   ;;  %v1416_v24 = vpack.c.bf16 %v5192_v21, %v5192_v21  ;;  %v1519_v25 = vsel %vm1433_vm3, %v4317_v22, 0  ;;  %v4319_v26 = vld [vmem:[#allocation3 + $0x8] sm:$0xff]   ;;  %v4320_v27 = vld [vmem:[#allocation3] sm:$0xff]   ;;  %vm1562_vm4 = vcmask 523264   ;;  %s5549_s10 = sld [smem:[#allocation37_spill]] }
 0x19e   : > { %3980 = vmatprep.mubr.msk.bf16.mxu0 %vm4746_vm2, %v4745_v19  ;;  %3992 = vmatprep.mubr.msk.bf16.mxu1 %vm4746_vm2, %v4745_v19  ;;  %v1516_v28 = vsel %vm1433_vm3, %v4318_v23, 0  ;;  %v1513_v29 = vsel %vm1433_vm3, %v4319_v26, 0  ;;  %v1510_v30 = vsel %vm1433_vm3, %v4320_v27, 0  ;;  %v4323_v49 = vld [vmem:[#allocation4 + $0x8] sm:$0xff]   ;;  %v4324_v50 = vld [vmem:[#allocation4] sm:$0xff]   ;;  %vm1998_vm5 = vcmask 1043456  }
 0x19f   : > { %3985 = vmatpush3.bf16.xpose.msra.mxu1 %v1519_v25  ;;  %v4325_v54 = vld [vmem:[#allocation6 + $0x8] sm:$0xff]   ;;  %v4326_v56 = vld [vmem:[#allocation6] sm:$0xff]   ;;  %s5550_s0 = sld [smem:[#allocation38_spill]]  ;;  %vm1885_vm6 = vcmask 64512   ;;  %vm2107_vm7 = vcmask 257024   ;;  %vm3006_vm8 = vcmask 1040384  }
 0x1a0   : > { %3986 = vmatprep.subr.bf16.mxu1 %v4745_v19  ;;  %v4321_v47 = vld [vmem:[#allocation4 + $0x18] sm:$0xff]   ;;  %v4329_v1 = vld [vmem:[#allocation5] sm:$0xff]   ;;  %v4330_v8 = vld [vmem:[#allocation5 + $0x8] sm:$0xff]   ;;  %vm3008_vm9 = vcmask 1041408   ;;  %vm3010_vm10 = vcmask 1042432   ;;  %vm3012_vm11 = vcmask 60416  }
 0x1a1   : > { %s5551_s4 = sld [smem:[#allocation43_spill]]  ;;  %vm3305_vm12 = vcmask 24576  }
 0x1a2   : > { %v4315_v18 = vld [vmem:[%s5548_s12 + $0x8] sm:$0xff]   ;;  %v4316_v20 = vld [vmem:[%s5548_s12] sm:$0xff]   ;;  %v4322_v48 = vld [vmem:[#allocation4 + $0x10] sm:$0xff]  }
 0x1a3   : > { %3977 = vmatpush3.bf16.msra.mxu0 %v4315_v18  ;;  %v4327_v60 = vld [vmem:[%s5549_s10 + $0x8] sm:$0xff]   ;;  %v4328_v0 = vld [vmem:[%s5549_s10] sm:$0xff]   ;;  %v4331_v10 = vld [vmem:[#allocation5 + $0x10] sm:$0xff]  }
 0x1a4   : > { %3978 = vmatprep.subr.bf16.mxu0 %v4745_v19  ;;  %v4332_v18 = vld [vmem:[#allocation5 + $0x18] sm:$0xff]  }
 0x1a5   : > { %v4333_v12 = vld [vmem:[%s5550_s0 + $0x8] sm:$0xff]   ;;  %v4334_v16 = vld [vmem:[%s5550_s0] sm:$0xff]  }
 0x1a7   : > { %3979 = vmatpush3.bf16.msra.mxu0 %v4316_v20  ;;  %3987 = vmatpush3.bf16.xpose.msra.mxu1 %v1516_v28 }
 0x1a8   : > { %3996 = vmatprep.subr.bf16.mxu0 %v4745_v19  ;;  %3988 = vmatprep.subr.bf16.mxu1 %v4745_v19 }
 0x1aa   : > { %3981 = vmatmul.mubr.msk.bf16.vlgmr.msra.gmra.mxu0 %vm1433_vm3, %v1416_v24 }
 0x1ab   : > { %4004 = vmatprep.mubr.msk.bf16.mxu0 %vm4746_vm2, %v4745_v19  ;;  %3997 = vmatpush3.bf16.msra.mxu0 %v4321_v47 }
 0x1ac   : > { %3998 = vmatprep.subr.bf16.mxu0 %v4745_v19 }
 0x1af   : > { %3989 = vmatpush3.bf16.xpose.msra.mxu1 %v1513_v29  ;;  %3999 = vmatpush3.bf16.msra.mxu0 %v4322_v48 }
 0x1b0   : > { %3990 = vmatprep.subr.bf16.mxu1 %v4745_v19  ;;  %4000 = vmatprep.subr.bf16.mxu0 %v4745_v19 }
 0x1b3   : > { %4001 = vmatpush3.bf16.msra.mxu0 %v4323_v49 }
 0x1b4   : > { %4002 = vmatprep.subr.bf16.mxu0 %v4745_v19 }
 0x1b7   : > { %3991 = vmatpush3.bf16.xpose.msra.mxu1 %v1510_v30  ;;  %4003 = vmatpush3.bf16.msra.mxu0 %v4324_v50 }
 0x1b8   : > { %4008 = vmatprep.subr.bf16.mxu0 %v4745_v19 }
 0x26a   : > { %v1471_v31 = vpop.f32.mrf.mxu0 }
 0x26b   : > { %v1477_v32 = vpack.c.bf16 %v1471_v31, %v1471_v31 }
 0x26c   : > { %v3982_v33 = vpop.f32.mrf.mxu0 }
 0x26d   : > { %3993 = vmatmul.mubr.msk.bf16.vlgmr.msra.gmra.mxu1 %vm1433_vm3, %v1477_v32 }
 0x26e   : > { %v1474_v34 = vpop.f32.mrf.mxu0  ;;  %4026 = vmatprep.mubr.msk.bf16.mxu1 %vm1433_vm3, %v4329_v1 }
 0x270   : > { %v3983_v35 = vpop.f32.mrf.mxu0 }
 0x32d   : > { %v1555_v36 = vpop.f32.mrf.mxu1 }
 0x32e   : > { %v1561_v37 = vmul.f32 0.17677669, %v1555_v36 }
 0x32f   : > { %v3994_v38 = vpop.f32.mrf.mxu1 }
 0x330   : > { %v1563_v39 = vsel %vm1562_vm4, %v1561_v37, -inf }
 0x331   : > { %1564 = vmax.xlane.f32.xlu0 %v1563_v39  ;;  %v1558_v40 = vpop.f32.mrf.mxu1 }
 0x333   : > { %v3995_v41 = vpop.f32.mrf.mxu1 }
 0x3ba   : > { %v1565_v42 = vpop.xlane.xlu0 %1564 }
 0x3bb   : > { %v1566_v43 = vsub.f32 %v1561_v37, %v1565_v42 }
 0x3bd   : > { %v1567_v44 = vmul.f32 1.442695, %v1566_v43 }
 0x3bf   : > { %4365 = vpow2.f32 %v1567_v44 }
 0x3cc   : > { %v4366_v45 = vpop.eup %4365 }
 0x3cd   : > { %v1569_v46 = vsel %vm1562_vm4, %v4366_v45, 0.0 }
 0x3ce   : > { %1570 = vadd.xlane.f32.xlu0 %v1569_v46 }
 0x457   : > { %v1571_v51 = vpop.xlane.xlu0 %1570 }
 0x458   : > { %4367 = vrcp.f32 %v1571_v51 }
 0x465   : > { %v4368_v52 = vpop.eup %4367 }
 0x466   : > { %v1573_v53 = vmul.f32 %v4368_v52, %v4366_v45 }
 0x468   : > { %v1574_v55 = vpack.c.bf16 %v1573_v53, %v1573_v53 }
 0x46a   : > { %4005 = vmatmul.mubr.msk.bf16.vlgmr.msra.gmra.mxu0 %vm1562_vm4, %v1574_v55 }
 0x46b   : > { %4009 = vmatpush3.bf16.msra.mxu0 %v4325_v54  ;;  %4012 = vmatprep.mubr.msk.bf16.mxu0 %vm4746_vm2, %v4745_v19 }
 0x46c   : > { %4010 = vmatprep.subr.bf16.mxu0 %v4745_v19 }
 0x46f   : > { %4011 = vmatpush3.bf16.msra.mxu0 %v4326_v56 }
 0x470   : > { %4016 = vmatprep.subr.bf16.mxu0 %v4745_v19 }
 0x52a   : > { %v1644_v57 = vpop.f32.mrf.mxu0 }
 0x52b   : > { %v1650_v58 = vadd.f32 %v1644_v57, %v5192_v21 }
 0x52c   : > { %v4006_v59 = vpop.f32.mrf.mxu0 }
 0x52d   : > { %v5226_v61 = vpack.c.bf16 %v1650_v58, %v1650_v58 }
 0x52e   : > { %v1647_v62 = vpop.f32.mrf.mxu0 }
 0x52f   : > { %4013 = vmatmul.mubr.msk.bf16.vlgmr.msra.gmra.mxu0 %vm1433_vm3, %v5226_v61 }
 0x530   : > { %v4007_v63 = vpop.f32.mrf.mxu0  ;;  %4017 = vmatpush3.bf16.msra.mxu0 %v4327_v60  ;;  %4020 = vmatprep.mubr.msk.bf16.mxu0 %vm4746_vm2, %v4745_v19 }
 0x531   : > { %4018 = vmatprep.subr.bf16.mxu0 %v4745_v19 }
 0x534   : > { %4019 = vmatpush3.bf16.msra.mxu0 %v4328_v0 }
 0x537   : > { %4021 = vmatmul.mubr.msk.bf16.vlgmr.msra.gmra.mxu0 %vm1433_vm3, %v5226_v61 }
 0x5ef   : > { %v1705_v2 = vpop.f32.mrf.mxu0 }
 0x5f0   : > { %v1711_v3 = vpack.c.bf16 %v1705_v2, %v1705_v2 }
 0x5f1   : > { %v4014_v4 = vpop.f32.mrf.mxu0 }
 0x5f2   : > { %v1810_v5 = vsel %vm1433_vm3, %v1711_v3, 0  ;;  %4176 = vmatprep.subr.msk.bf16.mxu1 %vm1433_vm3, %v1711_v3 }
 0x5f3   : > { %v1708_v6 = vpop.f32.mrf.mxu0  ;;  %4025 = vmatpush3.bf16.xpose.msra.mxu1 %v1810_v5 }
 0x5f4   : > { %4044 = vmatprep.subr.bf16.mxu1 %v4745_v19 }
 0x5f5   : > { %v4015_v7 = vpop.f32.mrf.mxu0 }
 0x5f7   : > { %v1762_v9 = vpop.f32.mrf.mxu0 }
 0x5f8   : > { %v1768_v11 = vpack.c.bf16 %v1762_v9, %v1762_v9 }
 0x5f9   : > { %v4022_v13 = vpop.f32.mrf.mxu0 }
 0x5fa   : > { %v2000_v14 = vsel %vm1998_vm5, %v1768_v11, 0  ;;  %4027 = vmatmul.mubr.msk.bf16.vlgmr.msra.gmra.mxu1 %vm1433_vm3, %v4330_v8  ;;  %4177 = vmatprep.subr.msk.bf16.mxu0 %vm1998_vm5, %v1768_v11 }
 0x5fb   : > { %v1765_v15 = vpop.f32.mrf.mxu0  ;;  %4035 = vmatpush3.bf16.msra.mxu0 %v2000_v14  ;;  %4030 = vmatprep.mubr.msk.bf16.mxu1 %vm1433_vm3, %v4331_v10 }
 0x5fc   : > { %4045 = vmatpush3.bf16.msra.mxu1 %v4333_v12  ;;  %4052 = vmatprep.subr.bf16.mxu0 %v4745_v19 }
 0x5fd   : > { %v4023_v17 = vpop.f32.mrf.mxu0  ;;  %4046 = vmatprep.subr.bf16.mxu1 %v4745_v19 }
 0x600   : > { %4047 = vmatpush3.bf16.msra.mxu1 %v4334_v16 }
 0x601   : > { %4060 = vmatprep.subr.bf16.mxu1 %v4745_v19 }
 0x602   : > { %4031 = vmatmul.mubr.msk.bf16.gmra.mxu1 %vm1433_vm3, %v4332_v18 }
 0x603   : > { %4048 = vmatprep.mubr.msk.bf16.mxu1 %vm4746_vm2, %v4745_v19 }
 0x60a   : > { %4049 = vmatmul.mubr.msk.bf16.vlgmr.msra.gmra.mxu1 %vm1433_vm3, %v5226_v61 }
 0x60b   : > { %4064 = vmatprep.mubr.msk.bf16.mxu1 %vm4746_vm2, %v4745_v19 }
 0x6ba   : > { %v4028_v20 = vpop.f32.mrf.mxu1 }
 0x6bb   : > { %v1879_v21 = vmul.f32 0.17677669, %v4028_v20 }
 0x6bc   : > { %v1846_v22 = vpop.f32.mrf.mxu1 }
 0x6bd   : > { %v1877_v23 = vmul.f32 0.17677669, %v1846_v22  ;;  %v1892_v24 = vsel %vm1885_vm6, %v1879_v21, -inf }
 0x6be   : > { %1893 = vmax.xlane.f32.xlu0 %v1892_v24  ;;  %v4029_v25 = vpop.f32.mrf.mxu1 }
 0x6bf   : > { %v1886_v26 = vsel %vm1885_vm6, %v1877_v23, -inf  ;;  %v1880_v30 = vmul.f32 0.17677669, %v4029_v25 }
 0x6c0   : > { %1887 = vmax.xlane.f32.xlu1 %v1886_v26  ;;  %v1849_v27 = vpop.f32.mrf.mxu1  ;;  %v3710_v26 = vld [vmem:[#allocation8] ss:$0 sm:$0xff] }
 0x6c1   : > { %v1878_v28 = vmul.f32 0.17677669, %v1849_v27  ;;  %v1895_v36 = vsel %vm1885_vm6, %v1880_v30, -inf }
 0x6c2   : > { %v4032_v29 = vpop.f32.mrf.mxu1 }
 0x6c3   : > { %v1889_v31 = vsel %vm1885_vm6, %v1878_v28, -inf  ;;  %v1883_v35 = vmul.f32 0.17677669, %v4032_v29 }
 0x6c4   : > { %1890 = vmax.xlane.f32.xlu1 %v1889_v31  ;;  %v1862_v32 = vpop.f32.mrf.mxu1 }
 0x6c5   : > { %v1881_v33 = vmul.f32 0.17677669, %v1862_v32  ;;  %v1904_v42 = vsel %vm1885_vm6, %v1883_v35, -inf }
 0x6c6   : > { %v4033_v34 = vpop.f32.mrf.mxu1 }
 0x6c7   : > { %v1898_v37 = vsel %vm1885_vm6, %v1881_v33, -inf  ;;  %v1884_v41 = vmul.f32 0.17677669, %v4033_v34 }
 0x6c8   : > { %1896 = vmax.xlane.f32.xlu1 %v1895_v36  ;;  %1899 = vmax.xlane.f32.xlu0 %v1898_v37  ;;  %v1865_v38 = vpop.f32.mrf.mxu1 }
 0x6c9   : > { %v1882_v39 = vmul.f32 0.17677669, %v1865_v38  ;;  %v1907_v46 = vsel %vm1885_vm6, %v1884_v41, -inf }
 0x6ca   : > { %v5265_v40 = vpop.f32.mrf.mxu1 }
 0x6cb   : > { %v1901_v43 = vsel %vm1885_vm6, %v1882_v39, -inf  ;;  %v2174_v27 = vadd.f32 %v3710_v26, %v5265_v40 }
 0x6cc   : > { %1905 = vmax.xlane.f32.xlu0 %v1904_v42  ;;  %v4050_v44 = vpop.f32.mrf.mxu1  ;;  %1902 = vmax.xlane.f32.xlu1 %v1901_v43 }
 0x6ce   : > { %v2176_v45 = vpop.f32.mrf.mxu1 }
 0x6d0   : > { %v4051_v47 = vpop.f32.mrf.mxu1  ;;  %1908 = vmax.xlane.f32.xlu1 %v1907_v46 }
 0x747   : > { %v1894_v48 = vpop.xlane.xlu0 %1893 }
 0x748   : > { %v1912_v49 = vsub.f32 %v1879_v21, %v1894_v48 }
 0x749   : > { %v1888_v50 = vpop.xlane.xlu1 %1887 }
 0x74a   : > { %v1910_v51 = vsub.f32 %v1877_v23, %v1888_v50  ;;  %v1922_v52 = vmul.f32 1.442695, %v1912_v49  ;;  %v4335_v50 = vld [vmem:[%s5481_s11 + $0x8] sm:$0xff]  }
 0x74c   : > { %v1918_v53 = vmul.f32 1.442695, %v1910_v51 }
 0x74d   : > { %v1891_v54 = vpop.xlane.xlu1 %1890 }
 0x74e   : > { %4369 = vpow2.f32 %v1918_v53  ;;  %v1911_v55 = vsub.f32 %v1878_v28, %v1891_v54  ;;  %v2179_v28 = vmul.f32 %v2174_v27, %v2174_v27 }
 0x74f   : > { %4371 = vpow2.f32 %v1922_v52 }
 0x750   : > { %v1920_v56 = vmul.f32 1.442695, %v1911_v55  ;;  %v2180_v29 = vmul.f32 %v2179_v28, %v2174_v27  ;;  %v4336_v55 = vld [vmem:[%s5481_s11] sm:$0xff]  }
 0x751   : > { %v1897_v57 = vpop.xlane.xlu1 %1896  ;;  %v1900_v58 = vpop.xlane.xlu0 %1899  ;;  %v1982_v28 = vld [vmem:[#allocation2 + $0x20] sm:$0xff] }
 0x752   : > { %4373 = vpow2.f32 %v1920_v56  ;;  %v1913_v59 = vsub.f32 %v1880_v30, %v1897_v57  ;;  %v1914_v60 = vsub.f32 %v1881_v33, %v1900_v58  ;;  %v2181_v31 = vmul.f32 0.044715, %v2180_v29 }
 0x754   : > { %v1924_v62 = vmul.f32 1.442695, %v1913_v59  ;;  %v1926_v63 = vmul.f32 1.442695, %v1914_v60  ;;  %v2182_v34 = vadd.f32 %v2181_v31, %v2174_v27  ;;  %v1985_v31 = vld [vmem:[#allocation2 + $0x38] sm:$0xff] }
 0x755   : > { %v1906_v0 = vpop.xlane.xlu0 %1905  ;;  %v1903_v1 = vpop.xlane.xlu1 %1902 }
 0x756   : > { %4375 = vpow2.f32 %v1924_v62  ;;  %v1916_v2 = vsub.f32 %v1883_v35, %v1906_v0  ;;  %v1915_v3 = vsub.f32 %v1882_v39, %v1903_v1  ;;  %v2183_v37 = vmul.f32 0.7978846, %v2182_v34 }
 0x757   : > { %4377 = vpow2.f32 %v1926_v63 }
 0x758   : > { %v1930_v4 = vmul.f32 1.442695, %v1916_v2  ;;  %v1928_v5 = vmul.f32 1.442695, %v1915_v3 }
 0x759   : > { %v1909_v6 = vpop.xlane.xlu1 %1908 }
 0x75a   : > { %4379 = vpow2.f32 %v1930_v4  ;;  %v1917_v7 = vsub.f32 %v1884_v41, %v1909_v6  ;;  %v4337_v4 = vld [vmem:[%s5550_s0 + $0x18] sm:$0xff]   ;;  %v4338_v6 = vld [vmem:[%s5550_s0 + $0x10] sm:$0xff]  }
 0x75b   : > { %v4370_v8 = vpop.eup %4369  ;;  %4381 = vpow2.f32 %v1928_v5 }
 0x75c   : > { %v1932_v9 = vmul.f32 1.442695, %v1917_v7  ;;  %v1934_v10 = vsel %vm1885_vm6, %v4370_v8, 0.0  ;;  %v4372_v11 = vpop.eup %4371  ;;  %v4339_v7 = vld [vmem:[%s5483_s13 + $0x8] sm:$0xff]  }
 0x75d   : > { %1935 = vadd.xlane.f32.xlu0 %v1934_v10  ;;  %v1940_v13 = vsel %vm1885_vm6, %v4372_v11, 0.0  ;;  %4061 = vmatpush3.bf16.msra.mxu1 %v4339_v7 }
 0x75e   : > { %4383 = vpow2.f32 %v1932_v9  ;;  %4062 = vmatprep.subr.bf16.mxu1 %v4745_v19  ;;  %v1980_v9 = vld [vmem:[#allocation2 + $0x10] sm:$0xff] }
 0x75f   : > { %v4374_v12 = vpop.eup %4373 }
 0x760   : > { %v1937_v14 = vsel %vm1885_vm6, %v4374_v12, 0.0 }
 0x761   : > { %1941 = vadd.xlane.f32.xlu0 %v1940_v13  ;;  %1938 = vadd.xlane.f32.xlu1 %v1937_v14  ;;  %v1981_v14 = vld [vmem:[#allocation2 + $0x18] sm:$0xff] }
 0x763   : > { %v4376_v15 = vpop.eup %4375 }
 0x764   : > { %v4378_v16 = vpop.eup %4377  ;;  %v1943_v17 = vsel %vm1885_vm6, %v4376_v15, 0.0 }
 0x765   : > { %v1946_v18 = vsel %vm1885_vm6, %v4378_v16, 0.0  ;;  %1944 = vadd.xlane.f32.xlu1 %v1943_v17 }
 0x766   : > { %1947 = vadd.xlane.f32.xlu0 %v1946_v18  ;;  %v1979_v18 = vld [vmem:[#allocation2 + $0x8] sm:$0xff] }
 0x767   : > { %v4380_v20 = vpop.eup %4379 }
 0x768   : > { %v4382_v21 = vpop.eup %4381  ;;  %v1952_v22 = vsel %vm1885_vm6, %v4380_v20, 0.0 }
 0x769   : > { %v1949_v23 = vsel %vm1885_vm6, %v4382_v21, 0.0 }
 0x76a   : > { %1953 = vadd.xlane.f32.xlu0 %v1952_v22  ;;  %1950 = vadd.xlane.f32.xlu1 %v1949_v23 }
 0x76b   : > { %v4384_v24 = vpop.eup %4383 }
 0x76c   : > { %v1955_v25 = vsel %vm1885_vm6, %v4384_v24, 0.0 }
 0x76e   : > { %1956 = vadd.xlane.f32.xlu1 %v1955_v25  ;;  %v1984_v25 = vld [vmem:[#allocation2 + $0x30] sm:$0xff] }
 0x7e6   : > { %v1936_v30 = vpop.xlane.xlu0 %1935 }
 0x7e7   : > { %4385 = vrcp.f32 %v1936_v30 }
 0x7ea   : > { %v1942_v32 = vpop.xlane.xlu0 %1941  ;;  %v1939_v33 = vpop.xlane.xlu1 %1938 }
 0x7eb   : > { %4387 = vrcp.f32 %v1939_v33 }
 0x7ec   : > { %4389 = vrcp.f32 %v1942_v32 }
 0x7ee   : > { %v1945_v35 = vpop.xlane.xlu1 %1944 }
 0x7ef   : > { %v1948_v36 = vpop.xlane.xlu0 %1947  ;;  %4391 = vrcp.f32 %v1945_v35  ;;  %v1983_v35 = vld [vmem:[#allocation2 + $0x28] sm:$0xff] }
 0x7f0   : > { %4393 = vrcp.f32 %v1948_v36 }
 0x7f1   : > { %4395 = vtanh.f32 %v2183_v37 }
 0x7f3   : > { %v1954_v38 = vpop.xlane.xlu0 %1953  ;;  %v1951_v39 = vpop.xlane.xlu1 %1950 }
 0x7f4   : > { %4397 = vrcp.f32 %v1951_v39  ;;  %v4386_v40 = vpop.eup %4385  ;;  %v3714_v39 = vld [vmem:[#allocation10] ss:$0 sm:$0xff] }
 0x7f5   : > { %4399 = vrcp.f32 %v1954_v38  ;;  %v1966_v44 = vmul.f32 %v4386_v40, %v4370_v8  ;;  %v4340_v8 = vld [vmem:[%s5483_s13] sm:$0xff]  }
 0x7f6   : > { %4063 = vmatpush3.bf16.msra.mxu1 %v4340_v8 }
 0x7f7   : > { %v1957_v41 = vpop.xlane.xlu1 %1956  ;;  %4076 = vmatprep.subr.bf16.mxu1 %v4745_v19 }
 0x7f8   : > { %4401 = vrcp.f32 %v1957_v41  ;;  %v4388_v42 = vpop.eup %4387 }
 0x7f9   : > { %v4390_v43 = vpop.eup %4389  ;;  %v1967_v45 = vmul.f32 %v4388_v42, %v4374_v12 }
 0x7fa   : > { %v1968_v48 = vmul.f32 %v4390_v43, %v4372_v11  ;;  %v1978_v11 = vld [vmem:[#allocation2] sm:$0xff] }
 0x7fb   : > { %v1974_v47 = vpack.c.bf16 %v1967_v45, %v1966_v44 }
 0x7fc   : > { %v4392_v46 = vpop.eup %4391 }
 0x7fd   : > { %v1969_v49 = vmul.f32 %v4392_v46, %v4376_v15  ;;  %4036 = vmatprep.mubr.msk.bf16.mxu0 %vm1885_vm6, %v1974_v47  ;;  %v4394_v52 = vpop.eup %4393 }
 0x7fe   : > { %v4396_v53 = vpop.eup %4395  ;;  %v1970_v57 = vmul.f32 %v4394_v52, %v4378_v16 }
 0x7ff   : > { %v1975_v51 = vpack.c.bf16 %v1969_v49, %v1968_v48  ;;  %v2185_v59 = vadd.f32 1.0, %v4396_v53 }
 0x801   : > { %4037 = vmatmul.mubr.msk.bf16.vlgmr.msra.gmra.mxu0 %vm1885_vm6, %v1975_v51  ;;  %v4398_v54 = vpop.eup %4397  ;;  %v2186_v1 = vmul.f32 0.5, %v2185_v59 }
 0x802   : > { %4053 = vmatpush3.bf16.msra.mxu0 %v4335_v50  ;;  %v4400_v56 = vpop.eup %4399  ;;  %v1971_v58 = vmul.f32 %v4398_v54, %v4382_v21  ;;  %v3726_v50 = vld [vmem:[#allocation8 + $0x1] ss:$0 sm:$0xff] }
 0x803   : > { %4054 = vmatprep.subr.bf16.mxu0 %v4745_v19  ;;  %v1972_v63 = vmul.f32 %v4400_v56, %v4380_v20  ;;  %v2187_v3 = vmul.f32 %v2186_v1, %v2174_v27 }
 0x804   : > { %v1976_v62 = vpack.c.bf16 %v1971_v58, %v1970_v57 }
 0x805   : > { %v4402_v60 = vpop.eup %4401  ;;  %v2188_v5 = vpack.c.bf16 %v2187_v3, %v2187_v3 }
 0x806   : > { %v1973_v0 = vmul.f32 %v4402_v60, %v4384_v24  ;;  %4055 = vmatpush3.bf16.msra.mxu0 %v4336_v55  ;;  %4040 = vmatprep.mubr.msk.bf16.mxu0 %vm1885_vm6, %v1976_v62 }
 0x807   : > { %4068 = vmatprep.subr.bf16.mxu0 %v4745_v19 }
 0x808   : > { %v1977_v2 = vpack.c.bf16 %v1973_v0, %v1972_v63 }
 0x80a   : > { %4041 = vmatmul.mubr.msk.bf16.gmra.mxu0 %vm1885_vm6, %v1977_v2 }
 0x80b   : > { %4056 = vmatprep.mubr.msk.bf16.mxu0 %vm4746_vm2, %v4745_v19 }
 0x812   : > { %4057 = vmatmul.mubr.msk.bf16.vlgmr.msra.gmra.mxu0 %vm1433_vm3, %v2188_v5  ;;  %v4341_v5 = vld [vmem:[%s5481_s11 + $0x18] sm:$0xff]  }
 0x813   : > { %4069 = vmatpush3.bf16.msra.mxu0 %v4337_v4  ;;  %4072 = vmatprep.mubr.msk.bf16.mxu0 %vm4746_vm2, %v4745_v19 }
 0x814   : > { %4070 = vmatprep.subr.bf16.mxu0 %v4745_v19 }
 0x817   : > { %4071 = vmatpush3.bf16.msra.mxu0 %v4338_v6 }
 0x818   : > { %4084 = vmatprep.subr.bf16.mxu0 %v4745_v19 }
 0x81a   : > { %4073 = vmatmul.mubr.msk.bf16.vlgmr.msra.gmra.mxu0 %vm1433_vm3, %v5226_v61 }
 0x81b   : > { %4088 = vmatprep.mubr.msk.bf16.mxu0 %vm4746_vm2, %v4745_v19 }
 0x8c1   : > { %v4038_v10 = vpop.f32.mrf.mxu0 }
 0x8c2   : > { %v2069_v12 = vadd.f32 %v4038_v10, %v1980_v9  ;;  %v4342_v9 = vld [vmem:[%s5481_s11 + $0x10] sm:$0xff]  }
 0x8c3   : > { %v2036_v13 = vpop.f32.mrf.mxu0 }
 0x8c4   : > { %v3839_v15 = vpack.c.bf16 %v2069_v12, %v2069_v12  ;;  %v2067_v16 = vadd.f32 %v2036_v13, %v1978_v11  ;;  %v4343_v12 = vld [vmem:[%s5550_s0 + $0x28] sm:$0xff]  }
 0x8c5   : > { %v4039_v17 = vpop.f32.mrf.mxu0 }
 0x8c6   : > { %2110 = vst.msk [vmem:[%s5058_s26 + $0x8] sm:$0xf] %vm2107_vm7, %v3839_v15  ;;  %v3837_v20 = vpack.c.bf16 %v2067_v16, %v2067_v16  ;;  %v2070_v21 = vadd.f32 %v4039_v17, %v1981_v14  ;;  %v4344_v14 = vld [vmem:[%s5550_s0 + $0x20] sm:$0xff]   ;;  %v4345_v15 = vld [vmem:[%s5483_s13 + $0x18] sm:$0xff]   ;;  %v4346_v16 = vld [vmem:[%s5483_s13 + $0x10] sm:$0xff]  }
 0x8c7   : > { %v2039_v22 = vpop.f32.mrf.mxu0  ;;  %4085 = vmatpush3.bf16.msra.mxu0 %v4345_v15 }
 0x8c8   : > { %2108 = vst.msk [vmem:[%s5058_s26] sm:$0xf] %vm2107_vm7, %v3837_v20  ;;  %v3840_v23 = vpack.c.bf16 %v2070_v21, %v2070_v21  ;;  %v2068_v24 = vadd.f32 %v2039_v22, %v1979_v18  ;;  %4086 = vmatprep.subr.bf16.mxu0 %v4745_v19  ;;  %v3734_v22 = vld [vmem:[#allocation10 + $0x1] ss:$0 sm:$0xff] }
 0x8ca   : > { %2111 = vst.msk [vmem:[%s5058_s26 + $0xc] sm:$0xf] %vm2107_vm7, %v3840_v23  ;;  %v3838_v26 = vpack.c.bf16 %v2068_v24, %v2068_v24  ;;  %v4042_v27 = vpop.f32.mrf.mxu0 }
 0x8cb   : > { %v2073_v29 = vadd.f32 %v4042_v27, %v1984_v25  ;;  %4087 = vmatpush3.bf16.msra.mxu0 %v4346_v16  ;;  %v3774_v16 = vld [vmem:[#allocation8 + $0x3] ss:$0 sm:$0xff] }
 0x8cc   : > { %2109 = vst.msk [vmem:[%s5058_s26 + $0x4] sm:$0xf] %vm2107_vm7, %v3838_v26  ;;  %v2052_v30 = vpop.f32.mrf.mxu0  ;;  %4100 = vmatprep.subr.bf16.mxu0 %v4745_v19 }
 0x8cd   : > { %v3843_v32 = vpack.c.bf16 %v2073_v29, %v2073_v29  ;;  %v2071_v33 = vadd.f32 %v2052_v30, %v1982_v28  ;;  %v3750_v30 = vld [vmem:[#allocation8 + $0x2] ss:$0 sm:$0xff] }
 0x8ce   : > { %v4043_v34 = vpop.f32.mrf.mxu0 }
 0x8cf   : > { %2114 = vst.msk [vmem:[%s5058_s26 + $0x18] sm:$0xf] %vm2107_vm7, %v3843_v32  ;;  %v3841_v36 = vpack.c.bf16 %v2071_v33, %v2071_v33  ;;  %v2074_v37 = vadd.f32 %v4043_v34, %v1985_v31 }
 0x8d0   : > { %v2055_v38 = vpop.f32.mrf.mxu0 }
 0x8d1   : > { %2112 = vst.msk [vmem:[%s5058_s26 + $0x10] sm:$0xf] %vm2107_vm7, %v3841_v36  ;;  %v3844_v40 = vpack.c.bf16 %v2074_v37, %v2074_v37  ;;  %v2072_v41 = vadd.f32 %v2055_v38, %v1983_v35 }
 0x8d2   : > { %v2249_v42 = vpop.f32.mrf.mxu0 }
 0x8d3   : > { %2115 = vst.msk [vmem:[%s5058_s26 + $0x1c] sm:$0xf] %vm2107_vm7, %v3844_v40  ;;  %v3842_v43 = vpack.c.bf16 %v2072_v41, %v2072_v41  ;;  %v2250_v44 = vadd.f32 %v3714_v39, %v2249_v42 }
 0x8d4   : > { %v4058_v45 = vpop.f32.mrf.mxu0 }
 0x8d5   : > { %2113 = vst.msk [vmem:[%s5058_s26 + $0x14] sm:$0xf] %vm2107_vm7, %v3842_v43  ;;  %v2255_v46 = vmul.f32 %v2250_v44, %v2250_v44  ;;  %s5552_s26 = scalar_lea.vmem %s5495_s25, %s5046_s1 }
 0x8d6   : > { %v2252_v47 = vpop.f32.mrf.mxu0 }
 0x8d7   : > { %v2256_v48 = vmul.f32 %v2255_v46, %v2250_v44 }
 0x8d8   : > { %v4059_v49 = vpop.f32.mrf.mxu0 }
 0x8d9   : > { %v2257_v51 = vmul.f32 0.044715, %v2256_v48  ;;  %v4347_v48 = vld [vmem:[%s5481_s11 + $0x28] sm:$0xff]  }
 0x8da   : > { %v2390_v52 = vpop.f32.mrf.mxu0 }
 0x8db   : > { %v2258_v53 = vadd.f32 %v2257_v51, %v2250_v44  ;;  %v2391_v54 = vadd.f32 %v3726_v50, %v2390_v52  ;;  %v4348_v52 = vld [vmem:[%s5481_s11 + $0x20] sm:$0xff]  }
 0x8dc   : > { %v4074_v55 = vpop.f32.mrf.mxu0 }
 0x8dd   : > { %v2259_v56 = vmul.f32 0.7978846, %v2258_v53  ;;  %v2396_v57 = vmul.f32 %v2391_v54, %v2391_v54  ;;  %v4349_v55 = vld [vmem:[%s5550_s0 + $0x38] sm:$0xff]  }
 0x8de   : > { %v2393_v58 = vpop.f32.mrf.mxu0 }
 0x8df   : > { %4403 = vtanh.f32 %v2259_v56  ;;  %v2397_v59 = vmul.f32 %v2396_v57, %v2391_v54  ;;  %v4350_v57 = vld [vmem:[%s5550_s0 + $0x30] sm:$0xff]   ;;  %v4351_v58 = vld [vmem:[%s5483_s13 + $0x28] sm:$0xff]  }
 0x8e0   : > { %v4075_v60 = vpop.f32.mrf.mxu0 }
 0x8e1   : > { %v2398_v62 = vmul.f32 0.044715, %v2397_v59  ;;  %v4352_v59 = vld [vmem:[%s5483_s13 + $0x20] sm:$0xff]   ;;  %v3718_v60 = vld [vmem:[#allocation11] ss:$0 sm:$0xff] }
 0x8e3   : > { %v2399_v63 = vadd.f32 %v2398_v62, %v2391_v54  ;;  %v3742_v62 = vld [vmem:[#allocation11 + $0x1] ss:$0 sm:$0xff] }
 0x8e5   : > { %v2400_v0 = vmul.f32 0.7978846, %v2399_v63 }
 0x8e7   : > { %4405 = vtanh.f32 %v2400_v0 }
 0x8ec   : > { %v4404_v1 = vpop.eup %4403 }
 0x8ed   : > { %v2261_v2 = vadd.f32 1.0, %v4404_v1 }
 0x8ef   : > { %v2262_v3 = vmul.f32 0.5, %v2261_v2 }
 0x8f1   : > { %v2263_v4 = vmul.f32 %v2262_v3, %v2250_v44 }
 0x8f3   : > { %v2264_v6 = vpack.c.bf16 %v2263_v4, %v2263_v4 }
 0x8f4   : > { %v4406_v7 = vpop.eup %4405 }
 0x8f5   : > { %v2402_v8 = vadd.f32 1.0, %v4406_v7  ;;  %4065 = vmatmul.mubr.msk.bf16.vlgmr.msra.gmra.mxu1 %vm1433_vm3, %v2264_v6 }
 0x8f6   : > { %4077 = vmatpush3.bf16.msra.mxu1 %v4341_v5  ;;  %4080 = vmatprep.mubr.msk.bf16.mxu1 %vm4746_vm2, %v4745_v19 }
 0x8f7   : > { %v2403_v10 = vmul.f32 0.5, %v2402_v8  ;;  %4078 = vmatprep.subr.bf16.mxu1 %v4745_v19  ;;  %v3758_v8 = vld [vmem:[#allocation10 + $0x2] ss:$0 sm:$0xff] }
 0x8f9   : > { %v2404_v11 = vmul.f32 %v2403_v10, %v2391_v54 }
 0x8fa   : > { %4079 = vmatpush3.bf16.msra.mxu1 %v4342_v9 }
 0x8fb   : > { %v2405_v13 = vpack.c.bf16 %v2404_v11, %v2404_v11  ;;  %4092 = vmatprep.subr.bf16.mxu1 %v4745_v19 }
 0x8fd   : > { %4081 = vmatmul.mubr.msk.bf16.vlgmr.msra.gmra.mxu1 %vm1433_vm3, %v2405_v13 }
 0x8fe   : > { %4093 = vmatpush3.bf16.msra.mxu1 %v4343_v12  ;;  %4096 = vmatprep.mubr.msk.bf16.mxu1 %vm4746_vm2, %v4745_v19 }
 0x8ff   : > { %4094 = vmatprep.subr.bf16.mxu1 %v4745_v19 }
 0x902   : > { %4095 = vmatpush3.bf16.msra.mxu1 %v4344_v14 }
 0x903   : > { %4108 = vmatprep.subr.bf16.mxu1 %v4745_v19 }
 0x905   : > { %4097 = vmatmul.mubr.msk.bf16.vlgmr.msra.gmra.mxu1 %vm1433_vm3, %v5226_v61 }
 0x906   : > { %4112 = vmatprep.mubr.msk.bf16.mxu1 %vm4746_vm2, %v4745_v19  ;;  %4109 = vmatpush3.bf16.msra.mxu1 %v4351_v58 }
 0x907   : > { %4110 = vmatprep.subr.bf16.mxu1 %v4745_v19 }
 0x90a   : > { %4111 = vmatpush3.bf16.msra.mxu1 %v4352_v59 }
 0x90b   : > { %4124 = vmatprep.subr.bf16.mxu1 %v4745_v19 }
 0x9b5   : > { %v5366_v17 = vpop.f32.mrf.mxu1 }
 0x9b6   : > { %v2326_v63 = vadd.f32 %v3718_v60, %v5366_v17 }
 0x9b7   : > { %v4066_v18 = vpop.f32.mrf.mxu1 }
 0x9b8   : > { %v2995_v3 = vrot.slane %v2326_v63, 1  ;;  %v3794_v63 = vld [vmem:[%s5486_s16] ss:$0 sm:$0xff] }
 0x9b9   : > { %v2328_v20 = vpop.f32.mrf.mxu1 }
 0x9bb   : > { %v4067_v21 = vpop.f32.mrf.mxu1 }
 0x9bd   : > { %v2468_v23 = vpop.f32.mrf.mxu1 }
 0x9be   : > { %v2469_v24 = vadd.f32 %v3734_v22, %v2468_v23 }
 0x9bf   : > { %v4082_v25 = vpop.f32.mrf.mxu1 }
 0x9c0   : > { %v2474_v26 = vmul.f32 %v2469_v24, %v2469_v24 }
 0x9c1   : > { %v2471_v27 = vpop.f32.mrf.mxu1 }
 0x9c2   : > { %v2475_v28 = vmul.f32 %v2474_v26, %v2469_v24 }
 0x9c3   : > { %v4083_v29 = vpop.f32.mrf.mxu1 }
 0x9c4   : > { %v2476_v31 = vmul.f32 0.044715, %v2475_v28 }
 0x9c5   : > { %v2611_v32 = vpop.f32.mrf.mxu1 }
 0x9c6   : > { %v2477_v33 = vadd.f32 %v2476_v31, %v2469_v24  ;;  %v2612_v34 = vadd.f32 %v3750_v30, %v2611_v32 }
 0x9c7   : > { %v4098_v35 = vpop.f32.mrf.mxu1 }
 0x9c8   : > { %v2478_v36 = vmul.f32 0.7978846, %v2477_v33  ;;  %v2617_v37 = vmul.f32 %v2612_v34, %v2612_v34  ;;  %v4353_v35 = vld [vmem:[%s5481_s11 + $0x38] sm:$0xff]  }
 0x9c9   : > { %v2614_v38 = vpop.f32.mrf.mxu1 }
 0x9ca   : > { %4407 = vtanh.f32 %v2478_v36  ;;  %v2618_v39 = vmul.f32 %v2617_v37, %v2612_v34 }
 0x9cb   : > { %v4099_v40 = vpop.f32.mrf.mxu1 }
 0x9cc   : > { %v2619_v41 = vmul.f32 0.044715, %v2618_v39  ;;  %v4354_v39 = vld [vmem:[%s5481_s11 + $0x30] sm:$0xff]  }
 0x9ce   : > { %v2620_v42 = vadd.f32 %v2619_v41, %v2612_v34 }
 0x9d0   : > { %v2621_v43 = vmul.f32 0.7978846, %v2620_v42  ;;  %v4355_v42 = vld [vmem:[#allocation13 + $0x8] sm:$0xff]  }
 0x9d2   : > { %4409 = vtanh.f32 %v2621_v43 }
 0x9d7   : > { %v4408_v44 = vpop.eup %4407 }
 0x9d8   : > { %v2480_v45 = vadd.f32 1.0, %v4408_v44  ;;  %v4356_v44 = vld [vmem:[#allocation13] sm:$0xff]  }
 0x9da   : > { %v2481_v46 = vmul.f32 0.5, %v2480_v45  ;;  %v4357_v45 = vld [vmem:[%s5483_s13 + $0x38] sm:$0xff]  }
 0x9dc   : > { %v2482_v47 = vmul.f32 %v2481_v46, %v2469_v24  ;;  %v4358_v46 = vld [vmem:[%s5483_s13 + $0x30] sm:$0xff]  }
 0x9de   : > { %v2483_v49 = vpack.c.bf16 %v2482_v47, %v2482_v47  ;;  %v3766_v47 = vld [vmem:[#allocation11 + $0x2] ss:$0 sm:$0xff] }
 0x9df   : > { %v4410_v50 = vpop.eup %4409 }
 0x9e0   : > { %v2623_v51 = vadd.f32 1.0, %v4410_v50  ;;  %4089 = vmatmul.mubr.msk.bf16.vlgmr.msra.gmra.mxu0 %vm1433_vm3, %v2483_v49 }
 0x9e1   : > { %4101 = vmatpush3.bf16.msra.mxu0 %v4347_v48  ;;  %4104 = vmatprep.mubr.msk.bf16.mxu0 %vm4746_vm2, %v4745_v19 }
 0x9e2   : > { %v2624_v53 = vmul.f32 0.5, %v2623_v51  ;;  %4102 = vmatprep.subr.bf16.mxu0 %v4745_v19 }
 0x9e4   : > { %v2625_v54 = vmul.f32 %v2624_v53, %v2612_v34 }
 0x9e5   : > { %4103 = vmatpush3.bf16.msra.mxu0 %v4348_v52 }
 0x9e6   : > { %v2626_v56 = vpack.c.bf16 %v2625_v54, %v2625_v54  ;;  %4116 = vmatprep.subr.bf16.mxu0 %v4745_v19  ;;  %v3782_v54 = vld [vmem:[#allocation10 + $0x3] ss:$0 sm:$0xff] }
 0x9e8   : > { %4105 = vmatmul.mubr.msk.bf16.vlgmr.msra.gmra.mxu0 %vm1433_vm3, %v2626_v56 }
 0x9e9   : > { %4117 = vmatpush3.bf16.msra.mxu0 %v4349_v55  ;;  %4120 = vmatprep.mubr.msk.bf16.mxu0 %vm4746_vm2, %v4745_v19 }
 0x9ea   : > { %4118 = vmatprep.subr.bf16.mxu0 %v4745_v19 }
 0x9ed   : > { %4119 = vmatpush3.bf16.msra.mxu0 %v4350_v57 }
 0x9ee   : > { %4132 = vmatprep.subr.bf16.mxu0 %v4745_v19 }
 0x9f0   : > { %4121 = vmatmul.mubr.msk.bf16.vlgmr.msra.gmra.mxu0 %vm1433_vm3, %v5226_v61 }
 0x9f1   : > { %4136 = vmatprep.mubr.msk.bf16.mxu0 %vm4746_vm2, %v4745_v19  ;;  %4133 = vmatpush3.bf16.msra.mxu0 %v4357_v45 }
 0x9f2   : > { %4134 = vmatprep.subr.bf16.mxu0 %v4745_v19 }
 0x9f5   : > { %4135 = vmatpush3.bf16.msra.mxu0 %v4358_v46 }
 0x9f6   : > { %4148 = vmatprep.subr.bf16.mxu0 %v4745_v19 }
 0xaa0   : > { %v2546_v0 = vpop.f32.mrf.mxu0 }
 0xaa1   : > { %v2547_v1 = vadd.f32 %v3742_v62, %v2546_v0 }
 0xaa2   : > { %v4090_v2 = vpop.f32.mrf.mxu0 }
 0xaa3   : > { %v2998_v4 = vrot.slane %v2547_v1, 1 }
 0xaa4   : > { %v2549_v5 = vpop.f32.mrf.mxu0 }
 0xaa5   : > { %v5403_v6 = vsel %vm3006_vm8, %v2995_v3, %v2998_v4 }
 0xaa6   : > { %v4091_v7 = vpop.f32.mrf.mxu0 }
 0xaa8   : > { %v2689_v9 = vpop.f32.mrf.mxu0 }
 0xaa9   : > { %v2690_v10 = vadd.f32 %v3758_v8, %v2689_v9 }
 0xaaa   : > { %v4106_v11 = vpop.f32.mrf.mxu0 }
 0xaab   : > { %v2695_v12 = vmul.f32 %v2690_v10, %v2690_v10 }
 0xaac   : > { %v2692_v13 = vpop.f32.mrf.mxu0 }
 0xaad   : > { %v2696_v14 = vmul.f32 %v2695_v12, %v2690_v10 }
 0xaae   : > { %v4107_v15 = vpop.f32.mrf.mxu0 }
 0xaaf   : > { %v2697_v17 = vmul.f32 0.044715, %v2696_v14 }
 0xab0   : > { %v2832_v18 = vpop.f32.mrf.mxu0 }
 0xab1   : > { %v2698_v20 = vadd.f32 %v2697_v17, %v2690_v10  ;;  %v2833_v21 = vadd.f32 %v3774_v16, %v2832_v18  ;;  %v4359_v17 = vld [vmem:[#allocation14 + $0x8] sm:$0xff]  }
 0xab2   : > { %v4122_v22 = vpop.f32.mrf.mxu0 }
 0xab3   : > { %v2699_v23 = vmul.f32 0.7978846, %v2698_v20  ;;  %v2838_v24 = vmul.f32 %v2833_v21, %v2833_v21  ;;  %v4360_v22 = vld [vmem:[#allocation14] sm:$0xff]  }
 0xab4   : > { %v2835_v25 = vpop.f32.mrf.mxu0 }
 0xab5   : > { %4411 = vtanh.f32 %v2699_v23  ;;  %v2839_v26 = vmul.f32 %v2838_v24, %v2833_v21 }
 0xab6   : > { %v4123_v27 = vpop.f32.mrf.mxu0 }
 0xab7   : > { %v2840_v28 = vmul.f32 0.044715, %v2839_v26  ;;  %v4361_v26 = vld [vmem:[#allocation17 + $0x8] sm:$0xff]   ;;  %v4362_v27 = vld [vmem:[#allocation17] sm:$0xff]  }
 0xab9   : > { %v2841_v29 = vadd.f32 %v2840_v28, %v2833_v21  ;;  %v3790_v28 = vld [vmem:[#allocation11 + $0x3] ss:$0 sm:$0xff] }
 0xabb   : > { %v2842_v30 = vmul.f32 0.7978846, %v2841_v29 }
 0xabd   : > { %4413 = vtanh.f32 %v2842_v30 }
 0xac2   : > { %v4412_v31 = vpop.eup %4411 }
 0xac3   : > { %v2701_v32 = vadd.f32 1.0, %v4412_v31 }
 0xac5   : > { %v2702_v33 = vmul.f32 0.5, %v2701_v32 }
 0xac7   : > { %v2703_v34 = vmul.f32 %v2702_v33, %v2690_v10 }
 0xac9   : > { %v2704_v36 = vpack.c.bf16 %v2703_v34, %v2703_v34 }
 0xaca   : > { %v4414_v37 = vpop.eup %4413 }
 0xacb   : > { %v2844_v38 = vadd.f32 1.0, %v4414_v37  ;;  %4113 = vmatmul.mubr.msk.bf16.vlgmr.msra.gmra.mxu1 %vm1433_vm3, %v2704_v36  ;;  %v3798_v36 = vld [vmem:[#allocation16] ss:$0 sm:$0xff] }
 0xacc   : > { %4125 = vmatpush3.bf16.msra.mxu1 %v4353_v35  ;;  %4128 = vmatprep.mubr.msk.bf16.mxu1 %vm4746_vm2, %v4745_v19 }
 0xacd   : > { %v2845_v40 = vmul.f32 0.5, %v2844_v38  ;;  %4126 = vmatprep.subr.bf16.mxu1 %v4745_v19 }
 0xacf   : > { %v2846_v41 = vmul.f32 %v2845_v40, %v2833_v21 }
 0xad0   : > { %4127 = vmatpush3.bf16.msra.mxu1 %v4354_v39 }
 0xad1   : > { %v2847_v43 = vpack.c.bf16 %v2846_v41, %v2846_v41  ;;  %4140 = vmatprep.subr.bf16.mxu1 %v4745_v19 }
 0xad3   : > { %4129 = vmatmul.mubr.msk.bf16.vlgmr.msra.gmra.mxu1 %vm1433_vm3, %v2847_v43 }
 0xad4   : > { %4141 = vmatpush3.bf16.msra.mxu1 %v4355_v42  ;;  %4144 = vmatprep.mubr.msk.bf16.mxu1 %vm4746_vm2, %v4745_v19 }
 0xad5   : > { %4142 = vmatprep.subr.bf16.mxu1 %v4745_v19 }
 0xad8   : > { %4143 = vmatpush3.bf16.msra.mxu1 %v4356_v44 }
 0xad9   : > { %4156 = vmatprep.subr.bf16.mxu1 %v4745_v19 }
 0xadb   : > { %4145 = vmatmul.mubr.msk.bf16.vlgmr.msra.gmra.mxu1 %vm1433_vm3, %v5226_v61 }
 0xadc   : > { %4160 = vmatprep.mubr.msk.bf16.mxu1 %vm4746_vm2, %v4745_v19  ;;  %4157 = vmatpush3.bf16.msra.mxu1 %v4361_v26 }
 0xadd   : > { %4158 = vmatprep.subr.bf16.mxu1 %v4745_v19 }
 0xae0   : > { %4159 = vmatpush3.bf16.msra.mxu1 %v4362_v27 }
 0xb8b   : > { %v2767_v48 = vpop.f32.mrf.mxu1 }
 0xb8c   : > { %v2768_v61 = vadd.f32 %v3766_v47, %v2767_v48 }
 0xb8d   : > { %v4114_v49 = vpop.f32.mrf.mxu1 }
 0xb8e   : > { %v3001_v50 = vrot.slane %v2768_v61, 1 }
 0xb8f   : > { %v2770_v51 = vpop.f32.mrf.mxu1 }
 0xb90   : > { %v3009_v52 = vsel %vm3008_vm9, %v5403_v6, %v3001_v50  ;;  %v4363_v51 = vld [vmem:[%s5551_s4 + $0x8] sm:$0xff]  }
 0xb91   : > { %v4115_v53 = vpop.f32.mrf.mxu1 }
 0xb92   : > { %v3802_v53 = vld [vmem:[#allocation19] ss:$0 sm:$0xff] }
 0xb93   : > { %v2910_v55 = vpop.f32.mrf.mxu1 }
 0xb94   : > { %v2911_v56 = vadd.f32 %v3782_v54, %v2910_v55 }
 0xb95   : > { %v4130_v57 = vpop.f32.mrf.mxu1 }
 0xb96   : > { %v2916_v58 = vmul.f32 %v2911_v56, %v2911_v56 }
 0xb97   : > { %v2913_v59 = vpop.f32.mrf.mxu1 }
 0xb98   : > { %v2917_v60 = vmul.f32 %v2916_v58, %v2911_v56 }
 0xb99   : > { %v4131_v62 = vpop.f32.mrf.mxu1 }
 0xb9a   : > { %v2918_v0 = vmul.f32 0.044715, %v2917_v60 }
 0xb9b   : > { %v3071_v1 = vpop.f32.mrf.mxu1 }
 0xb9c   : > { %v2919_v2 = vadd.f32 %v2918_v0, %v2911_v56  ;;  %v3072_v3 = vadd.f32 %v3794_v63, %v3071_v1 }
 0xb9d   : > { %v4146_v4 = vpop.f32.mrf.mxu1 }
 0xb9e   : > { %v2920_v5 = vmul.f32 0.7978846, %v2919_v2  ;;  %v3077_v6 = vmul.f32 %v3072_v3, %v3072_v3 }
 0xb9f   : > { %v3074_v7 = vpop.f32.mrf.mxu1 }
 0xba0   : > { %4415 = vtanh.f32 %v2920_v5  ;;  %v3078_v8 = vmul.f32 %v3077_v6, %v3072_v3  ;;  %v3806_v5 = vld [vmem:[#allocation20] ss:$0 sm:$0xff] }
 0xba1   : > { %v4147_v9 = vpop.f32.mrf.mxu1 }
 0xba2   : > { %v3079_v10 = vmul.f32 0.044715, %v3078_v8 }
 0xba4   : > { %v3080_v11 = vadd.f32 %v3079_v10, %v3072_v3 }
 0xba6   : > { %v3081_v12 = vmul.f32 0.7978846, %v3080_v11 }
 0xba8   : > { %4417 = vtanh.f32 %v3081_v12 }
 0xbad   : > { %v4416_v13 = vpop.eup %4415 }
 0xbae   : > { %v2922_v14 = vadd.f32 1.0, %v4416_v13 }
 0xbb0   : > { %v2923_v15 = vmul.f32 0.5, %v2922_v14 }
 0xbb2   : > { %v2924_v16 = vmul.f32 %v2923_v15, %v2911_v56 }
 0xbb4   : > { %v2925_v18 = vpack.c.bf16 %v2924_v16, %v2924_v16 }
 0xbb5   : > { %v4418_v20 = vpop.eup %4417 }
 0xbb6   : > { %v3083_v21 = vadd.f32 1.0, %v4418_v20  ;;  %4137 = vmatmul.mubr.msk.bf16.vlgmr.msra.gmra.mxu0 %vm1433_vm3, %v2925_v18 }
 0xbb7   : > { %4149 = vmatpush3.bf16.msra.mxu0 %v4359_v17  ;;  %4152 = vmatprep.mubr.msk.bf16.mxu0 %vm4746_vm2, %v4745_v19 }
 0xbb8   : > { %v3084_v23 = vmul.f32 0.5, %v3083_v21  ;;  %4150 = vmatprep.subr.bf16.mxu0 %v4745_v19 }
 0xbba   : > { %v3085_v24 = vmul.f32 %v3084_v23, %v3072_v3 }
 0xbbb   : > { %4151 = vmatpush3.bf16.msra.mxu0 %v4360_v22 }
 0xbbc   : > { %v3086_v25 = vpack.c.bf16 %v3085_v24, %v3085_v24  ;;  %4164 = vmatprep.subr.bf16.mxu0 %v4745_v19 }
 0xbbe   : > { %4153 = vmatmul.mubr.msk.bf16.vlgmr.msra.gmra.mxu0 %vm1433_vm3, %v3086_v25 }
 0xbbf   : > { %4168 = vmatprep.mubr.msk.bf16.mxu0 %vm4746_vm2, %v4745_v19  ;;  %4165 = vmatpush3.bf16.msra.mxu0 %v4363_v51 }
 0xbc0   : > { %4166 = vmatprep.subr.bf16.mxu0 %v4745_v19 }
 0xc76   : > { %v2988_v29 = vpop.f32.mrf.mxu0 }
 0xc77   : > { %v2989_v30 = vadd.f32 %v3790_v28, %v2988_v29 }
 0xc78   : > { %v4138_v31 = vpop.f32.mrf.mxu0 }
 0xc79   : > { %v3004_v32 = vrot.slane %v2989_v30, 1 }
 0xc7a   : > { %v2991_v33 = vpop.f32.mrf.mxu0 }
 0xc7b   : > { %v3011_v34 = vsel %vm3010_vm10, %v3009_v52, %v3004_v32  ;;  %v4364_v52 = vld [vmem:[%s5551_s4] sm:$0xff]  }
 0xc7c   : > { %3013 = vst.msk [vmem:[%s5068_s15] sm:$0xf] %vm3012_vm11, %v3011_v34  ;;  %v4139_v35 = vpop.f32.mrf.mxu0  ;;  %4167 = vmatpush3.bf16.msra.mxu0 %v4364_v52 }
 0xc7e   : > { %v3147_v37 = vpop.f32.mrf.mxu0 }
 0xc7f   : > { %v3148_v38 = vadd.f32 %v3798_v36, %v3147_v37 }
 0xc80   : > { %v4154_v39 = vpop.f32.mrf.mxu0 }
 0xc81   : > { %v3153_v40 = vmul.f32 %v3148_v38, %v3148_v38 }
 0xc82   : > { %v3150_v41 = vpop.f32.mrf.mxu0 }
 0xc83   : > { %v3154_v42 = vmul.f32 %v3153_v40, %v3148_v38 }
 0xc84   : > { %v4155_v43 = vpop.f32.mrf.mxu0 }
 0xc85   : > { %v3155_v44 = vmul.f32 0.044715, %v3154_v42 }
 0xc87   : > { %v3156_v45 = vadd.f32 %v3155_v44, %v3148_v38 }
 0xc89   : > { %v3157_v46 = vmul.f32 0.7978846, %v3156_v45 }
 0xc8b   : > { %4419 = vtanh.f32 %v3157_v46 }
 0xc98   : > { %v4420_v47 = vpop.eup %4419 }
 0xc99   : > { %v3159_v48 = vadd.f32 1.0, %v4420_v47 }
 0xc9b   : > { %v3160_v61 = vmul.f32 0.5, %v3159_v48 }
 0xc9d   : > { %v3161_v49 = vmul.f32 %v3160_v61, %v3148_v38 }
 0xc9f   : > { %v3162_v50 = vpack.c.bf16 %v3161_v49, %v3161_v49 }
 0xca1   : > { %4161 = vmatmul.mubr.msk.bf16.vlgmr.msra.gmra.mxu1 %vm1433_vm3, %v3162_v50 }
 0xd61   : > { %v3223_v54 = vpop.f32.mrf.mxu1 }
 0xd62   : > { %v3224_v55 = vadd.f32 %v3802_v53, %v3223_v54 }
 0xd63   : > { %v4162_v56 = vpop.f32.mrf.mxu1 }
 0xd64   : > { %v3229_v57 = vmul.f32 %v3224_v55, %v3224_v55 }
 0xd65   : > { %v3226_v58 = vpop.f32.mrf.mxu1 }
 0xd66   : > { %v3230_v59 = vmul.f32 %v3229_v57, %v3224_v55 }
 0xd67   : > { %v4163_v60 = vpop.f32.mrf.mxu1 }
 0xd68   : > { %v3231_v62 = vmul.f32 0.044715, %v3230_v59 }
 0xd6a   : > { %v3232_v63 = vadd.f32 %v3231_v62, %v3224_v55 }
 0xd6c   : > { %v3233_v0 = vmul.f32 0.7978846, %v3232_v63 }
 0xd6e   : > { %4421 = vtanh.f32 %v3233_v0 }
 0xd7b   : > { %v4422_v1 = vpop.eup %4421 }
 0xd7c   : > { %v3235_v19 = vadd.f32 1.0, %v4422_v1 }
 0xd7e   : > { %v3236_v2 = vmul.f32 0.5, %v3235_v19 }
 0xd80   : > { %v3237_v3 = vmul.f32 %v3236_v2, %v3224_v55 }
 0xd82   : > { %v3238_v4 = vpack.c.bf16 %v3237_v3, %v3237_v3 }
 0xd84   : > { %4169 = vmatmul.mubr.msk.bf16.vlgmr.msra.gmra.mxu0 %vm1433_vm3, %v3238_v4 }
 0xe44   : > { %v3299_v6 = vpop.f32.mrf.mxu0 }
 0xe45   : > { %v3300_v7 = vadd.f32 %v3806_v5, %v3299_v6 }
 0xe46   : > { %v4170_v8 = vpop.f32.mrf.mxu0 }
 0xe47   : > { %3306 = vst.msk [vmem:[%s5552_s26] sm:$0x1] %vm3305_vm12, %v3300_v7 }
 0xe48   : > { %v3302_v9 = vpop.f32.mrf.mxu0 }
 0xe4a   : > { %v4171_v10 = vpop.f32.mrf.mxu0 }
 0xe4b PF: > { %s5553_s29 = sld [smem:[#allocation28_spill]] }
 0xe51   : > { %s42_s6 = sadd.s32 1, %s5553_s29   ;;  %s5554_s29 = smov %s4725_s2 }
 0xe52   : > { %p39_p4 = scmp.ge.s32.totalorder %s42_s6, 4   ;;  %s5555_s2 = smov %s5557_s9 }
 0xe54   :  { %41 = sbr.rel (!%p39_p4) target bundleno = 23 (0x17), region = 232 }
 0xe59   :  { %3378 = vsyncpa [#allocation7], 1 }
 0xe5a   :  { %3380 = vsyncpa [#allocation7 + $0x1], 1 }
 0xe5b   :  { %3381 = vsyncpa [#allocation9], 1 }
 0xe5c   :  { %3382 = vsyncpa [#allocation12], 1 }
 0xe5d   :  { %3383 = vsyncpa [#allocation15], 1 }
 0xe5e   :  { %3384 = vsyncpa [#allocation18], 1 }
 0xe5f   :  { %3385 = vsyncpa [#allocation21], 1 }

</bundles_post_ra>
